<compile_context>
chip_gen: v7x
topology: tpu7x:2x2x1
jax: 0.10.0
libtpu: 0.0.40
codegen_flags: <defaults>
</compile_context>

<pallas_src>
import functools

import numpy as np
import jax
import jax.numpy as jnp
from jax import lax
from jax.experimental import pallas as pl
from jax.experimental.pallas import tpu as pltpu

IN_CH, OUT_CH, KER = 64, 2, 15
PAD = (KER - 1) // 2
KTAPS = 16                              # taps padded to a sublane-aligned 16 rows/channel
BN_EPS = 1e-5

TARGET_STEP_BYTES = 4 * 1024 * 1024     # ~4 MiB of input DMA per grid step
VMEM_BUDGET = 24 * 1024 * 1024          # per-step data budget (v7x 64 MiB physical safe)
VMEM_LIMIT_CAP = 56 * 1024 * 1024
MAX_TB = 32                             # bound on the in-kernel per-segment unroll
MIN_STEPS = 4                           # >= 2 grid steps per v7x TensorCore when possible


def _vmem_estimate(tb, length, x_itemsize, out_itemsize):
    """Rough per-step VMEM footprint (double-buffered blocks + f32 intermediates)."""
    x_blk = tb * IN_CH * length * x_itemsize
    o_blk = tb * OUT_CH * length * out_itemsize
    z_tmp = OUT_CH * KTAPS * length * 4           # matmul result (f32)
    epi = 3 * KTAPS * length * 4                  # aligned / masked / mask temporaries
    w_blk = OUT_CH * KTAPS * IN_CH * 4
    return 2 * (x_blk + o_blk) + z_tmp + epi + 2 * w_blk + 1024


def _pick_tb(n, length, x_itemsize, out_itemsize):
    """Batch elements per grid step: big DMAs, bounded VMEM, >= MIN_STEPS steps."""
    seg = IN_CH * length * x_itemsize
    cap = max(1, min(MAX_TB, TARGET_STEP_BYTES // max(seg, 1)))
    while cap > 1 and _vmem_estimate(cap, length, x_itemsize, out_itemsize) > VMEM_BUDGET:
        cap -= 1
    if n >= MIN_STEPS:
        cap = min(cap, max(1, n // MIN_STEPS))
    else:
        cap = min(cap, max(1, n // 2)) if n >= 2 else 1
    cap = min(cap, n)
    # Prefer a divisor of n: avoids padding the batch (which would be an extra HBM
    # copy of x).  Worst case (prime n with tiny L) this degrades to tb=1.
    for tb in range(cap, 0, -1):
        if n % tb == 0:
            return tb
    return 1


@functools.lru_cache(maxsize=None)
def _strided_roll_ok(lanes):
    """One-time device probe (per lane width, outside jit): does pltpu.roll support a
    per-sublane-row strided lane rotation with amount (PAD - row), jnp.roll
    convention, at this width?  If not, the kernel uses a slice+concat fallback."""
    def probe_kernel(x_ref, o_ref):
        o_ref[...] = pltpu.roll(x_ref[...], PAD, axis=-1, stride=-1, stride_axis=0)

    try:
        x = jnp.broadcast_to(jnp.arange(lanes, dtype=jnp.float32), (KTAPS, lanes))
        got = pl.pallas_call(
            probe_kernel,
            out_shape=jax.ShapeDtypeStruct((KTAPS, lanes), jnp.float32),
        )(x)
        want = np.stack([np.roll(np.arange(lanes, dtype=np.float32), PAD - r)
                         for r in range(KTAPS)])
        return bool(np.array_equal(np.asarray(jax.block_until_ready(got)), want))
    except Exception:
        return False


def _outconv_kernel(x_ref, w_ref, b_ref, o_ref, *, seq_len, tb, mxu_dtype,
                    use_strided_roll):
    # x_ref: (TB, IN_CH, L)      activations, natural layout (no repack)
    # w_ref: (OUT_CH*16, IN_CH)  BN-folded weights, row = o*16 + k  (row 15 is 0-pad)
    # b_ref: (OUT_CH, 1)         BN-folded bias (f32)
    # o_ref: (TB, OUT_CH, L)
    w = w_ref[...]                                   # hoisted: resident across segments
    bias = b_ref[...]                                # hoisted out of the epilogue

    # "same"-padding validity mask, built once per grid step.  No integer modulo:
    # the block spans the whole (chunk of the) sequence, so lane index == position l.
    l_idx = lax.broadcasted_iota(jnp.int32, (KTAPS, seq_len), 1)
    k_idx = lax.broadcasted_iota(jnp.int32, (KTAPS, seq_len), 0)
    src = l_idx + k_idx - PAD                        # input position feeding tap k at l
    valid = (k_idx < KER) & (src >= 0) & (src < seq_len)

    for b in range(tb):                              # static unroll (tb <= MAX_TB)
        xb = x_ref[b].astype(mxu_dtype)              # (IN_CH, L), cast in VMEM for MXU
        # One MXU matmul covering all taps and both output channels.
        z = jnp.dot(w, xb, preferred_element_type=jnp.float32)     # (32, L) f32
        rows = []
        for o in range(OUT_CH):
            z_o = z[o * KTAPS:(o + 1) * KTAPS, :]    # sublane-aligned 16-row slice
            if use_strided_roll:
                # Row k rotated left by (k - PAD): ONE strided XLU rotation aligns all
                # 15 taps of this output channel at once.
                aligned = pltpu.roll(z_o, PAD, axis=-1, stride=-1, stride_axis=0)
            else:
                # Fallback (probe failed): static slice+concat rotation per tap row.
                parts = []
                for k in range(KER):
                    s = (k - PAD) % seq_len
                    row = z_o[k:k + 1, :]
                    if s:
                        row = jnp.concatenate([row[:, s:], row[:, :s]], axis=-1)
                    parts.append(row)
                parts.append(z_o[KER:, :])           # zero-weight padding row
                aligned = jnp.concatenate(parts, axis=0)
            # Zero out-of-range taps (the conv's zero padding), then sum the 16 rows.
            rows.append(jnp.sum(jnp.where(valid, aligned, 0.0),
                                axis=0, keepdims=True))             # (1, L)
        y = jnp.concatenate(rows, axis=0) + bias                     # (2, L) f32
        # ReLU followed by clamp(0, 1) == clip to [0, 1].
        o_ref[b] = jnp.clip(y, 0.0, 1.0).astype(o_ref.dtype)


def _forward(x, w_stack, bias, *, compute_dtype, use_strided_roll):
    n, _, length = x.shape
    out_dtype = x.dtype
    itemsize = x.dtype.itemsize
    tb = _pick_tb(n, length, itemsize, itemsize)
    ng = n // tb
    xg = x.reshape(ng, tb, IN_CH, length)            # free: splits the leading dim only

    est = _vmem_estimate(tb, length, itemsize, itemsize)
    vmem_limit = int(min(VMEM_LIMIT_CAP, max(16 * 1024 * 1024, 2 * est)))

    kernel = functools.partial(
        _outconv_kernel, seq_len=length, tb=tb, mxu_dtype=compute_dtype,
        use_strided_roll=use_strided_roll)

    out = pl.pallas_call(
        kernel,
        out_shape=jax.ShapeDtypeStruct((ng, tb, OUT_CH, length), out_dtype),
        grid=(ng,),
        in_specs=[
            pl.BlockSpec((None, tb, IN_CH, length), lambda g: (g, 0, 0, 0)),
            pl.BlockSpec((OUT_CH * KTAPS, IN_CH), lambda g: (0, 0)),   # resident weights
            pl.BlockSpec((OUT_CH, 1), lambda g: (0, 0)),               # resident bias
        ],
        out_specs=pl.BlockSpec((None, tb, OUT_CH, length), lambda g: (g, 0, 0, 0)),
        compiler_params=pltpu.CompilerParams(
            dimension_semantics=("parallel",),
            vmem_limit_bytes=vmem_limit),
    )(xg, w_stack, bias)
    return out.reshape(n, OUT_CH, length)            # free: merges the leading dims


@functools.partial(jax.jit,
                   static_argnames=("compute_dtype", "seq_chunk", "use_strided_roll"))
def _outconv1d_v2_impl(x, conv_w, conv_b, bn_gamma, bn_beta, bn_mean, bn_var, *,
                       compute_dtype, seq_chunk, use_strided_roll):
    n, c, length = x.shape
    assert c == IN_CH and conv_w.shape == (OUT_CH, IN_CH, KER)

    # ---- fold inference-mode BatchNorm into the conv weight / bias ----
    inv_std = lax.rsqrt(bn_var.astype(jnp.float32) + BN_EPS)
    scale = bn_gamma.astype(jnp.float32) * inv_std                          # (OUT_CH,)
    bias = (bn_beta.astype(jnp.float32)
            + scale * (conv_b.astype(jnp.float32) - bn_mean.astype(jnp.float32)))
    bias = bias.reshape(OUT_CH, 1)                                          # stays f32
    w_f = conv_w.astype(jnp.float32) * scale[:, None, None]                 # (2, 64, 15)
    # 16 sublane rows per output channel: row = o*16 + k (row 15 is zero padding).
    w_rows = jnp.transpose(w_f, (0, 2, 1))                                  # (2, 15, 64)
    w_rows = jnp.pad(w_rows, ((0, 0), (0, KTAPS - KER), (0, 0)))            # (2, 16, 64)
    w_stack = w_rows.reshape(OUT_CH * KTAPS, IN_CH).astype(compute_dtype)

    run = functools.partial(_forward, w_stack=w_stack, bias=bias,
                            compute_dtype=compute_dtype,
                            use_strided_roll=use_strided_roll)

    if seq_chunk >= length:
        return run(x)

    # Long-sequence fallback: overlapping chunks along L (halo = PAD per side) so each
    # chunk's interior sees exactly the inputs the "same"-padded conv needs.
    # TODO(synk): replace with an in-kernel L-tiling grid axis (halo via carry) to
    # avoid the extra slice copies for very long sequences.
    pieces = []
    for s in range(0, length, seq_chunk):
        e = min(s + seq_chunk, length)
        lo, hi = max(s - PAD, 0), min(e + PAD, length)
        yc = run(x[:, :, lo:hi])
        pieces.append(yc[:, :, s - lo:s - lo + (e - s)])
    return jnp.concatenate(pieces, axis=-1)


def _resolve_seq_chunk(length, itemsize, seq_chunk):
    if seq_chunk is not None:
        return max(1, min(int(seq_chunk), length))
    if _vmem_estimate(1, length, itemsize, itemsize) <= VMEM_BUDGET:
        return length
    tl = length
    while tl > 1024 and _vmem_estimate(1, tl + 2 * PAD, itemsize, itemsize) > VMEM_BUDGET:
        tl //= 2
    return tl


def outconv1d_v2(x, conv_w, conv_b, bn_gamma, bn_beta, bn_mean, bn_var, *,
                 compute_dtype=jnp.bfloat16, seq_chunk=None):
    """x: (N, IN_CH, L) -> (N, OUT_CH, L).

    compute_dtype is the MXU operand dtype (bf16 recommended on every TPU generation;
    accumulation and the bias/clip epilogue stay f32).  Pass bf16 activations to
    additionally halve HBM read traffic - the kernel never re-materializes x.
    """
    length = x.shape[-1]
    seq_chunk = _resolve_seq_chunk(length, x.dtype.itemsize, seq_chunk)
    if seq_chunk >= length:
        widths = {length}
    else:
        widths = {min(s + seq_chunk + PAD, length) - max(s - PAD, 0)
                  for s in range(0, length, seq_chunk)}
    use_strided_roll = all(_strided_roll_ok(w) for w in widths)
    return _outconv1d_v2_impl(
        x, conv_w, conv_b, bn_gamma, bn_beta, bn_mean, bn_var,
        compute_dtype=jnp.dtype(compute_dtype), seq_chunk=seq_chunk,
        use_strided_roll=use_strided_roll)


def reference(x, conv_w, conv_b, bn_gamma, bn_beta, bn_mean, bn_var):
    y = lax.conv_general_dilated(
        x, conv_w, window_strides=(1,), padding=[(PAD, PAD)],
        dimension_numbers=("NCH", "OIH", "NCH"),
    ) + conv_b.reshape(1, OUT_CH, 1)
    inv_std = lax.rsqrt(bn_var + BN_EPS)
    y = (y - bn_mean.reshape(1, OUT_CH, 1)) * (bn_gamma * inv_std).reshape(
        1, OUT_CH, 1) + bn_beta.reshape(1, OUT_CH, 1)
    return jnp.clip(jnp.maximum(y, 0.0), 0.0, 1.0)


if __name__ == "__main__":
    key = jax.random.PRNGKey(0)
    k_x, k_w, k_b, k_g, k_be, k_m, k_v = jax.random.split(key, 7)

    N, L = 16, 16
    x = jax.random.normal(k_x, (N, IN_CH, L), dtype=jnp.float32)

    conv_w = 0.05 * jax.random.normal(k_w, (OUT_CH, IN_CH, KER), dtype=jnp.float32)
    conv_b = 0.1 * jax.random.normal(k_b, (OUT_CH,), dtype=jnp.float32)
    bn_gamma = 1.0 + 0.1 * jax.random.normal(k_g, (OUT_CH,), dtype=jnp.float32)
    bn_beta = 0.1 * jax.random.normal(k_be, (OUT_CH,), dtype=jnp.float32)
    bn_mean = 0.1 * jax.random.normal(k_m, (OUT_CH,), dtype=jnp.float32)
    bn_var = jax.random.uniform(k_v, (OUT_CH,), minval=0.5, maxval=1.5,
                                dtype=jnp.float32)

    ref = reference(x, conv_w, conv_b, bn_gamma, bn_beta, bn_mean, bn_var)

    # f32 MXU path (tight tolerance).
    out = outconv1d_v2(x, conv_w, conv_b, bn_gamma, bn_beta, bn_mean, bn_var,
                       compute_dtype=jnp.float32)
    out = jax.block_until_ready(out)
    assert out.shape == (N, OUT_CH, L)
    assert jnp.allclose(out, ref, atol=1e-4, rtol=1e-4)

    # Default bf16 MXU path (f32 accumulation + epilogue), all generations.
    out_bf16 = jax.block_until_ready(
        outconv1d_v2(x, conv_w, conv_b, bn_gamma, bn_beta, bn_mean, bn_var))
    assert out_bf16.shape == (N, OUT_CH, L)
    assert jnp.allclose(out_bf16, ref, atol=5e-2, rtol=5e-2)

    # Long-sequence (chunked) fallback path, forced with a tiny chunk size.
    out_chunk = jax.block_until_ready(
        outconv1d_v2(x, conv_w, conv_b, bn_gamma, bn_beta, bn_mean, bn_var,
                     compute_dtype=jnp.float32, seq_chunk=8))
    assert out_chunk.shape == (N, OUT_CH, L)
    assert jnp.allclose(out_chunk, ref, atol=1e-4, rtol=1e-4)

    print("KERNEL_OK")
</pallas_src>

<mosaic_0001>
module attributes {stable_mosaic.version = 11 : i64} {
  func.func @_outconv_kernel(%arg0: i32, %arg1: memref<1x4x64x16xf32, #tpu.memory_space<vmem>>, %arg2: memref<32x64xf32, #tpu.memory_space<vmem>>, %arg3: memref<2x1xf32, #tpu.memory_space<vmem>>, %arg4: memref<1x4x2x16xf32, #tpu.memory_space<vmem>>) attributes {dimension_semantics = [#tpu.dimension_semantics<parallel>], iteration_bounds = array<i64: 4>, scalar_prefetch = 0 : i64, scratch_operands = 0 : i64, tpu.core_type = #tpu.core_type<tc>, window_params = [{transform_indices = @transform_0, window_bounds = array<i64: 1, 4, 64, 16>}, {pipeline_mode = #tpu.pipeline_mode<synchronous>, transform_indices = @transform_1, window_bounds = array<i64: 32, 64>}, {pipeline_mode = #tpu.pipeline_mode<synchronous>, transform_indices = @transform_2, window_bounds = array<i64: 2, 1>}, {transform_indices = @transform_3, window_bounds = array<i64: 1, 4, 2, 16>}]} {
    %c0 = arith.constant 0 : index
    %c0_0 = arith.constant 0 : index
    %0 = vector.load %arg2[%c0, %c0_0] : memref<32x64xf32, #tpu.memory_space<vmem>>, vector<32x64xf32>
    %c0_1 = arith.constant 0 : index
    %c0_2 = arith.constant 0 : index
    %1 = vector.load %arg3[%c0_1, %c0_2] : memref<2x1xf32, #tpu.memory_space<vmem>>, vector<2x1xf32>
    %2 = tpu.iota {dimensions = array<i32: 1>} : vector<16x16xi32>
    %3 = tpu.iota {dimensions = array<i32: 0>} : vector<16x16xi32>
    %4 = arith.addi %2, %3 : vector<16x16xi32>
    %c7_i32 = arith.constant 7 : i32
    %5 = vector.broadcast %c7_i32 : i32 to vector<16x16xi32>
    %6 = arith.subi %4, %5 : vector<16x16xi32>
    %c15_i32 = arith.constant 15 : i32
    %7 = vector.broadcast %c15_i32 : i32 to vector<16x16xi32>
    %8 = arith.cmpi slt, %3, %7 : vector<16x16xi32>
    %c0_i32 = arith.constant 0 : i32
    %9 = vector.broadcast %c0_i32 : i32 to vector<16x16xi32>
    %10 = arith.cmpi sge, %6, %9 : vector<16x16xi32>
    %11 = arith.andi %8, %10 : vector<16x16xi1>
    %c16_i32 = arith.constant 16 : i32
    %12 = vector.broadcast %c16_i32 : i32 to vector<16x16xi32>
    %13 = arith.cmpi slt, %6, %12 : vector<16x16xi32>
    %14 = arith.andi %11, %13 : vector<16x16xi1>
    %c0_3 = arith.constant 0 : index
    %c0_4 = arith.constant 0 : index
    %c0_5 = arith.constant 0 : index
    %c0_6 = arith.constant 0 : index
    %15 = vector.load %arg1[%c0_3, %c0_4, %c0_5, %c0_6] : memref<1x4x64x16xf32, #tpu.memory_space<vmem>>, vector<1x1x64x16xf32>
    %16 = vector.shape_cast %15 : vector<1x1x64x16xf32> to vector<64x16xf32>
    %cst = arith.constant dense<0.000000e+00> : vector<32x16xf32>
    %17 = tpu.matmul %0, %16, %cst {dimension_numbers = #tpu.dot_dimension_numbers<[1], [0], [0], [1], [0, 0, 1, 1], [], []>} : vector<32x64xf32>, vector<64x16xf32>, vector<32x16xf32> -> vector<32x16xf32>
    %18 = vector.extract_strided_slice %17 {offsets = [0, 0], sizes = [16, 16], strides = [1, 1]} : vector<32x16xf32> to vector<16x16xf32>
    %19 = vector.extract_strided_slice %18 {offsets = [0, 0], sizes = [1, 16], strides = [1, 1]} : vector<16x16xf32> to vector<1x16xf32>
    %20 = vector.extract_strided_slice %19 {offsets = [0, 9], sizes = [1, 7], strides = [1, 1]} : vector<1x16xf32> to vector<1x7xf32>
    %21 = vector.extract_strided_slice %19 {offsets = [0, 0], sizes = [1, 9], strides = [1, 1]} : vector<1x16xf32> to vector<1x9xf32>
    %22 = tpu.concatenate %20, %21 in 1 : vector<1x7xf32>, vector<1x9xf32> -> vector<1x16xf32>
    %23 = vector.extract_strided_slice %18 {offsets = [1, 0], sizes = [1, 16], strides = [1, 1]} : vector<16x16xf32> to vector<1x16xf32>
    %24 = vector.extract_strided_slice %23 {offsets = [0, 10], sizes = [1, 6], strides = [1, 1]} : vector<1x16xf32> to vector<1x6xf32>
    %25 = vector.extract_strided_slice %23 {offsets = [0, 0], sizes = [1, 10], strides = [1, 1]} : vector<1x16xf32> to vector<1x10xf32>
    %26 = tpu.concatenate %24, %25 in 1 : vector<1x6xf32>, vector<1x10xf32> -> vector<1x16xf32>
    %27 = vector.extract_strided_slice %18 {offsets = [2, 0], sizes = [1, 16], strides = [1, 1]} : vector<16x16xf32> to vector<1x16xf32>
    %28 = vector.extract_strided_slice %27 {offsets = [0, 11], sizes = [1, 5], strides = [1, 1]} : vector<1x16xf32> to vector<1x5xf32>
    %29 = vector.extract_strided_slice %27 {offsets = [0, 0], sizes = [1, 11], strides = [1, 1]} : vector<1x16xf32> to vector<1x11xf32>
    %30 = tpu.concatenate %28, %29 in 1 : vector<1x5xf32>, vector<1x11xf32> -> vector<1x16xf32>
    %31 = vector.extract_strided_slice %18 {offsets = [3, 0], sizes = [1, 16], strides = [1, 1]} : vector<16x16xf32> to vector<1x16xf32>
    %32 = vector.extract_strided_slice %31 {offsets = [0, 12], sizes = [1, 4], strides = [1, 1]} : vector<1x16xf32> to vector<1x4xf32>
    %33 = vector.extract_strided_slice %31 {offsets = [0, 0], sizes = [1, 12], strides = [1, 1]} : vector<1x16xf32> to vector<1x12xf32>
    %34 = tpu.concatenate %32, %33 in 1 : vector<1x4xf32>, vector<1x12xf32> -> vector<1x16xf32>
    %35 = vector.extract_strided_slice %18 {offsets = [4, 0], sizes = [1, 16], strides = [1, 1]} : vector<16x16xf32> to vector<1x16xf32>
    %36 = vector.extract_strided_slice %35 {offsets = [0, 13], sizes = [1, 3], strides = [1, 1]} : vector<1x16xf32> to vector<1x3xf32>
    %37 = vector.extract_strided_slice %35 {offsets = [0, 0], sizes = [1, 13], strides = [1, 1]} : vector<1x16xf32> to vector<1x13xf32>
    %38 = tpu.concatenate %36, %37 in 1 : vector<1x3xf32>, vector<1x13xf32> -> vector<1x16xf32>
    %39 = vector.extract_strided_slice %18 {offsets = [5, 0], sizes = [1, 16], strides = [1, 1]} : vector<16x16xf32> to vector<1x16xf32>
    %40 = vector.extract_strided_slice %39 {offsets = [0, 14], sizes = [1, 2], strides = [1, 1]} : vector<1x16xf32> to vector<1x2xf32>
    %41 = vector.extract_strided_slice %39 {offsets = [0, 0], sizes = [1, 14], strides = [1, 1]} : vector<1x16xf32> to vector<1x14xf32>
    %42 = tpu.concatenate %40, %41 in 1 : vector<1x2xf32>, vector<1x14xf32> -> vector<1x16xf32>
    %43 = vector.extract_strided_slice %18 {offsets = [6, 0], sizes = [1, 16], strides = [1, 1]} : vector<16x16xf32> to vector<1x16xf32>
    %44 = vector.extract_strided_slice %43 {offsets = [0, 15], sizes = [1, 1], strides = [1, 1]} : vector<1x16xf32> to vector<1x1xf32>
    %45 = vector.extract_strided_slice %43 {offsets = [0, 0], sizes = [1, 15], strides = [1, 1]} : vector<1x16xf32> to vector<1x15xf32>
    %46 = tpu.concatenate %44, %45 in 1 : vector<1x1xf32>, vector<1x15xf32> -> vector<1x16xf32>
    %47 = vector.extract_strided_slice %18 {offsets = [7, 0], sizes = [1, 16], strides = [1, 1]} : vector<16x16xf32> to vector<1x16xf32>
    %48 = vector.extract_strided_slice %18 {offsets = [8, 0], sizes = [1, 16], strides = [1, 1]} : vector<16x16xf32> to vector<1x16xf32>
    %49 = vector.extract_strided_slice %48 {offsets = [0, 1], sizes = [1, 15], strides = [1, 1]} : vector<1x16xf32> to vector<1x15xf32>
    %50 = vector.extract_strided_slice %48 {offsets = [0, 0], sizes = [1, 1], strides = [1, 1]} : vector<1x16xf32> to vector<1x1xf32>
    %51 = tpu.concatenate %49, %50 in 1 : vector<1x15xf32>, vector<1x1xf32> -> vector<1x16xf32>
    %52 = vector.extract_strided_slice %18 {offsets = [9, 0], sizes = [1, 16], strides = [1, 1]} : vector<16x16xf32> to vector<1x16xf32>
    %53 = vector.extract_strided_slice %52 {offsets = [0, 2], sizes = [1, 14], strides = [1, 1]} : vector<1x16xf32> to vector<1x14xf32>
    %54 = vector.extract_strided_slice %52 {offsets = [0, 0], sizes = [1, 2], strides = [1, 1]} : vector<1x16xf32> to vector<1x2xf32>
    %55 = tpu.concatenate %53, %54 in 1 : vector<1x14xf32>, vector<1x2xf32> -> vector<1x16xf32>
    %56 = vector.extract_strided_slice %18 {offsets = [10, 0], sizes = [1, 16], strides = [1, 1]} : vector<16x16xf32> to vector<1x16xf32>
    %57 = vector.extract_strided_slice %56 {offsets = [0, 3], sizes = [1, 13], strides = [1, 1]} : vector<1x16xf32> to vector<1x13xf32>
    %58 = vector.extract_strided_slice %56 {offsets = [0, 0], sizes = [1, 3], strides = [1, 1]} : vector<1x16xf32> to vector<1x3xf32>
    %59 = tpu.concatenate %57, %58 in 1 : vector<1x13xf32>, vector<1x3xf32> -> vector<1x16xf32>
    %60 = vector.extract_strided_slice %18 {offsets = [11, 0], sizes = [1, 16], strides = [1, 1]} : vector<16x16xf32> to vector<1x16xf32>
    %61 = vector.extract_strided_slice %60 {offsets = [0, 4], sizes = [1, 12], strides = [1, 1]} : vector<1x16xf32> to vector<1x12xf32>
    %62 = vector.extract_strided_slice %60 {offsets = [0, 0], sizes = [1, 4], strides = [1, 1]} : vector<1x16xf32> to vector<1x4xf32>
    %63 = tpu.concatenate %61, %62 in 1 : vector<1x12xf32>, vector<1x4xf32> -> vector<1x16xf32>
    %64 = vector.extract_strided_slice %18 {offsets = [12, 0], sizes = [1, 16], strides = [1, 1]} : vector<16x16xf32> to vector<1x16xf32>
    %65 = vector.extract_strided_slice %64 {offsets = [0, 5], sizes = [1, 11], strides = [1, 1]} : vector<1x16xf32> to vector<1x11xf32>
    %66 = vector.extract_strided_slice %64 {offsets = [0, 0], sizes = [1, 5], strides = [1, 1]} : vector<1x16xf32> to vector<1x5xf32>
    %67 = tpu.concatenate %65, %66 in 1 : vector<1x11xf32>, vector<1x5xf32> -> vector<1x16xf32>
    %68 = vector.extract_strided_slice %18 {offsets = [13, 0], sizes = [1, 16], strides = [1, 1]} : vector<16x16xf32> to vector<1x16xf32>
    %69 = vector.extract_strided_slice %68 {offsets = [0, 6], sizes = [1, 10], strides = [1, 1]} : vector<1x16xf32> to vector<1x10xf32>
    %70 = vector.extract_strided_slice %68 {offsets = [0, 0], sizes = [1, 6], strides = [1, 1]} : vector<1x16xf32> to vector<1x6xf32>
    %71 = tpu.concatenate %69, %70 in 1 : vector<1x10xf32>, vector<1x6xf32> -> vector<1x16xf32>
    %72 = vector.extract_strided_slice %18 {offsets = [14, 0], sizes = [1, 16], strides = [1, 1]} : vector<16x16xf32> to vector<1x16xf32>
    %73 = vector.extract_strided_slice %72 {offsets = [0, 7], sizes = [1, 9], strides = [1, 1]} : vector<1x16xf32> to vector<1x9xf32>
    %74 = vector.extract_strided_slice %72 {offsets = [0, 0], sizes = [1, 7], strides = [1, 1]} : vector<1x16xf32> to vector<1x7xf32>
    %75 = tpu.concatenate %73, %74 in 1 : vector<1x9xf32>, vector<1x7xf32> -> vector<1x16xf32>
    %76 = vector.extract_strided_slice %18 {offsets = [15, 0], sizes = [1, 16], strides = [1, 1]} : vector<16x16xf32> to vector<1x16xf32>
    %77 = tpu.concatenate %22, %26, %30, %34, %38, %42, %46, %47, %51, %55, %59, %63, %67, %71, %75, %76 in 0 : vector<1x16xf32>, vector<1x16xf32>, vector<1x16xf32>, vector<1x16xf32>, vector<1x16xf32>, vector<1x16xf32>, vector<1x16xf32>, vector<1x16xf32>, vector<1x16xf32>, vector<1x16xf32>, vector<1x16xf32>, vector<1x16xf32>, vector<1x16xf32>, vector<1x16xf32>, vector<1x16xf32>, vector<1x16xf32> -> vector<16x16xf32>
    %cst_7 = arith.constant 0.000000e+00 : f32
    %78 = vector.broadcast %cst_7 : f32 to vector<16x16xf32>
    %79 = arith.select %14, %77, %78 : vector<16x16xi1>, vector<16x16xf32>
    %cst_8 = arith.constant dense<0.000000e+00> : vector<16xf32>
    %80 = vector.multi_reduction <add>, %79, %cst_8 [0] : vector<16x16xf32> to vector<16xf32>
    %81 = vector.shape_cast %80 : vector<16xf32> to vector<1x16xf32>
    %82 = vector.extract_strided_slice %17 {offsets = [16, 0], sizes = [16, 16], strides = [1, 1]} : vector<32x16xf32> to vector<16x16xf32>
    %83 = vector.extract_strided_slice %82 {offsets = [0, 0], sizes = [1, 16], strides = [1, 1]} : vector<16x16xf32> to vector<1x16xf32>
    %84 = vector.extract_strided_slice %83 {offsets = [0, 9], sizes = [1, 7], strides = [1, 1]} : vector<1x16xf32> to vector<1x7xf32>
    %85 = vector.extract_strided_slice %83 {offsets = [0, 0], sizes = [1, 9], strides = [1, 1]} : vector<1x16xf32> to vector<1x9xf32>
    %86 = tpu.concatenate %84, %85 in 1 : vector<1x7xf32>, vector<1x9xf32> -> vector<1x16xf32>
    %87 = vector.extract_strided_slice %82 {offsets = [1, 0], sizes = [1, 16], strides = [1, 1]} : vector<16x16xf32> to vector<1x16xf32>
    %88 = vector.extract_strided_slice %87 {offsets = [0, 10], sizes = [1, 6], strides = [1, 1]} : vector<1x16xf32> to vector<1x6xf32>
    %89 = vector.extract_strided_slice %87 {offsets = [0, 0], sizes = [1, 10], strides = [1, 1]} : vector<1x16xf32> to vector<1x10xf32>
    %90 = tpu.concatenate %88, %89 in 1 : vector<1x6xf32>, vector<1x10xf32> -> vector<1x16xf32>
    %91 = vector.extract_strided_slice %82 {offsets = [2, 0], sizes = [1, 16], strides = [1, 1]} : vector<16x16xf32> to vector<1x16xf32>
    %92 = vector.extract_strided_slice %91 {offsets = [0, 11], sizes = [1, 5], strides = [1, 1]} : vector<1x16xf32> to vector<1x5xf32>
    %93 = vector.extract_strided_slice %91 {offsets = [0, 0], sizes = [1, 11], strides = [1, 1]} : vector<1x16xf32> to vector<1x11xf32>
    %94 = tpu.concatenate %92, %93 in 1 : vector<1x5xf32>, vector<1x11xf32> -> vector<1x16xf32>
    %95 = vector.extract_strided_slice %82 {offsets = [3, 0], sizes = [1, 16], strides = [1, 1]} : vector<16x16xf32> to vector<1x16xf32>
    %96 = vector.extract_strided_slice %95 {offsets = [0, 12], sizes = [1, 4], strides = [1, 1]} : vector<1x16xf32> to vector<1x4xf32>
    %97 = vector.extract_strided_slice %95 {offsets = [0, 0], sizes = [1, 12], strides = [1, 1]} : vector<1x16xf32> to vector<1x12xf32>
    %98 = tpu.concatenate %96, %97 in 1 : vector<1x4xf32>, vector<1x12xf32> -> vector<1x16xf32>
    %99 = vector.extract_strided_slice %82 {offsets = [4, 0], sizes = [1, 16], strides = [1, 1]} : vector<16x16xf32> to vector<1x16xf32>
    %100 = vector.extract_strided_slice %99 {offsets = [0, 13], sizes = [1, 3], strides = [1, 1]} : vector<1x16xf32> to vector<1x3xf32>
    %101 = vector.extract_strided_slice %99 {offsets = [0, 0], sizes = [1, 13], strides = [1, 1]} : vector<1x16xf32> to vector<1x13xf32>
    %102 = tpu.concatenate %100, %101 in 1 : vector<1x3xf32>, vector<1x13xf32> -> vector<1x16xf32>
    %103 = vector.extract_strided_slice %82 {offsets = [5, 0], sizes = [1, 16], strides = [1, 1]} : vector<16x16xf32> to vector<1x16xf32>
    %104 = vector.extract_strided_slice %103 {offsets = [0, 14], sizes = [1, 2], strides = [1, 1]} : vector<1x16xf32> to vector<1x2xf32>
    %105 = vector.extract_strided_slice %103 {offsets = [0, 0], sizes = [1, 14], strides = [1, 1]} : vector<1x16xf32> to vector<1x14xf32>
    %106 = tpu.concatenate %104, %105 in 1 : vector<1x2xf32>, vector<1x14xf32> -> vector<1x16xf32>
    %107 = vector.extract_strided_slice %82 {offsets = [6, 0], sizes = [1, 16], strides = [1, 1]} : vector<16x16xf32> to vector<1x16xf32>
    %108 = vector.extract_strided_slice %107 {offsets = [0, 15], sizes = [1, 1], strides = [1, 1]} : vector<1x16xf32> to vector<1x1xf32>
    %109 = vector.extract_strided_slice %107 {offsets = [0, 0], sizes = [1, 15], strides = [1, 1]} : vector<1x16xf32> to vector<1x15xf32>
    %110 = tpu.concatenate %108, %109 in 1 : vector<1x1xf32>, vector<1x15xf32> -> vector<1x16xf32>
    %111 = vector.extract_strided_slice %82 {offsets = [7, 0], sizes = [1, 16], strides = [1, 1]} : vector<16x16xf32> to vector<1x16xf32>
    %112 = vector.extract_strided_slice %82 {offsets = [8, 0], sizes = [1, 16], strides = [1, 1]} : vector<16x16xf32> to vector<1x16xf32>
    %113 = vector.extract_strided_slice %112 {offsets = [0, 1], sizes = [1, 15], strides = [1, 1]} : vector<1x16xf32> to vector<1x15xf32>
    %114 = vector.extract_strided_slice %112 {offsets = [0, 0], sizes = [1, 1], strides = [1, 1]} : vector<1x16xf32> to vector<1x1xf32>
    %115 = tpu.concatenate %113, %114 in 1 : vector<1x15xf32>, vector<1x1xf32> -> vector<1x16xf32>
    %116 = vector.extract_strided_slice %82 {offsets = [9, 0], sizes = [1, 16], strides = [1, 1]} : vector<16x16xf32> to vector<1x16xf32>
    %117 = vector.extract_strided_slice %116 {offsets = [0, 2], sizes = [1, 14], strides = [1, 1]} : vector<1x16xf32> to vector<1x14xf32>
    %118 = vector.extract_strided_slice %116 {offsets = [0, 0], sizes = [1, 2], strides = [1, 1]} : vector<1x16xf32> to vector<1x2xf32>
    %119 = tpu.concatenate %117, %118 in 1 : vector<1x14xf32>, vector<1x2xf32> -> vector<1x16xf32>
    %120 = vector.extract_strided_slice %82 {offsets = [10, 0], sizes = [1, 16], strides = [1, 1]} : vector<16x16xf32> to vector<1x16xf32>
    %121 = vector.extract_strided_slice %120 {offsets = [0, 3], sizes = [1, 13], strides = [1, 1]} : vector<1x16xf32> to vector<1x13xf32>
    %122 = vector.extract_strided_slice %120 {offsets = [0, 0], sizes = [1, 3], strides = [1, 1]} : vector<1x16xf32> to vector<1x3xf32>
    %123 = tpu.concatenate %121, %122 in 1 : vector<1x13xf32>, vector<1x3xf32> -> vector<1x16xf32>
    %124 = vector.extract_strided_slice %82 {offsets = [11, 0], sizes = [1, 16], strides = [1, 1]} : vector<16x16xf32> to vector<1x16xf32>
    %125 = vector.extract_strided_slice %124 {offsets = [0, 4], sizes = [1, 12], strides = [1, 1]} : vector<1x16xf32> to vector<1x12xf32>
    %126 = vector.extract_strided_slice %124 {offsets = [0, 0], sizes = [1, 4], strides = [1, 1]} : vector<1x16xf32> to vector<1x4xf32>
    %127 = tpu.concatenate %125, %126 in 1 : vector<1x12xf32>, vector<1x4xf32> -> vector<1x16xf32>
    %128 = vector.extract_strided_slice %82 {offsets = [12, 0], sizes = [1, 16], strides = [1, 1]} : vector<16x16xf32> to vector<1x16xf32>
    %129 = vector.extract_strided_slice %128 {offsets = [0, 5], sizes = [1, 11], strides = [1, 1]} : vector<1x16xf32> to vector<1x11xf32>
    %130 = vector.extract_strided_slice %128 {offsets = [0, 0], sizes = [1, 5], strides = [1, 1]} : vector<1x16xf32> to vector<1x5xf32>
    %131 = tpu.concatenate %129, %130 in 1 : vector<1x11xf32>, vector<1x5xf32> -> vector<1x16xf32>
    %132 = vector.extract_strided_slice %82 {offsets = [13, 0], sizes = [1, 16], strides = [1, 1]} : vector<16x16xf32> to vector<1x16xf32>
    %133 = vector.extract_strided_slice %132 {offsets = [0, 6], sizes = [1, 10], strides = [1, 1]} : vector<1x16xf32> to vector<1x10xf32>
    %134 = vector.extract_strided_slice %132 {offsets = [0, 0], sizes = [1, 6], strides = [1, 1]} : vector<1x16xf32> to vector<1x6xf32>
    %135 = tpu.concatenate %133, %134 in 1 : vector<1x10xf32>, vector<1x6xf32> -> vector<1x16xf32>
    %136 = vector.extract_strided_slice %82 {offsets = [14, 0], sizes = [1, 16], strides = [1, 1]} : vector<16x16xf32> to vector<1x16xf32>
    %137 = vector.extract_strided_slice %136 {offsets = [0, 7], sizes = [1, 9], strides = [1, 1]} : vector<1x16xf32> to vector<1x9xf32>
    %138 = vector.extract_strided_slice %136 {offsets = [0, 0], sizes = [1, 7], strides = [1, 1]} : vector<1x16xf32> to vector<1x7xf32>
    %139 = tpu.concatenate %137, %138 in 1 : vector<1x9xf32>, vector<1x7xf32> -> vector<1x16xf32>
    %140 = vector.extract_strided_slice %82 {offsets = [15, 0], sizes = [1, 16], strides = [1, 1]} : vector<16x16xf32> to vector<1x16xf32>
    %141 = tpu.concatenate %86, %90, %94, %98, %102, %106, %110, %111, %115, %119, %123, %127, %131, %135, %139, %140 in 0 : vector<1x16xf32>, vector<1x16xf32>, vector<1x16xf32>, vector<1x16xf32>, vector<1x16xf32>, vector<1x16xf32>, vector<1x16xf32>, vector<1x16xf32>, vector<1x16xf32>, vector<1x16xf32>, vector<1x16xf32>, vector<1x16xf32>, vector<1x16xf32>, vector<1x16xf32>, vector<1x16xf32>, vector<1x16xf32> -> vector<16x16xf32>
    %cst_9 = arith.constant 0.000000e+00 : f32
    %142 = vector.broadcast %cst_9 : f32 to vector<16x16xf32>
    %143 = arith.select %14, %141, %142 : vector<16x16xi1>, vector<16x16xf32>
    %cst_10 = arith.constant dense<0.000000e+00> : vector<16xf32>
    %144 = vector.multi_reduction <add>, %143, %cst_10 [0] : vector<16x16xf32> to vector<16xf32>
    %145 = vector.shape_cast %144 : vector<16xf32> to vector<1x16xf32>
    %146 = tpu.concatenate %81, %145 in 0 : vector<1x16xf32>, vector<1x16xf32> -> vector<2x16xf32>
    %147 = vector.broadcast %1 : vector<2x1xf32> to vector<2x16xf32>
    %148 = arith.addf %146, %147 : vector<2x16xf32>
    %cst_11 = arith.constant 0.000000e+00 : f32
    %cst_12 = arith.constant 1.000000e+00 : f32
    %149 = vector.broadcast %cst_11 : f32 to vector<2x16xf32>
    %150 = arith.maximumf %149, %148 : vector<2x16xf32>
    %151 = vector.broadcast %cst_12 : f32 to vector<2x16xf32>
    %152 = arith.minimumf %151, %150 : vector<2x16xf32>
    %c0_13 = arith.constant 0 : index
    %c0_14 = arith.constant 0 : index
    %c0_15 = arith.constant 0 : index
    %c0_16 = arith.constant 0 : index
    %153 = vector.load %arg4[%c0_13, %c0_14, %c0_15, %c0_16] : memref<1x4x2x16xf32, #tpu.memory_space<vmem>>, vector<1x1x2x16xf32>
    %154 = vector.shape_cast %153 : vector<1x1x2x16xf32> to vector<2x16xf32>
    %155 = vector.shape_cast %152 : vector<2x16xf32> to vector<1x1x2x16xf32>
    tpu.vector_store %arg4[%c0_13, %c0_14, %c0_15, %c0_16], %155 {strides = array<i32>} : memref<1x4x2x16xf32, #tpu.memory_space<vmem>>, vector<1x1x2x16xf32>,
    %c0_17 = arith.constant 0 : index
    %c1 = arith.constant 1 : index
    %c0_18 = arith.constant 0 : index
    %c0_19 = arith.constant 0 : index
    %156 = vector.load %arg1[%c0_17, %c1, %c0_18, %c0_19] : memref<1x4x64x16xf32, #tpu.memory_space<vmem>>, vector<1x1x64x16xf32>
    %157 = vector.shape_cast %156 : vector<1x1x64x16xf32> to vector<64x16xf32>
    %cst_20 = arith.constant dense<0.000000e+00> : vector<32x16xf32>
    %158 = tpu.matmul %0, %157, %cst_20 {dimension_numbers = #tpu.dot_dimension_numbers<[1], [0], [0], [1], [0, 0, 1, 1], [], []>} : vector<32x64xf32>, vector<64x16xf32>, vector<32x16xf32> -> vector<32x16xf32>
    %159 = vector.extract_strided_slice %158 {offsets = [0, 0], sizes = [16, 16], strides = [1, 1]} : vector<32x16xf32> to vector<16x16xf32>
    %160 = vector.extract_strided_slice %159 {offsets = [0, 0], sizes = [1, 16], strides = [1, 1]} : vector<16x16xf32> to vector<1x16xf32>
    %161 = vector.extract_strided_slice %160 {offsets = [0, 9], sizes = [1, 7], strides = [1, 1]} : vector<1x16xf32> to vector<1x7xf32>
    %162 = vector.extract_strided_slice %160 {offsets = [0, 0], sizes = [1, 9], strides = [1, 1]} : vector<1x16xf32> to vector<1x9xf32>
    %163 = tpu.concatenate %161, %162 in 1 : vector<1x7xf32>, vector<1x9xf32> -> vector<1x16xf32>
    %164 = vector.extract_strided_slice %159 {offsets = [1, 0], sizes = [1, 16], strides = [1, 1]} : vector<16x16xf32> to vector<1x16xf32>
    %165 = vector.extract_strided_slice %164 {offsets = [0, 10], sizes = [1, 6], strides = [1, 1]} : vector<1x16xf32> to vector<1x6xf32>
    %166 = vector.extract_strided_slice %164 {offsets = [0, 0], sizes = [1, 10], strides = [1, 1]} : vector<1x16xf32> to vector<1x10xf32>
    %167 = tpu.concatenate %165, %166 in 1 : vector<1x6xf32>, vector<1x10xf32> -> vector<1x16xf32>
    %168 = vector.extract_strided_slice %159 {offsets = [2, 0], sizes = [1, 16], strides = [1, 1]} : vector<16x16xf32> to vector<1x16xf32>
    %169 = vector.extract_strided_slice %168 {offsets = [0, 11], sizes = [1, 5], strides = [1, 1]} : vector<1x16xf32> to vector<1x5xf32>
    %170 = vector.extract_strided_slice %168 {offsets = [0, 0], sizes = [1, 11], strides = [1, 1]} : vector<1x16xf32> to vector<1x11xf32>
    %171 = tpu.concatenate %169, %170 in 1 : vector<1x5xf32>, vector<1x11xf32> -> vector<1x16xf32>
    %172 = vector.extract_strided_slice %159 {offsets = [3, 0], sizes = [1, 16], strides = [1, 1]} : vector<16x16xf32> to vector<1x16xf32>
    %173 = vector.extract_strided_slice %172 {offsets = [0, 12], sizes = [1, 4], strides = [1, 1]} : vector<1x16xf32> to vector<1x4xf32>
    %174 = vector.extract_strided_slice %172 {offsets = [0, 0], sizes = [1, 12], strides = [1, 1]} : vector<1x16xf32> to vector<1x12xf32>
    %175 = tpu.concatenate %173, %174 in 1 : vector<1x4xf32>, vector<1x12xf32> -> vector<1x16xf32>
    %176 = vector.extract_strided_slice %159 {offsets = [4, 0], sizes = [1, 16], strides = [1, 1]} : vector<16x16xf32> to vector<1x16xf32>
    %177 = vector.extract_strided_slice %176 {offsets = [0, 13], sizes = [1, 3], strides = [1, 1]} : vector<1x16xf32> to vector<1x3xf32>
    %178 = vector.extract_strided_slice %176 {offsets = [0, 0], sizes = [1, 13], strides = [1, 1]} : vector<1x16xf32> to vector<1x13xf32>
    %179 = tpu.concatenate %177, %178 in 1 : vector<1x3xf32>, vector<1x13xf32> -> vector<1x16xf32>
    %180 = vector.extract_strided_slice %159 {offsets = [5, 0], sizes = [1, 16], strides = [1, 1]} : vector<16x16xf32> to vector<1x16xf32>
    %181 = vector.extract_strided_slice %180 {offsets = [0, 14], sizes = [1, 2], strides = [1, 1]} : vector<1x16xf32> to vector<1x2xf32>
    %182 = vector.extract_strided_slice %180 {offsets = [0, 0], sizes = [1, 14], strides = [1, 1]} : vector<1x16xf32> to vector<1x14xf32>
    %183 = tpu.concatenate %181, %182 in 1 : vector<1x2xf32>, vector<1x14xf32> -> vector<1x16xf32>
    %184 = vector.extract_strided_slice %159 {offsets = [6, 0], sizes = [1, 16], strides = [1, 1]} : vector<16x16xf32> to vector<1x16xf32>
    %185 = vector.extract_strided_slice %184 {offsets = [0, 15], sizes = [1, 1], strides = [1, 1]} : vector<1x16xf32> to vector<1x1xf32>
    %186 = vector.extract_strided_slice %184 {offsets = [0, 0], sizes = [1, 15], strides = [1, 1]} : vector<1x16xf32> to vector<1x15xf32>
    %187 = tpu.concatenate %185, %186 in 1 : vector<1x1xf32>, vector<1x15xf32> -> vector<1x16xf32>
    %188 = vector.extract_strided_slice %159 {offsets = [7, 0], sizes = [1, 16], strides = [1, 1]} : vector<16x16xf32> to vector<1x16xf32>
    %189 = vector.extract_strided_slice %159 {offsets = [8, 0], sizes = [1, 16], strides = [1, 1]} : vector<16x16xf32> to vector<1x16xf32>
    %190 = vector.extract_strided_slice %189 {offsets = [0, 1], sizes = [1, 15], strides = [1, 1]} : vector<1x16xf32> to vector<1x15xf32>
    %191 = vector.extract_strided_slice %189 {offsets = [0, 0], sizes = [1, 1], strides = [1, 1]} : vector<1x16xf32> to vector<1x1xf32>
    %192 = tpu.concatenate %190, %191 in 1 : vector<1x15xf32>, vector<1x1xf32> -> vector<1x16xf32>
    %193 = vector.extract_strided_slice %159 {offsets = [9, 0], sizes = [1, 16], strides = [1, 1]} : vector<16x16xf32> to vector<1x16xf32>
    %194 = vector.extract_strided_slice %193 {offsets = [0, 2], sizes = [1, 14], strides = [1, 1]} : vector<1x16xf32> to vector<1x14xf32>
    %195 = vector.extract_strided_slice %193 {offsets = [0, 0], sizes = [1, 2], strides = [1, 1]} : vector<1x16xf32> to vector<1x2xf32>
    %196 = tpu.concatenate %194, %195 in 1 : vector<1x14xf32>, vector<1x2xf32> -> vector<1x16xf32>
    %197 = vector.extract_strided_slice %159 {offsets = [10, 0], sizes = [1, 16], strides = [1, 1]} : vector<16x16xf32> to vector<1x16xf32>
    %198 = vector.extract_strided_slice %197 {offsets = [0, 3], sizes = [1, 13], strides = [1, 1]} : vector<1x16xf32> to vector<1x13xf32>
    %199 = vector.extract_strided_slice %197 {offsets = [0, 0], sizes = [1, 3], strides = [1, 1]} : vector<1x16xf32> to vector<1x3xf32>
    %200 = tpu.concatenate %198, %199 in 1 : vector<1x13xf32>, vector<1x3xf32> -> vector<1x16xf32>
    %201 = vector.extract_strided_slice %159 {offsets = [11, 0], sizes = [1, 16], strides = [1, 1]} : vector<16x16xf32> to vector<1x16xf32>
    %202 = vector.extract_strided_slice %201 {offsets = [0, 4], sizes = [1, 12], strides = [1, 1]} : vector<1x16xf32> to vector<1x12xf32>
    %203 = vector.extract_strided_slice %201 {offsets = [0, 0], sizes = [1, 4], strides = [1, 1]} : vector<1x16xf32> to vector<1x4xf32>
    %204 = tpu.concatenate %202, %203 in 1 : vector<1x12xf32>, vector<1x4xf32> -> vector<1x16xf32>
    %205 = vector.extract_strided_slice %159 {offsets = [12, 0], sizes = [1, 16], strides = [1, 1]} : vector<16x16xf32> to vector<1x16xf32>
    %206 = vector.extract_strided_slice %205 {offsets = [0, 5], sizes = [1, 11], strides = [1, 1]} : vector<1x16xf32> to vector<1x11xf32>
    %207 = vector.extract_strided_slice %205 {offsets = [0, 0], sizes = [1, 5], strides = [1, 1]} : vector<1x16xf32> to vector<1x5xf32>
    %208 = tpu.concatenate %206, %207 in 1 : vector<1x11xf32>, vector<1x5xf32> -> vector<1x16xf32>
    %209 = vector.extract_strided_slice %159 {offsets = [13, 0], sizes = [1, 16], strides = [1, 1]} : vector<16x16xf32> to vector<1x16xf32>
    %210 = vector.extract_strided_slice %209 {offsets = [0, 6], sizes = [1, 10], strides = [1, 1]} : vector<1x16xf32> to vector<1x10xf32>
    %211 = vector.extract_strided_slice %209 {offsets = [0, 0], sizes = [1, 6], strides = [1, 1]} : vector<1x16xf32> to vector<1x6xf32>
    %212 = tpu.concatenate %210, %211 in 1 : vector<1x10xf32>, vector<1x6xf32> -> vector<1x16xf32>
    %213 = vector.extract_strided_slice %159 {offsets = [14, 0], sizes = [1, 16], strides = [1, 1]} : vector<16x16xf32> to vector<1x16xf32>
    %214 = vector.extract_strided_slice %213 {offsets = [0, 7], sizes = [1, 9], strides = [1, 1]} : vector<1x16xf32> to vector<1x9xf32>
    %215 = vector.extract_strided_slice %213 {offsets = [0, 0], sizes = [1, 7], strides = [1, 1]} : vector<1x16xf32> to vector<1x7xf32>
    %216 = tpu.concatenate %214, %215 in 1 : vector<1x9xf32>, vector<1x7xf32> -> vector<1x16xf32>
    %217 = vector.extract_strided_slice %159 {offsets = [15, 0], sizes = [1, 16], strides = [1, 1]} : vector<16x16xf32> to vector<1x16xf32>
    %218 = tpu.concatenate %163, %167, %171, %175, %179, %183, %187, %188, %192, %196, %200, %204, %208, %212, %216, %217 in 0 : vector<1x16xf32>, vector<1x16xf32>, vector<1x16xf32>, vector<1x16xf32>, vector<1x16xf32>, vector<1x16xf32>, vector<1x16xf32>, vector<1x16xf32>, vector<1x16xf32>, vector<1x16xf32>, vector<1x16xf32>, vector<1x16xf32>, vector<1x16xf32>, vector<1x16xf32>, vector<1x16xf32>, vector<1x16xf32> -> vector<16x16xf32>
    %cst_21 = arith.constant 0.000000e+00 : f32
    %219 = vector.broadcast %cst_21 : f32 to vector<16x16xf32>
    %220 = arith.select %14, %218, %219 : vector<16x16xi1>, vector<16x16xf32>
    %cst_22 = arith.constant dense<0.000000e+00> : vector<16xf32>
    %221 = vector.multi_reduction <add>, %220, %cst_22 [0] : vector<16x16xf32> to vector<16xf32>
    %222 = vector.shape_cast %221 : vector<16xf32> to vector<1x16xf32>
    %223 = vector.extract_strided_slice %158 {offsets = [16, 0], sizes = [16, 16], strides = [1, 1]} : vector<32x16xf32> to vector<16x16xf32>
    %224 = vector.extract_strided_slice %223 {offsets = [0, 0], sizes = [1, 16], strides = [1, 1]} : vector<16x16xf32> to vector<1x16xf32>
    %225 = vector.extract_strided_slice %224 {offsets = [0, 9], sizes = [1, 7], strides = [1, 1]} : vector<1x16xf32> to vector<1x7xf32>
    %226 = vector.extract_strided_slice %224 {offsets = [0, 0], sizes = [1, 9], strides = [1, 1]} : vector<1x16xf32> to vector<1x9xf32>
    %227 = tpu.concatenate %225, %226 in 1 : vector<1x7xf32>, vector<1x9xf32> -> vector<1x16xf32>
    %228 = vector.extract_strided_slice %223 {offsets = [1, 0], sizes = [1, 16], strides = [1, 1]} : vector<16x16xf32> to vector<1x16xf32>
    %229 = vector.extract_strided_slice %228 {offsets = [0, 10], sizes = [1, 6], strides = [1, 1]} : vector<1x16xf32> to vector<1x6xf32>
    %230 = vector.extract_strided_slice %228 {offsets = [0, 0], sizes = [1, 10], strides = [1, 1]} : vector<1x16xf32> to vector<1x10xf32>
    %231 = tpu.concatenate %229, %230 in 1 : vector<1x6xf32>, vector<1x10xf32> -> vector<1x16xf32>
    %232 = vector.extract_strided_slice %223 {offsets = [2, 0], sizes = [1, 16], strides = [1, 1]} : vector<16x16xf32> to vector<1x16xf32>
    %233 = vector.extract_strided_slice %232 {offsets = [0, 11], sizes = [1, 5], strides = [1, 1]} : vector<1x16xf32> to vector<1x5xf32>
    %234 = vector.extract_strided_slice %232 {offsets = [0, 0], sizes = [1, 11], strides = [1, 1]} : vector<1x16xf32> to vector<1x11xf32>
    %235 = tpu.concatenate %233, %234 in 1 : vector<1x5xf32>, vector<1x11xf32> -> vector<1x16xf32>
    %236 = vector.extract_strided_slice %223 {offsets = [3, 0], sizes = [1, 16], strides = [1, 1]} : vector<16x16xf32> to vector<1x16xf32>
    %237 = vector.extract_strided_slice %236 {offsets = [0, 12], sizes = [1, 4], strides = [1, 1]} : vector<1x16xf32> to vector<1x4xf32>
    %238 = vector.extract_strided_slice %236 {offsets = [0, 0], sizes = [1, 12], strides = [1, 1]} : vector<1x16xf32> to vector<1x12xf32>
    %239 = tpu.concatenate %237, %238 in 1 : vector<1x4xf32>, vector<1x12xf32> -> vector<1x16xf32>
    %240 = vector.extract_strided_slice %223 {offsets = [4, 0], sizes = [1, 16], strides = [1, 1]} : vector<16x16xf32> to vector<1x16xf32>
    %241 = vector.extract_strided_slice %240 {offsets = [0, 13], sizes = [1, 3], strides = [1, 1]} : vector<1x16xf32> to vector<1x3xf32>
    %242 = vector.extract_strided_slice %240 {offsets = [0, 0], sizes = [1, 13], strides = [1, 1]} : vector<1x16xf32> to vector<1x13xf32>
    %243 = tpu.concatenate %241, %242 in 1 : vector<1x3xf32>, vector<1x13xf32> -> vector<1x16xf32>
    %244 = vector.extract_strided_slice %223 {offsets = [5, 0], sizes = [1, 16], strides = [1, 1]} : vector<16x16xf32> to vector<1x16xf32>
    %245 = vector.extract_strided_slice %244 {offsets = [0, 14], sizes = [1, 2], strides = [1, 1]} : vector<1x16xf32> to vector<1x2xf32>
    %246 = vector.extract_strided_slice %244 {offsets = [0, 0], sizes = [1, 14], strides = [1, 1]} : vector<1x16xf32> to vector<1x14xf32>
    %247 = tpu.concatenate %245, %246 in 1 : vector<1x2xf32>, vector<1x14xf32> -> vector<1x16xf32>
    %248 = vector.extract_strided_slice %223 {offsets = [6, 0], sizes = [1, 16], strides = [1, 1]} : vector<16x16xf32> to vector<1x16xf32>
    %249 = vector.extract_strided_slice %248 {offsets = [0, 15], sizes = [1, 1], strides = [1, 1]} : vector<1x16xf32> to vector<1x1xf32>
    %250 = vector.extract_strided_slice %248 {offsets = [0, 0], sizes = [1, 15], strides = [1, 1]} : vector<1x16xf32> to vector<1x15xf32>
    %251 = tpu.concatenate %249, %250 in 1 : vector<1x1xf32>, vector<1x15xf32> -> vector<1x16xf32>
    %252 = vector.extract_strided_slice %223 {offsets = [7, 0], sizes = [1, 16], strides = [1, 1]} : vector<16x16xf32> to vector<1x16xf32>
    %253 = vector.extract_strided_slice %223 {offsets = [8, 0], sizes = [1, 16], strides = [1, 1]} : vector<16x16xf32> to vector<1x16xf32>
    %254 = vector.extract_strided_slice %253 {offsets = [0, 1], sizes = [1, 15], strides = [1, 1]} : vector<1x16xf32> to vector<1x15xf32>
    %255 = vector.extract_strided_slice %253 {offsets = [0, 0], sizes = [1, 1], strides = [1, 1]} : vector<1x16xf32> to vector<1x1xf32>
    %256 = tpu.concatenate %254, %255 in 1 : vector<1x15xf32>, vector<1x1xf32> -> vector<1x16xf32>
    %257 = vector.extract_strided_slice %223 {offsets = [9, 0], sizes = [1, 16], strides = [1, 1]} : vector<16x16xf32> to vector<1x16xf32>
    %258 = vector.extract_strided_slice %257 {offsets = [0, 2], sizes = [1, 14], strides = [1, 1]} : vector<1x16xf32> to vector<1x14xf32>
    %259 = vector.extract_strided_slice %257 {offsets = [0, 0], sizes = [1, 2], strides = [1, 1]} : vector<1x16xf32> to vector<1x2xf32>
    %260 = tpu.concatenate %258, %259 in 1 : vector<1x14xf32>, vector<1x2xf32> -> vector<1x16xf32>
    %261 = vector.extract_strided_slice %223 {offsets = [10, 0], sizes = [1, 16], strides = [1, 1]} : vector<16x16xf32> to vector<1x16xf32>
    %262 = vector.extract_strided_slice %261 {offsets = [0, 3], sizes = [1, 13], strides = [1, 1]} : vector<1x16xf32> to vector<1x13xf32>
    %263 = vector.extract_strided_slice %261 {offsets = [0, 0], sizes = [1, 3], strides = [1, 1]} : vector<1x16xf32> to vector<1x3xf32>
    %264 = tpu.concatenate %262, %263 in 1 : vector<1x13xf32>, vector<1x3xf32> -> vector<1x16xf32>
    %265 = vector.extract_strided_slice %223 {offsets = [11, 0], sizes = [1, 16], strides = [1, 1]} : vector<16x16xf32> to vector<1x16xf32>
    %266 = vector.extract_strided_slice %265 {offsets = [0, 4], sizes = [1, 12], strides = [1, 1]} : vector<1x16xf32> to vector<1x12xf32>
    %267 = vector.extract_strided_slice %265 {offsets = [0, 0], sizes = [1, 4], strides = [1, 1]} : vector<1x16xf32> to vector<1x4xf32>
    %268 = tpu.concatenate %266, %267 in 1 : vector<1x12xf32>, vector<1x4xf32> -> vector<1x16xf32>
    %269 = vector.extract_strided_slice %223 {offsets = [12, 0], sizes = [1, 16], strides = [1, 1]} : vector<16x16xf32> to vector<1x16xf32>
    %270 = vector.extract_strided_slice %269 {offsets = [0, 5], sizes = [1, 11], strides = [1, 1]} : vector<1x16xf32> to vector<1x11xf32>
    %271 = vector.extract_strided_slice %269 {offsets = [0, 0], sizes = [1, 5], strides = [1, 1]} : vector<1x16xf32> to vector<1x5xf32>
    %272 = tpu.concatenate %270, %271 in 1 : vector<1x11xf32>, vector<1x5xf32> -> vector<1x16xf32>
    %273 = vector.extract_strided_slice %223 {offsets = [13, 0], sizes = [1, 16], strides = [1, 1]} : vector<16x16xf32> to vector<1x16xf32>
    %274 = vector.extract_strided_slice %273 {offsets = [0, 6], sizes = [1, 10], strides = [1, 1]} : vector<1x16xf32> to vector<1x10xf32>
    %275 = vector.extract_strided_slice %273 {offsets = [0, 0], sizes = [1, 6], strides = [1, 1]} : vector<1x16xf32> to vector<1x6xf32>
    %276 = tpu.concatenate %274, %275 in 1 : vector<1x10xf32>, vector<1x6xf32> -> vector<1x16xf32>
    %277 = vector.extract_strided_slice %223 {offsets = [14, 0], sizes = [1, 16], strides = [1, 1]} : vector<16x16xf32> to vector<1x16xf32>
    %278 = vector.extract_strided_slice %277 {offsets = [0, 7], sizes = [1, 9], strides = [1, 1]} : vector<1x16xf32> to vector<1x9xf32>
    %279 = vector.extract_strided_slice %277 {offsets = [0, 0], sizes = [1, 7], strides = [1, 1]} : vector<1x16xf32> to vector<1x7xf32>
    %280 = tpu.concatenate %278, %279 in 1 : vector<1x9xf32>, vector<1x7xf32> -> vector<1x16xf32>
    %281 = vector.extract_strided_slice %223 {offsets = [15, 0], sizes = [1, 16], strides = [1, 1]} : vector<16x16xf32> to vector<1x16xf32>
    %282 = tpu.concatenate %227, %231, %235, %239, %243, %247, %251, %252, %256, %260, %264, %268, %272, %276, %280, %281 in 0 : vector<1x16xf32>, vector<1x16xf32>, vector<1x16xf32>, vector<1x16xf32>, vector<1x16xf32>, vector<1x16xf32>, vector<1x16xf32>, vector<1x16xf32>, vector<1x16xf32>, vector<1x16xf32>, vector<1x16xf32>, vector<1x16xf32>, vector<1x16xf32>, vector<1x16xf32>, vector<1x16xf32>, vector<1x16xf32> -> vector<16x16xf32>
    %cst_23 = arith.constant 0.000000e+00 : f32
    %283 = vector.broadcast %cst_23 : f32 to vector<16x16xf32>
    %284 = arith.select %14, %282, %283 : vector<16x16xi1>, vector<16x16xf32>
    %cst_24 = arith.constant dense<0.000000e+00> : vector<16xf32>
    %285 = vector.multi_reduction <add>, %284, %cst_24 [0] : vector<16x16xf32> to vector<16xf32>
    %286 = vector.shape_cast %285 : vector<16xf32> to vector<1x16xf32>
    %287 = tpu.concatenate %222, %286 in 0 : vector<1x16xf32>, vector<1x16xf32> -> vector<2x16xf32>
    %288 = vector.broadcast %1 : vector<2x1xf32> to vector<2x16xf32>
    %289 = arith.addf %287, %288 : vector<2x16xf32>
    %cst_25 = arith.constant 0.000000e+00 : f32
    %cst_26 = arith.constant 1.000000e+00 : f32
    %290 = vector.broadcast %cst_25 : f32 to vector<2x16xf32>
    %291 = arith.maximumf %290, %289 : vector<2x16xf32>
    %292 = vector.broadcast %cst_26 : f32 to vector<2x16xf32>
    %293 = arith.minimumf %292, %291 : vector<2x16xf32>
    %c0_27 = arith.constant 0 : index
    %c1_28 = arith.constant 1 : index
    %c0_29 = arith.constant 0 : index
    %c0_30 = arith.constant 0 : index
    %294 = vector.load %arg4[%c0_27, %c1_28, %c0_29, %c0_30] : memref<1x4x2x16xf32, #tpu.memory_space<vmem>>, vector<1x1x2x16xf32>
    %295 = vector.shape_cast %294 : vector<1x1x2x16xf32> to vector<2x16xf32>
    %296 = vector.shape_cast %293 : vector<2x16xf32> to vector<1x1x2x16xf32>
    tpu.vector_store %arg4[%c0_27, %c1_28, %c0_29, %c0_30], %296 {strides = array<i32>} : memref<1x4x2x16xf32, #tpu.memory_space<vmem>>, vector<1x1x2x16xf32>,
    %c0_31 = arith.constant 0 : index
    %c2 = arith.constant 2 : index
    %c0_32 = arith.constant 0 : index
    %c0_33 = arith.constant 0 : index
    %297 = vector.load %arg1[%c0_31, %c2, %c0_32, %c0_33] : memref<1x4x64x16xf32, #tpu.memory_space<vmem>>, vector<1x1x64x16xf32>
    %298 = vector.shape_cast %297 : vector<1x1x64x16xf32> to vector<64x16xf32>
    %cst_34 = arith.constant dense<0.000000e+00> : vector<32x16xf32>
    %299 = tpu.matmul %0, %298, %cst_34 {dimension_numbers = #tpu.dot_dimension_numbers<[1], [0], [0], [1], [0, 0, 1, 1], [], []>} : vector<32x64xf32>, vector<64x16xf32>, vector<32x16xf32> -> vector<32x16xf32>
    %300 = vector.extract_strided_slice %299 {offsets = [0, 0], sizes = [16, 16], strides = [1, 1]} : vector<32x16xf32> to vector<16x16xf32>
    %301 = vector.extract_strided_slice %300 {offsets = [0, 0], sizes = [1, 16], strides = [1, 1]} : vector<16x16xf32> to vector<1x16xf32>
    %302 = vector.extract_strided_slice %301 {offsets = [0, 9], sizes = [1, 7], strides = [1, 1]} : vector<1x16xf32> to vector<1x7xf32>
    %303 = vector.extract_strided_slice %301 {offsets = [0, 0], sizes = [1, 9], strides = [1, 1]} : vector<1x16xf32> to vector<1x9xf32>
    %304 = tpu.concatenate %302, %303 in 1 : vector<1x7xf32>, vector<1x9xf32> -> vector<1x16xf32>
    %305 = vector.extract_strided_slice %300 {offsets = [1, 0], sizes = [1, 16], strides = [1, 1]} : vector<16x16xf32> to vector<1x16xf32>
    %306 = vector.extract_strided_slice %305 {offsets = [0, 10], sizes = [1, 6], strides = [1, 1]} : vector<1x16xf32> to vector<1x6xf32>
    %307 = vector.extract_strided_slice %305 {offsets = [0, 0], sizes = [1, 10], strides = [1, 1]} : vector<1x16xf32> to vector<1x10xf32>
    %308 = tpu.concatenate %306, %307 in 1 : vector<1x6xf32>, vector<1x10xf32> -> vector<1x16xf32>
    %309 = vector.extract_strided_slice %300 {offsets = [2, 0], sizes = [1, 16], strides = [1, 1]} : vector<16x16xf32> to vector<1x16xf32>
    %310 = vector.extract_strided_slice %309 {offsets = [0, 11], sizes = [1, 5], strides = [1, 1]} : vector<1x16xf32> to vector<1x5xf32>
    %311 = vector.extract_strided_slice %309 {offsets = [0, 0], sizes = [1, 11], strides = [1, 1]} : vector<1x16xf32> to vector<1x11xf32>
    %312 = tpu.concatenate %310, %311 in 1 : vector<1x5xf32>, vector<1x11xf32> -> vector<1x16xf32>
    %313 = vector.extract_strided_slice %300 {offsets = [3, 0], sizes = [1, 16], strides = [1, 1]} : vector<16x16xf32> to vector<1x16xf32>
    %314 = vector.extract_strided_slice %313 {offsets = [0, 12], sizes = [1, 4], strides = [1, 1]} : vector<1x16xf32> to vector<1x4xf32>
    %315 = vector.extract_strided_slice %313 {offsets = [0, 0], sizes = [1, 12], strides = [1, 1]} : vector<1x16xf32> to vector<1x12xf32>
    %316 = tpu.concatenate %314, %315 in 1 : vector<1x4xf32>, vector<1x12xf32> -> vector<1x16xf32>
    %317 = vector.extract_strided_slice %300 {offsets = [4, 0], sizes = [1, 16], strides = [1, 1]} : vector<16x16xf32> to vector<1x16xf32>
    %318 = vector.extract_strided_slice %317 {offsets = [0, 13], sizes = [1, 3], strides = [1, 1]} : vector<1x16xf32> to vector<1x3xf32>
    %319 = vector.extract_strided_slice %317 {offsets = [0, 0], sizes = [1, 13], strides = [1, 1]} : vector<1x16xf32> to vector<1x13xf32>
    %320 = tpu.concatenate %318, %319 in 1 : vector<1x3xf32>, vector<1x13xf32> -> vector<1x16xf32>
    %321 = vector.extract_strided_slice %300 {offsets = [5, 0], sizes = [1, 16], strides = [1, 1]} : vector<16x16xf32> to vector<1x16xf32>
    %322 = vector.extract_strided_slice %321 {offsets = [0, 14], sizes = [1, 2], strides = [1, 1]} : vector<1x16xf32> to vector<1x2xf32>
    %323 = vector.extract_strided_slice %321 {offsets = [0, 0], sizes = [1, 14], strides = [1, 1]} : vector<1x16xf32> to vector<1x14xf32>
    %324 = tpu.concatenate %322, %323 in 1 : vector<1x2xf32>, vector<1x14xf32> -> vector<1x16xf32>
    %325 = vector.extract_strided_slice %300 {offsets = [6, 0], sizes = [1, 16], strides = [1, 1]} : vector<16x16xf32> to vector<1x16xf32>
    %326 = vector.extract_strided_slice %325 {offsets = [0, 15], sizes = [1, 1], strides = [1, 1]} : vector<1x16xf32> to vector<1x1xf32>
    %327 = vector.extract_strided_slice %325 {offsets = [0, 0], sizes = [1, 15], strides = [1, 1]} : vector<1x16xf32> to vector<1x15xf32>
    %328 = tpu.concatenate %326, %327 in 1 : vector<1x1xf32>, vector<1x15xf32> -> vector<1x16xf32>
    %329 = vector.extract_strided_slice %300 {offsets = [7, 0], sizes = [1, 16], strides = [1, 1]} : vector<16x16xf32> to vector<1x16xf32>
    %330 = vector.extract_strided_slice %300 {offsets = [8, 0], sizes = [1, 16], strides = [1, 1]} : vector<16x16xf32> to vector<1x16xf32>
    %331 = vector.extract_strided_slice %330 {offsets = [0, 1], sizes = [1, 15], strides = [1, 1]} : vector<1x16xf32> to vector<1x15xf32>
    %332 = vector.extract_strided_slice %330 {offsets = [0, 0], sizes = [1, 1], strides = [1, 1]} : vector<1x16xf32> to vector<1x1xf32>
    %333 = tpu.concatenate %331, %332 in 1 : vector<1x15xf32>, vector<1x1xf32> -> vector<1x16xf32>
    %334 = vector.extract_strided_slice %300 {offsets = [9, 0], sizes = [1, 16], strides = [1, 1]} : vector<16x16xf32> to vector<1x16xf32>
    %335 = vector.extract_strided_slice %334 {offsets = [0, 2], sizes = [1, 14], strides = [1, 1]} : vector<1x16xf32> to vector<1x14xf32>
    %336 = vector.extract_strided_slice %334 {offsets = [0, 0], sizes = [1, 2], strides = [1, 1]} : vector<1x16xf32> to vector<1x2xf32>
    %337 = tpu.concatenate %335, %336 in 1 : vector<1x14xf32>, vector<1x2xf32> -> vector<1x16xf32>
    %338 = vector.extract_strided_slice %300 {offsets = [10, 0], sizes = [1, 16], strides = [1, 1]} : vector<16x16xf32> to vector<1x16xf32>
    %339 = vector.extract_strided_slice %338 {offsets = [0, 3], sizes = [1, 13], strides = [1, 1]} : vector<1x16xf32> to vector<1x13xf32>
    %340 = vector.extract_strided_slice %338 {offsets = [0, 0], sizes = [1, 3], strides = [1, 1]} : vector<1x16xf32> to vector<1x3xf32>
    %341 = tpu.concatenate %339, %340 in 1 : vector<1x13xf32>, vector<1x3xf32> -> vector<1x16xf32>
    %342 = vector.extract_strided_slice %300 {offsets = [11, 0], sizes = [1, 16], strides = [1, 1]} : vector<16x16xf32> to vector<1x16xf32>
    %343 = vector.extract_strided_slice %342 {offsets = [0, 4], sizes = [1, 12], strides = [1, 1]} : vector<1x16xf32> to vector<1x12xf32>
    %344 = vector.extract_strided_slice %342 {offsets = [0, 0], sizes = [1, 4], strides = [1, 1]} : vector<1x16xf32> to vector<1x4xf32>
    %345 = tpu.concatenate %343, %344 in 1 : vector<1x12xf32>, vector<1x4xf32> -> vector<1x16xf32>
    %346 = vector.extract_strided_slice %300 {offsets = [12, 0], sizes = [1, 16], strides = [1, 1]} : vector<16x16xf32> to vector<1x16xf32>
    %347 = vector.extract_strided_slice %346 {offsets = [0, 5], sizes = [1, 11], strides = [1, 1]} : vector<1x16xf32> to vector<1x11xf32>
    %348 = vector.extract_strided_slice %346 {offsets = [0, 0], sizes = [1, 5], strides = [1, 1]} : vector<1x16xf32> to vector<1x5xf32>
    %349 = tpu.concatenate %347, %348 in 1 : vector<1x11xf32>, vector<1x5xf32> -> vector<1x16xf32>
    %350 = vector.extract_strided_slice %300 {offsets = [13, 0], sizes = [1, 16], strides = [1, 1]} : vector<16x16xf32> to vector<1x16xf32>
    %351 = vector.extract_strided_slice %350 {offsets = [0, 6], sizes = [1, 10], strides = [1, 1]} : vector<1x16xf32> to vector<1x10xf32>
    %352 = vector.extract_strided_slice %350 {offsets = [0, 0], sizes = [1, 6], strides = [1, 1]} : vector<1x16xf32> to vector<1x6xf32>
    %353 = tpu.concatenate %351, %352 in 1 : vector<1x10xf32>, vector<1x6xf32> -> vector<1x16xf32>
    %354 = vector.extract_strided_slice %300 {offsets = [14, 0], sizes = [1, 16], strides = [1, 1]} : vector<16x16xf32> to vector<1x16xf32>
    %355 = vector.extract_strided_slice %354 {offsets = [0, 7], sizes = [1, 9], strides = [1, 1]} : vector<1x16xf32> to vector<1x9xf32>
    %356 = vector.extract_strided_slice %354 {offsets = [0, 0], sizes = [1, 7], strides = [1, 1]} : vector<1x16xf32> to vector<1x7xf32>
    %357 = tpu.concatenate %355, %356 in 1 : vector<1x9xf32>, vector<1x7xf32> -> vector<1x16xf32>
    %358 = vector.extract_strided_slice %300 {offsets = [15, 0], sizes = [1, 16], strides = [1, 1]} : vector<16x16xf32> to vector<1x16xf32>
    %359 = tpu.concatenate %304, %308, %312, %316, %320, %324, %328, %329, %333, %337, %341, %345, %349, %353, %357, %358 in 0 : vector<1x16xf32>, vector<1x16xf32>, vector<1x16xf32>, vector<1x16xf32>, vector<1x16xf32>, vector<1x16xf32>, vector<1x16xf32>, vector<1x16xf32>, vector<1x16xf32>, vector<1x16xf32>, vector<1x16xf32>, vector<1x16xf32>, vector<1x16xf32>, vector<1x16xf32>, vector<1x16xf32>, vector<1x16xf32> -> vector<16x16xf32>
    %cst_35 = arith.constant 0.000000e+00 : f32
    %360 = vector.broadcast %cst_35 : f32 to vector<16x16xf32>
    %361 = arith.select %14, %359, %360 : vector<16x16xi1>, vector<16x16xf32>
    %cst_36 = arith.constant dense<0.000000e+00> : vector<16xf32>
    %362 = vector.multi_reduction <add>, %361, %cst_36 [0] : vector<16x16xf32> to vector<16xf32>
    %363 = vector.shape_cast %362 : vector<16xf32> to vector<1x16xf32>
    %364 = vector.extract_strided_slice %299 {offsets = [16, 0], sizes = [16, 16], strides = [1, 1]} : vector<32x16xf32> to vector<16x16xf32>
    %365 = vector.extract_strided_slice %364 {offsets = [0, 0], sizes = [1, 16], strides = [1, 1]} : vector<16x16xf32> to vector<1x16xf32>
    %366 = vector.extract_strided_slice %365 {offsets = [0, 9], sizes = [1, 7], strides = [1, 1]} : vector<1x16xf32> to vector<1x7xf32>
    %367 = vector.extract_strided_slice %365 {offsets = [0, 0], sizes = [1, 9], strides = [1, 1]} : vector<1x16xf32> to vector<1x9xf32>
    %368 = tpu.concatenate %366, %367 in 1 : vector<1x7xf32>, vector<1x9xf32> -> vector<1x16xf32>
    %369 = vector.extract_strided_slice %364 {offsets = [1, 0], sizes = [1, 16], strides = [1, 1]} : vector<16x16xf32> to vector<1x16xf32>
    %370 = vector.extract_strided_slice %369 {offsets = [0, 10], sizes = [1, 6], strides = [1, 1]} : vector<1x16xf32> to vector<1x6xf32>
    %371 = vector.extract_strided_slice %369 {offsets = [0, 0], sizes = [1, 10], strides = [1, 1]} : vector<1x16xf32> to vector<1x10xf32>
    %372 = tpu.concatenate %370, %371 in 1 : vector<1x6xf32>, vector<1x10xf32> -> vector<1x16xf32>
    %373 = vector.extract_strided_slice %364 {offsets = [2, 0], sizes = [1, 16], strides = [1, 1]} : vector<16x16xf32> to vector<1x16xf32>
    %374 = vector.extract_strided_slice %373 {offsets = [0, 11], sizes = [1, 5], strides = [1, 1]} : vector<1x16xf32> to vector<1x5xf32>
    %375 = vector.extract_strided_slice %373 {offsets = [0, 0], sizes = [1, 11], strides = [1, 1]} : vector<1x16xf32> to vector<1x11xf32>
    %376 = tpu.concatenate %374, %375 in 1 : vector<1x5xf32>, vector<1x11xf32> -> vector<1x16xf32>
    %377 = vector.extract_strided_slice %364 {offsets = [3, 0], sizes = [1, 16], strides = [1, 1]} : vector<16x16xf32> to vector<1x16xf32>
    %378 = vector.extract_strided_slice %377 {offsets = [0, 12], sizes = [1, 4], strides = [1, 1]} : vector<1x16xf32> to vector<1x4xf32>
    %379 = vector.extract_strided_slice %377 {offsets = [0, 0], sizes = [1, 12], strides = [1, 1]} : vector<1x16xf32> to vector<1x12xf32>
    %380 = tpu.concatenate %378, %379 in 1 : vector<1x4xf32>, vector<1x12xf32> -> vector<1x16xf32>
    %381 = vector.extract_strided_slice %364 {offsets = [4, 0], sizes = [1, 16], strides = [1, 1]} : vector<16x16xf32> to vector<1x16xf32>
    %382 = vector.extract_strided_slice %381 {offsets = [0, 13], sizes = [1, 3], strides = [1, 1]} : vector<1x16xf32> to vector<1x3xf32>
    %383 = vector.extract_strided_slice %381 {offsets = [0, 0], sizes = [1, 13], strides = [1, 1]} : vector<1x16xf32> to vector<1x13xf32>
    %384 = tpu.concatenate %382, %383 in 1 : vector<1x3xf32>, vector<1x13xf32> -> vector<1x16xf32>
    %385 = vector.extract_strided_slice %364 {offsets = [5, 0], sizes = [1, 16], strides = [1, 1]} : vector<16x16xf32> to vector<1x16xf32>
    %386 = vector.extract_strided_slice %385 {offsets = [0, 14], sizes = [1, 2], strides = [1, 1]} : vector<1x16xf32> to vector<1x2xf32>
    %387 = vector.extract_strided_slice %385 {offsets = [0, 0], sizes = [1, 14], strides = [1, 1]} : vector<1x16xf32> to vector<1x14xf32>
    %388 = tpu.concatenate %386, %387 in 1 : vector<1x2xf32>, vector<1x14xf32> -> vector<1x16xf32>
    %389 = vector.extract_strided_slice %364 {offsets = [6, 0], sizes = [1, 16], strides = [1, 1]} : vector<16x16xf32> to vector<1x16xf32>
    %390 = vector.extract_strided_slice %389 {offsets = [0, 15], sizes = [1, 1], strides = [1, 1]} : vector<1x16xf32> to vector<1x1xf32>
    %391 = vector.extract_strided_slice %389 {offsets = [0, 0], sizes = [1, 15], strides = [1, 1]} : vector<1x16xf32> to vector<1x15xf32>
    %392 = tpu.concatenate %390, %391 in 1 : vector<1x1xf32>, vector<1x15xf32> -> vector<1x16xf32>
    %393 = vector.extract_strided_slice %364 {offsets = [7, 0], sizes = [1, 16], strides = [1, 1]} : vector<16x16xf32> to vector<1x16xf32>
    %394 = vector.extract_strided_slice %364 {offsets = [8, 0], sizes = [1, 16], strides = [1, 1]} : vector<16x16xf32> to vector<1x16xf32>
    %395 = vector.extract_strided_slice %394 {offsets = [0, 1], sizes = [1, 15], strides = [1, 1]} : vector<1x16xf32> to vector<1x15xf32>
    %396 = vector.extract_strided_slice %394 {offsets = [0, 0], sizes = [1, 1], strides = [1, 1]} : vector<1x16xf32> to vector<1x1xf32>
    %397 = tpu.concatenate %395, %396 in 1 : vector<1x15xf32>, vector<1x1xf32> -> vector<1x16xf32>
    %398 = vector.extract_strided_slice %364 {offsets = [9, 0], sizes = [1, 16], strides = [1, 1]} : vector<16x16xf32> to vector<1x16xf32>
    %399 = vector.extract_strided_slice %398 {offsets = [0, 2], sizes = [1, 14], strides = [1, 1]} : vector<1x16xf32> to vector<1x14xf32>
    %400 = vector.extract_strided_slice %398 {offsets = [0, 0], sizes = [1, 2], strides = [1, 1]} : vector<1x16xf32> to vector<1x2xf32>
    %401 = tpu.concatenate %399, %400 in 1 : vector<1x14xf32>, vector<1x2xf32> -> vector<1x16xf32>
    %402 = vector.extract_strided_slice %364 {offsets = [10, 0], sizes = [1, 16], strides = [1, 1]} : vector<16x16xf32> to vector<1x16xf32>
    %403 = vector.extract_strided_slice %402 {offsets = [0, 3], sizes = [1, 13], strides = [1, 1]} : vector<1x16xf32> to vector<1x13xf32>
    %404 = vector.extract_strided_slice %402 {offsets = [0, 0], sizes = [1, 3], strides = [1, 1]} : vector<1x16xf32> to vector<1x3xf32>
    %405 = tpu.concatenate %403, %404 in 1 : vector<1x13xf32>, vector<1x3xf32> -> vector<1x16xf32>
    %406 = vector.extract_strided_slice %364 {offsets = [11, 0], sizes = [1, 16], strides = [1, 1]} : vector<16x16xf32> to vector<1x16xf32>
    %407 = vector.extract_strided_slice %406 {offsets = [0, 4], sizes = [1, 12], strides = [1, 1]} : vector<1x16xf32> to vector<1x12xf32>
    %408 = vector.extract_strided_slice %406 {offsets = [0, 0], sizes = [1, 4], strides = [1, 1]} : vector<1x16xf32> to vector<1x4xf32>
    %409 = tpu.concatenate %407, %408 in 1 : vector<1x12xf32>, vector<1x4xf32> -> vector<1x16xf32>
    %410 = vector.extract_strided_slice %364 {offsets = [12, 0], sizes = [1, 16], strides = [1, 1]} : vector<16x16xf32> to vector<1x16xf32>
    %411 = vector.extract_strided_slice %410 {offsets = [0, 5], sizes = [1, 11], strides = [1, 1]} : vector<1x16xf32> to vector<1x11xf32>
    %412 = vector.extract_strided_slice %410 {offsets = [0, 0], sizes = [1, 5], strides = [1, 1]} : vector<1x16xf32> to vector<1x5xf32>
    %413 = tpu.concatenate %411, %412 in 1 : vector<1x11xf32>, vector<1x5xf32> -> vector<1x16xf32>
    %414 = vector.extract_strided_slice %364 {offsets = [13, 0], sizes = [1, 16], strides = [1, 1]} : vector<16x16xf32> to vector<1x16xf32>
    %415 = vector.extract_strided_slice %414 {offsets = [0, 6], sizes = [1, 10], strides = [1, 1]} : vector<1x16xf32> to vector<1x10xf32>
    %416 = vector.extract_strided_slice %414 {offsets = [0, 0], sizes = [1, 6], strides = [1, 1]} : vector<1x16xf32> to vector<1x6xf32>
    %417 = tpu.concatenate %415, %416 in 1 : vector<1x10xf32>, vector<1x6xf32> -> vector<1x16xf32>
    %418 = vector.extract_strided_slice %364 {offsets = [14, 0], sizes = [1, 16], strides = [1, 1]} : vector<16x16xf32> to vector<1x16xf32>
    %419 = vector.extract_strided_slice %418 {offsets = [0, 7], sizes = [1, 9], strides = [1, 1]} : vector<1x16xf32> to vector<1x9xf32>
    %420 = vector.extract_strided_slice %418 {offsets = [0, 0], sizes = [1, 7], strides = [1, 1]} : vector<1x16xf32> to vector<1x7xf32>
    %421 = tpu.concatenate %419, %420 in 1 : vector<1x9xf32>, vector<1x7xf32> -> vector<1x16xf32>
    %422 = vector.extract_strided_slice %364 {offsets = [15, 0], sizes = [1, 16], strides = [1, 1]} : vector<16x16xf32> to vector<1x16xf32>
    %423 = tpu.concatenate %368, %372, %376, %380, %384, %388, %392, %393, %397, %401, %405, %409, %413, %417, %421, %422 in 0 : vector<1x16xf32>, vector<1x16xf32>, vector<1x16xf32>, vector<1x16xf32>, vector<1x16xf32>, vector<1x16xf32>, vector<1x16xf32>, vector<1x16xf32>, vector<1x16xf32>, vector<1x16xf32>, vector<1x16xf32>, vector<1x16xf32>, vector<1x16xf32>, vector<1x16xf32>, vector<1x16xf32>, vector<1x16xf32> -> vector<16x16xf32>
    %cst_37 = arith.constant 0.000000e+00 : f32
    %424 = vector.broadcast %cst_37 : f32 to vector<16x16xf32>
    %425 = arith.select %14, %423, %424 : vector<16x16xi1>, vector<16x16xf32>
    %cst_38 = arith.constant dense<0.000000e+00> : vector<16xf32>
    %426 = vector.multi_reduction <add>, %425, %cst_38 [0] : vector<16x16xf32> to vector<16xf32>
    %427 = vector.shape_cast %426 : vector<16xf32> to vector<1x16xf32>
    %428 = tpu.concatenate %363, %427 in 0 : vector<1x16xf32>, vector<1x16xf32> -> vector<2x16xf32>
    %429 = vector.broadcast %1 : vector<2x1xf32> to vector<2x16xf32>
    %430 = arith.addf %428, %429 : vector<2x16xf32>
    %cst_39 = arith.constant 0.000000e+00 : f32
    %cst_40 = arith.constant 1.000000e+00 : f32
    %431 = vector.broadcast %cst_39 : f32 to vector<2x16xf32>
    %432 = arith.maximumf %431, %430 : vector<2x16xf32>
    %433 = vector.broadcast %cst_40 : f32 to vector<2x16xf32>
    %434 = arith.minimumf %433, %432 : vector<2x16xf32>
    %c0_41 = arith.constant 0 : index
    %c2_42 = arith.constant 2 : index
    %c0_43 = arith.constant 0 : index
    %c0_44 = arith.constant 0 : index
    %435 = vector.load %arg4[%c0_41, %c2_42, %c0_43, %c0_44] : memref<1x4x2x16xf32, #tpu.memory_space<vmem>>, vector<1x1x2x16xf32>
    %436 = vector.shape_cast %435 : vector<1x1x2x16xf32> to vector<2x16xf32>
    %437 = vector.shape_cast %434 : vector<2x16xf32> to vector<1x1x2x16xf32>
    tpu.vector_store %arg4[%c0_41, %c2_42, %c0_43, %c0_44], %437 {strides = array<i32>} : memref<1x4x2x16xf32, #tpu.memory_space<vmem>>, vector<1x1x2x16xf32>,
    %c0_45 = arith.constant 0 : index
    %c3 = arith.constant 3 : index
    %c0_46 = arith.constant 0 : index
    %c0_47 = arith.constant 0 : index
    %438 = vector.load %arg1[%c0_45, %c3, %c0_46, %c0_47] : memref<1x4x64x16xf32, #tpu.memory_space<vmem>>, vector<1x1x64x16xf32>
    %439 = vector.shape_cast %438 : vector<1x1x64x16xf32> to vector<64x16xf32>
    %cst_48 = arith.constant dense<0.000000e+00> : vector<32x16xf32>
    %440 = tpu.matmul %0, %439, %cst_48 {dimension_numbers = #tpu.dot_dimension_numbers<[1], [0], [0], [1], [0, 0, 1, 1], [], []>} : vector<32x64xf32>, vector<64x16xf32>, vector<32x16xf32> -> vector<32x16xf32>
    %441 = vector.extract_strided_slice %440 {offsets = [0, 0], sizes = [16, 16], strides = [1, 1]} : vector<32x16xf32> to vector<16x16xf32>
    %442 = vector.extract_strided_slice %441 {offsets = [0, 0], sizes = [1, 16], strides = [1, 1]} : vector<16x16xf32> to vector<1x16xf32>
    %443 = vector.extract_strided_slice %442 {offsets = [0, 9], sizes = [1, 7], strides = [1, 1]} : vector<1x16xf32> to vector<1x7xf32>
    %444 = vector.extract_strided_slice %442 {offsets = [0, 0], sizes = [1, 9], strides = [1, 1]} : vector<1x16xf32> to vector<1x9xf32>
    %445 = tpu.concatenate %443, %444 in 1 : vector<1x7xf32>, vector<1x9xf32> -> vector<1x16xf32>
    %446 = vector.extract_strided_slice %441 {offsets = [1, 0], sizes = [1, 16], strides = [1, 1]} : vector<16x16xf32> to vector<1x16xf32>
    %447 = vector.extract_strided_slice %446 {offsets = [0, 10], sizes = [1, 6], strides = [1, 1]} : vector<1x16xf32> to vector<1x6xf32>
    %448 = vector.extract_strided_slice %446 {offsets = [0, 0], sizes = [1, 10], strides = [1, 1]} : vector<1x16xf32> to vector<1x10xf32>
    %449 = tpu.concatenate %447, %448 in 1 : vector<1x6xf32>, vector<1x10xf32> -> vector<1x16xf32>
    %450 = vector.extract_strided_slice %441 {offsets = [2, 0], sizes = [1, 16], strides = [1, 1]} : vector<16x16xf32> to vector<1x16xf32>
    %451 = vector.extract_strided_slice %450 {offsets = [0, 11], sizes = [1, 5], strides = [1, 1]} : vector<1x16xf32> to vector<1x5xf32>
    %452 = vector.extract_strided_slice %450 {offsets = [0, 0], sizes = [1, 11], strides = [1, 1]} : vector<1x16xf32> to vector<1x11xf32>
    %453 = tpu.concatenate %451, %452 in 1 : vector<1x5xf32>, vector<1x11xf32> -> vector<1x16xf32>
    %454 = vector.extract_strided_slice %441 {offsets = [3, 0], sizes = [1, 16], strides = [1, 1]} : vector<16x16xf32> to vector<1x16xf32>
    %455 = vector.extract_strided_slice %454 {offsets = [0, 12], sizes = [1, 4], strides = [1, 1]} : vector<1x16xf32> to vector<1x4xf32>
    %456 = vector.extract_strided_slice %454 {offsets = [0, 0], sizes = [1, 12], strides = [1, 1]} : vector<1x16xf32> to vector<1x12xf32>
    %457 = tpu.concatenate %455, %456 in 1 : vector<1x4xf32>, vector<1x12xf32> -> vector<1x16xf32>
    %458 = vector.extract_strided_slice %441 {offsets = [4, 0], sizes = [1, 16], strides = [1, 1]} : vector<16x16xf32> to vector<1x16xf32>
    %459 = vector.extract_strided_slice %458 {offsets = [0, 13], sizes = [1, 3], strides = [1, 1]} : vector<1x16xf32> to vector<1x3xf32>
    %460 = vector.extract_strided_slice %458 {offsets = [0, 0], sizes = [1, 13], strides = [1, 1]} : vector<1x16xf32> to vector<1x13xf32>
    %461 = tpu.concatenate %459, %460 in 1 : vector<1x3xf32>, vector<1x13xf32> -> vector<1x16xf32>
    %462 = vector.extract_strided_slice %441 {offsets = [5, 0], sizes = [1, 16], strides = [1, 1]} : vector<16x16xf32> to vector<1x16xf32>
    %463 = vector.extract_strided_slice %462 {offsets = [0, 14], sizes = [1, 2], strides = [1, 1]} : vector<1x16xf32> to vector<1x2xf32>
    %464 = vector.extract_strided_slice %462 {offsets = [0, 0], sizes = [1, 14], strides = [1, 1]} : vector<1x16xf32> to vector<1x14xf32>
    %465 = tpu.concatenate %463, %464 in 1 : vector<1x2xf32>, vector<1x14xf32> -> vector<1x16xf32>
    %466 = vector.extract_strided_slice %441 {offsets = [6, 0], sizes = [1, 16], strides = [1, 1]} : vector<16x16xf32> to vector<1x16xf32>
    %467 = vector.extract_strided_slice %466 {offsets = [0, 15], sizes = [1, 1], strides = [1, 1]} : vector<1x16xf32> to vector<1x1xf32>
    %468 = vector.extract_strided_slice %466 {offsets = [0, 0], sizes = [1, 15], strides = [1, 1]} : vector<1x16xf32> to vector<1x15xf32>
    %469 = tpu.concatenate %467, %468 in 1 : vector<1x1xf32>, vector<1x15xf32> -> vector<1x16xf32>
    %470 = vector.extract_strided_slice %441 {offsets = [7, 0], sizes = [1, 16], strides = [1, 1]} : vector<16x16xf32> to vector<1x16xf32>
    %471 = vector.extract_strided_slice %441 {offsets = [8, 0], sizes = [1, 16], strides = [1, 1]} : vector<16x16xf32> to vector<1x16xf32>
    %472 = vector.extract_strided_slice %471 {offsets = [0, 1], sizes = [1, 15], strides = [1, 1]} : vector<1x16xf32> to vector<1x15xf32>
    %473 = vector.extract_strided_slice %471 {offsets = [0, 0], sizes = [1, 1], strides = [1, 1]} : vector<1x16xf32> to vector<1x1xf32>
    %474 = tpu.concatenate %472, %473 in 1 : vector<1x15xf32>, vector<1x1xf32> -> vector<1x16xf32>
    %475 = vector.extract_strided_slice %441 {offsets = [9, 0], sizes = [1, 16], strides = [1, 1]} : vector<16x16xf32> to vector<1x16xf32>
    %476 = vector.extract_strided_slice %475 {offsets = [0, 2], sizes = [1, 14], strides = [1, 1]} : vector<1x16xf32> to vector<1x14xf32>
    %477 = vector.extract_strided_slice %475 {offsets = [0, 0], sizes = [1, 2], strides = [1, 1]} : vector<1x16xf32> to vector<1x2xf32>
    %478 = tpu.concatenate %476, %477 in 1 : vector<1x14xf32>, vector<1x2xf32> -> vector<1x16xf32>
    %479 = vector.extract_strided_slice %441 {offsets = [10, 0], sizes = [1, 16], strides = [1, 1]} : vector<16x16xf32> to vector<1x16xf32>
    %480 = vector.extract_strided_slice %479 {offsets = [0, 3], sizes = [1, 13], strides = [1, 1]} : vector<1x16xf32> to vector<1x13xf32>
    %481 = vector.extract_strided_slice %479 {offsets = [0, 0], sizes = [1, 3], strides = [1, 1]} : vector<1x16xf32> to vector<1x3xf32>
    %482 = tpu.concatenate %480, %481 in 1 : vector<1x13xf32>, vector<1x3xf32> -> vector<1x16xf32>
    %483 = vector.extract_strided_slice %441 {offsets = [11, 0], sizes = [1, 16], strides = [1, 1]} : vector<16x16xf32> to vector<1x16xf32>
    %484 = vector.extract_strided_slice %483 {offsets = [0, 4], sizes = [1, 12], strides = [1, 1]} : vector<1x16xf32> to vector<1x12xf32>
    %485 = vector.extract_strided_slice %483 {offsets = [0, 0], sizes = [1, 4], strides = [1, 1]} : vector<1x16xf32> to vector<1x4xf32>
    %486 = tpu.concatenate %484, %485 in 1 : vector<1x12xf32>, vector<1x4xf32> -> vector<1x16xf32>
    %487 = vector.extract_strided_slice %441 {offsets = [12, 0], sizes = [1, 16], strides = [1, 1]} : vector<16x16xf32> to vector<1x16xf32>
    %488 = vector.extract_strided_slice %487 {offsets = [0, 5], sizes = [1, 11], strides = [1, 1]} : vector<1x16xf32> to vector<1x11xf32>
    %489 = vector.extract_strided_slice %487 {offsets = [0, 0], sizes = [1, 5], strides = [1, 1]} : vector<1x16xf32> to vector<1x5xf32>
    %490 = tpu.concatenate %488, %489 in 1 : vector<1x11xf32>, vector<1x5xf32> -> vector<1x16xf32>
    %491 = vector.extract_strided_slice %441 {offsets = [13, 0], sizes = [1, 16], strides = [1, 1]} : vector<16x16xf32> to vector<1x16xf32>
    %492 = vector.extract_strided_slice %491 {offsets = [0, 6], sizes = [1, 10], strides = [1, 1]} : vector<1x16xf32> to vector<1x10xf32>
    %493 = vector.extract_strided_slice %491 {offsets = [0, 0], sizes = [1, 6], strides = [1, 1]} : vector<1x16xf32> to vector<1x6xf32>
    %494 = tpu.concatenate %492, %493 in 1 : vector<1x10xf32>, vector<1x6xf32> -> vector<1x16xf32>
    %495 = vector.extract_strided_slice %441 {offsets = [14, 0], sizes = [1, 16], strides = [1, 1]} : vector<16x16xf32> to vector<1x16xf32>
    %496 = vector.extract_strided_slice %495 {offsets = [0, 7], sizes = [1, 9], strides = [1, 1]} : vector<1x16xf32> to vector<1x9xf32>
    %497 = vector.extract_strided_slice %495 {offsets = [0, 0], sizes = [1, 7], strides = [1, 1]} : vector<1x16xf32> to vector<1x7xf32>
    %498 = tpu.concatenate %496, %497 in 1 : vector<1x9xf32>, vector<1x7xf32> -> vector<1x16xf32>
    %499 = vector.extract_strided_slice %441 {offsets = [15, 0], sizes = [1, 16], strides = [1, 1]} : vector<16x16xf32> to vector<1x16xf32>
    %500 = tpu.concatenate %445, %449, %453, %457, %461, %465, %469, %470, %474, %478, %482, %486, %490, %494, %498, %499 in 0 : vector<1x16xf32>, vector<1x16xf32>, vector<1x16xf32>, vector<1x16xf32>, vector<1x16xf32>, vector<1x16xf32>, vector<1x16xf32>, vector<1x16xf32>, vector<1x16xf32>, vector<1x16xf32>, vector<1x16xf32>, vector<1x16xf32>, vector<1x16xf32>, vector<1x16xf32>, vector<1x16xf32>, vector<1x16xf32> -> vector<16x16xf32>
    %cst_49 = arith.constant 0.000000e+00 : f32
    %501 = vector.broadcast %cst_49 : f32 to vector<16x16xf32>
    %502 = arith.select %14, %500, %501 : vector<16x16xi1>, vector<16x16xf32>
    %cst_50 = arith.constant dense<0.000000e+00> : vector<16xf32>
    %503 = vector.multi_reduction <add>, %502, %cst_50 [0] : vector<16x16xf32> to vector<16xf32>
    %504 = vector.shape_cast %503 : vector<16xf32> to vector<1x16xf32>
    %505 = vector.extract_strided_slice %440 {offsets = [16, 0], sizes = [16, 16], strides = [1, 1]} : vector<32x16xf32> to vector<16x16xf32>
    %506 = vector.extract_strided_slice %505 {offsets = [0, 0], sizes = [1, 16], strides = [1, 1]} : vector<16x16xf32> to vector<1x16xf32>
    %507 = vector.extract_strided_slice %506 {offsets = [0, 9], sizes = [1, 7], strides = [1, 1]} : vector<1x16xf32> to vector<1x7xf32>
    %508 = vector.extract_strided_slice %506 {offsets = [0, 0], sizes = [1, 9], strides = [1, 1]} : vector<1x16xf32> to vector<1x9xf32>
    %509 = tpu.concatenate %507, %508 in 1 : vector<1x7xf32>, vector<1x9xf32> -> vector<1x16xf32>
    %510 = vector.extract_strided_slice %505 {offsets = [1, 0], sizes = [1, 16], strides = [1, 1]} : vector<16x16xf32> to vector<1x16xf32>
    %511 = vector.extract_strided_slice %510 {offsets = [0, 10], sizes = [1, 6], strides = [1, 1]} : vector<1x16xf32> to vector<1x6xf32>
    %512 = vector.extract_strided_slice %510 {offsets = [0, 0], sizes = [1, 10], strides = [1, 1]} : vector<1x16xf32> to vector<1x10xf32>
    %513 = tpu.concatenate %511, %512 in 1 : vector<1x6xf32>, vector<1x10xf32> -> vector<1x16xf32>
    %514 = vector.extract_strided_slice %505 {offsets = [2, 0], sizes = [1, 16], strides = [1, 1]} : vector<16x16xf32> to vector<1x16xf32>
    %515 = vector.extract_strided_slice %514 {offsets = [0, 11], sizes = [1, 5], strides = [1, 1]} : vector<1x16xf32> to vector<1x5xf32>
    %516 = vector.extract_strided_slice %514 {offsets = [0, 0], sizes = [1, 11], strides = [1, 1]} : vector<1x16xf32> to vector<1x11xf32>
    %517 = tpu.concatenate %515, %516 in 1 : vector<1x5xf32>, vector<1x11xf32> -> vector<1x16xf32>
    %518 = vector.extract_strided_slice %505 {offsets = [3, 0], sizes = [1, 16], strides = [1, 1]} : vector<16x16xf32> to vector<1x16xf32>
    %519 = vector.extract_strided_slice %518 {offsets = [0, 12], sizes = [1, 4], strides = [1, 1]} : vector<1x16xf32> to vector<1x4xf32>
    %520 = vector.extract_strided_slice %518 {offsets = [0, 0], sizes = [1, 12], strides = [1, 1]} : vector<1x16xf32> to vector<1x12xf32>
    %521 = tpu.concatenate %519, %520 in 1 : vector<1x4xf32>, vector<1x12xf32> -> vector<1x16xf32>
    %522 = vector.extract_strided_slice %505 {offsets = [4, 0], sizes = [1, 16], strides = [1, 1]} : vector<16x16xf32> to vector<1x16xf32>
    %523 = vector.extract_strided_slice %522 {offsets = [0, 13], sizes = [1, 3], strides = [1, 1]} : vector<1x16xf32> to vector<1x3xf32>
    %524 = vector.extract_strided_slice %522 {offsets = [0, 0], sizes = [1, 13], strides = [1, 1]} : vector<1x16xf32> to vector<1x13xf32>
    %525 = tpu.concatenate %523, %524 in 1 : vector<1x3xf32>, vector<1x13xf32> -> vector<1x16xf32>
    %526 = vector.extract_strided_slice %505 {offsets = [5, 0], sizes = [1, 16], strides = [1, 1]} : vector<16x16xf32> to vector<1x16xf32>
    %527 = vector.extract_strided_slice %526 {offsets = [0, 14], sizes = [1, 2], strides = [1, 1]} : vector<1x16xf32> to vector<1x2xf32>
    %528 = vector.extract_strided_slice %526 {offsets = [0, 0], sizes = [1, 14], strides = [1, 1]} : vector<1x16xf32> to vector<1x14xf32>
    %529 = tpu.concatenate %527, %528 in 1 : vector<1x2xf32>, vector<1x14xf32> -> vector<1x16xf32>
    %530 = vector.extract_strided_slice %505 {offsets = [6, 0], sizes = [1, 16], strides = [1, 1]} : vector<16x16xf32> to vector<1x16xf32>
    %531 = vector.extract_strided_slice %530 {offsets = [0, 15], sizes = [1, 1], strides = [1, 1]} : vector<1x16xf32> to vector<1x1xf32>
    %532 = vector.extract_strided_slice %530 {offsets = [0, 0], sizes = [1, 15], strides = [1, 1]} : vector<1x16xf32> to vector<1x15xf32>
    %533 = tpu.concatenate %531, %532 in 1 : vector<1x1xf32>, vector<1x15xf32> -> vector<1x16xf32>
    %534 = vector.extract_strided_slice %505 {offsets = [7, 0], sizes = [1, 16], strides = [1, 1]} : vector<16x16xf32> to vector<1x16xf32>
    %535 = vector.extract_strided_slice %505 {offsets = [8, 0], sizes = [1, 16], strides = [1, 1]} : vector<16x16xf32> to vector<1x16xf32>
    %536 = vector.extract_strided_slice %535 {offsets = [0, 1], sizes = [1, 15], strides = [1, 1]} : vector<1x16xf32> to vector<1x15xf32>
    %537 = vector.extract_strided_slice %535 {offsets = [0, 0], sizes = [1, 1], strides = [1, 1]} : vector<1x16xf32> to vector<1x1xf32>
    %538 = tpu.concatenate %536, %537 in 1 : vector<1x15xf32>, vector<1x1xf32> -> vector<1x16xf32>
    %539 = vector.extract_strided_slice %505 {offsets = [9, 0], sizes = [1, 16], strides = [1, 1]} : vector<16x16xf32> to vector<1x16xf32>
    %540 = vector.extract_strided_slice %539 {offsets = [0, 2], sizes = [1, 14], strides = [1, 1]} : vector<1x16xf32> to vector<1x14xf32>
    %541 = vector.extract_strided_slice %539 {offsets = [0, 0], sizes = [1, 2], strides = [1, 1]} : vector<1x16xf32> to vector<1x2xf32>
    %542 = tpu.concatenate %540, %541 in 1 : vector<1x14xf32>, vector<1x2xf32> -> vector<1x16xf32>
    %543 = vector.extract_strided_slice %505 {offsets = [10, 0], sizes = [1, 16], strides = [1, 1]} : vector<16x16xf32> to vector<1x16xf32>
    %544 = vector.extract_strided_slice %543 {offsets = [0, 3], sizes = [1, 13], strides = [1, 1]} : vector<1x16xf32> to vector<1x13xf32>
    %545 = vector.extract_strided_slice %543 {offsets = [0, 0], sizes = [1, 3], strides = [1, 1]} : vector<1x16xf32> to vector<1x3xf32>
    %546 = tpu.concatenate %544, %545 in 1 : vector<1x13xf32>, vector<1x3xf32> -> vector<1x16xf32>
    %547 = vector.extract_strided_slice %505 {offsets = [11, 0], sizes = [1, 16], strides = [1, 1]} : vector<16x16xf32> to vector<1x16xf32>
    %548 = vector.extract_strided_slice %547 {offsets = [0, 4], sizes = [1, 12], strides = [1, 1]} : vector<1x16xf32> to vector<1x12xf32>
    %549 = vector.extract_strided_slice %547 {offsets = [0, 0], sizes = [1, 4], strides = [1, 1]} : vector<1x16xf32> to vector<1x4xf32>
    %550 = tpu.concatenate %548, %549 in 1 : vector<1x12xf32>, vector<1x4xf32> -> vector<1x16xf32>
    %551 = vector.extract_strided_slice %505 {offsets = [12, 0], sizes = [1, 16], strides = [1, 1]} : vector<16x16xf32> to vector<1x16xf32>
    %552 = vector.extract_strided_slice %551 {offsets = [0, 5], sizes = [1, 11], strides = [1, 1]} : vector<1x16xf32> to vector<1x11xf32>
    %553 = vector.extract_strided_slice %551 {offsets = [0, 0], sizes = [1, 5], strides = [1, 1]} : vector<1x16xf32> to vector<1x5xf32>
    %554 = tpu.concatenate %552, %553 in 1 : vector<1x11xf32>, vector<1x5xf32> -> vector<1x16xf32>
    %555 = vector.extract_strided_slice %505 {offsets = [13, 0], sizes = [1, 16], strides = [1, 1]} : vector<16x16xf32> to vector<1x16xf32>
    %556 = vector.extract_strided_slice %555 {offsets = [0, 6], sizes = [1, 10], strides = [1, 1]} : vector<1x16xf32> to vector<1x10xf32>
    %557 = vector.extract_strided_slice %555 {offsets = [0, 0], sizes = [1, 6], strides = [1, 1]} : vector<1x16xf32> to vector<1x6xf32>
    %558 = tpu.concatenate %556, %557 in 1 : vector<1x10xf32>, vector<1x6xf32> -> vector<1x16xf32>
    %559 = vector.extract_strided_slice %505 {offsets = [14, 0], sizes = [1, 16], strides = [1, 1]} : vector<16x16xf32> to vector<1x16xf32>
    %560 = vector.extract_strided_slice %559 {offsets = [0, 7], sizes = [1, 9], strides = [1, 1]} : vector<1x16xf32> to vector<1x9xf32>
    %561 = vector.extract_strided_slice %559 {offsets = [0, 0], sizes = [1, 7], strides = [1, 1]} : vector<1x16xf32> to vector<1x7xf32>
    %562 = tpu.concatenate %560, %561 in 1 : vector<1x9xf32>, vector<1x7xf32> -> vector<1x16xf32>
    %563 = vector.extract_strided_slice %505 {offsets = [15, 0], sizes = [1, 16], strides = [1, 1]} : vector<16x16xf32> to vector<1x16xf32>
    %564 = tpu.concatenate %509, %513, %517, %521, %525, %529, %533, %534, %538, %542, %546, %550, %554, %558, %562, %563 in 0 : vector<1x16xf32>, vector<1x16xf32>, vector<1x16xf32>, vector<1x16xf32>, vector<1x16xf32>, vector<1x16xf32>, vector<1x16xf32>, vector<1x16xf32>, vector<1x16xf32>, vector<1x16xf32>, vector<1x16xf32>, vector<1x16xf32>, vector<1x16xf32>, vector<1x16xf32>, vector<1x16xf32>, vector<1x16xf32> -> vector<16x16xf32>
    %cst_51 = arith.constant 0.000000e+00 : f32
    %565 = vector.broadcast %cst_51 : f32 to vector<16x16xf32>
    %566 = arith.select %14, %564, %565 : vector<16x16xi1>, vector<16x16xf32>
    %cst_52 = arith.constant dense<0.000000e+00> : vector<16xf32>
    %567 = vector.multi_reduction <add>, %566, %cst_52 [0] : vector<16x16xf32> to vector<16xf32>
    %568 = vector.shape_cast %567 : vector<16xf32> to vector<1x16xf32>
    %569 = tpu.concatenate %504, %568 in 0 : vector<1x16xf32>, vector<1x16xf32> -> vector<2x16xf32>
    %570 = vector.broadcast %1 : vector<2x1xf32> to vector<2x16xf32>
    %571 = arith.addf %569, %570 : vector<2x16xf32>
    %cst_53 = arith.constant 0.000000e+00 : f32
    %cst_54 = arith.constant 1.000000e+00 : f32
    %572 = vector.broadcast %cst_53 : f32 to vector<2x16xf32>
    %573 = arith.maximumf %572, %571 : vector<2x16xf32>
    %574 = vector.broadcast %cst_54 : f32 to vector<2x16xf32>
    %575 = arith.minimumf %574, %573 : vector<2x16xf32>
    %c0_55 = arith.constant 0 : index
    %c3_56 = arith.constant 3 : index
    %c0_57 = arith.constant 0 : index
    %c0_58 = arith.constant 0 : index
    %576 = vector.load %arg4[%c0_55, %c3_56, %c0_57, %c0_58] : memref<1x4x2x16xf32, #tpu.memory_space<vmem>>, vector<1x1x2x16xf32>
    %577 = vector.shape_cast %576 : vector<1x1x2x16xf32> to vector<2x16xf32>
    %578 = vector.shape_cast %575 : vector<2x16xf32> to vector<1x1x2x16xf32>
    tpu.vector_store %arg4[%c0_55, %c3_56, %c0_57, %c0_58], %578 {strides = array<i32>} : memref<1x4x2x16xf32, #tpu.memory_space<vmem>>, vector<1x1x2x16xf32>,
    return
  }
  func.func @transform_0(%arg0: i32) -> (i32, i32, i32, i32) {
    %c0_i32 = arith.constant 0 : i32
    %c0_i32_0 = arith.constant 0 : i32
    %c0_i32_1 = arith.constant 0 : i32
    %c0_i32_2 = arith.constant 0 : i32
    return %arg0, %c0_i32, %c0_i32_0, %c0_i32_1 : i32, i32, i32, i32
  }
  func.func @transform_1(%arg0: i32) -> (i32, i32) {
    %c0_i32 = arith.constant 0 : i32
    %c0_i32_0 = arith.constant 0 : i32
    %c0_i32_1 = arith.constant 0 : i32
    return %c0_i32, %c0_i32_0 : i32, i32
  }
  func.func @transform_2(%arg0: i32) -> (i32, i32) {
    %c0_i32 = arith.constant 0 : i32
    %c0_i32_0 = arith.constant 0 : i32
    %c0_i32_1 = arith.constant 0 : i32
    return %c0_i32, %c0_i32_0 : i32, i32
  }
  func.func @transform_3(%arg0: i32) -> (i32, i32, i32, i32) {
    %c0_i32 = arith.constant 0 : i32
    %c0_i32_0 = arith.constant 0 : i32
    %c0_i32_1 = arith.constant 0 : i32
    %c0_i32_2 = arith.constant 0 : i32
    return %arg0, %c0_i32, %c0_i32_0, %c0_i32_1 : i32, i32, i32, i32
  }
}

</mosaic_0001>

<bundles_post_ra>
// kernel: _outconv1d_v2_impl.1
= control target key start
LH: loop header
LB: loop body
LE: loop exit
PB: predicated region body
PF: predicated region fallthrough
CT: control target
= control target key end

     0   :  { %s3321_s0 = inlined_call_operand.vmem [shape: f32[4,4,64,16], index: 0, kind: input, shape index: {}]   ;;  %s3322_s1 = inlined_call_operand.vmem [shape: f32[32,64], index: 1, kind: input, shape index: {}]   ;;  %s3323_s2 = inlined_call_operand.vmem [shape: f32[2,1], index: 2, kind: input, shape index: {}]   ;;  %s3324_s3 = inlined_call_operand.hbm [shape: f32[4,4,2,16], index: 3, kind: output, shape index: {}]  }
   0x1   :  { %3407 = sst [smem:[#allocation13_spill]] %s3321_s0 }
   0x2   :  { %3408 = sst [smem:[#allocation14_spill]] %s3322_s1 }
   0x3   :  { %3409 = sst [smem:[#allocation15_spill]] %s3323_s2 }
   0x4   :  { %3410 = sst [smem:[#allocation16_spill]] %s3324_s3 }
   0x5   :  { %8 = vsyncpa [#allocation3], 0 }
   0x6   :  { %10 = vsyncpa [#allocation3 + $0x1], 0  ;;  %s2152_s12 = smov 0   ;;  %s2154_s13 = smov 0  }
   0x7   :  { %s2156_s14 = smov 0   ;;  %s2158_s15 = smov 0  }
   0x8 LB: > { %3411 = sst [smem:[#allocation5_spill]] %s2087_s12  ;;  %s2173_s16 = sadd.s32 4294967295, %s2099_s15   ;;  %s2099_s15 = sphi %s2158_s15, %s3564_s15   ;;  %s2095_s14 = sphi %s2156_s14, %s3566_s14   ;;  %s2091_s13 = sphi %s2154_s13, %s3568_s13   ;;  %s2087_s12 = sphi %s2152_s12, %s3567_s12  }
   0x9   : > { %3412 = sst [smem:[#allocation6_spill]] %s2095_s14  ;;  %s1708_s17 = sadd.s32 4294967294, %s2099_s15  }
   0xa   : > { %3413 = sst [smem:[#allocation7_spill]] %s2099_s15  ;;  %s2177_s18 = sadd.s32 1, %s2099_s15  }
   0xb   : > { %3414 = sst [smem:[#allocation8_spill]] %s2173_s16  ;;  %s91_s19 = sadd.s32 1, %s2095_s14 }
   0xc   : > { %3415 = sst [smem:[#allocation9_spill]] %s2177_s18  ;;  %s88_s20 = ssub.s32 %s2099_s15, %s2177_s18 }
   0xd   : > { %p101_p0 = scmp.ne.s32.totalorder %s2095_s14, %s2091_s13  ;;  %p89_p1 = scmp.eq.s32.totalorder %s88_s20, 0 }
   0xe   : > { %p102_p2 = scmp.eq.s32.totalorder %s2173_s16, 3  ;;  %p107_p3 = scmp.ne.s32.totalorder %s2091_s13, %s2087_s12 }
   0xf   : > { %p108_p4 = scmp.eq.s32.totalorder %s1708_s17, 3  ;;  %p1711_p7 = scmp.ge.s32.totalorder %s2099_s15, 1 }
  0x10   : > { %s2188_s21 = scalar_select %p89_p1, %s2095_s14, %s91_s19  }
  0x11   : > { %p2190_p5 = por %p102_p2, %p101_p0  ;;  %p2194_p6 = por %p108_p4, %p107_p3 }
  0x12   : > { %3416 = sst [smem:[#allocation10_spill]] %s2188_s21  ;;  %p140_p8 = scmp.lt.s32.totalorder %s2099_s15, 5 }
  0x13   : > { %s3417_s22 = scalar_select %p2190_p5, 1, 0 }
  0x14   : > { %s3419_s23 = scalar_select %p2194_p6, 1, 0 }
  0x15   : > { %3418 = sst [smem:[#allocation11_spill]] %s3417_s22  ;;  %p141_p9 = pnand %p1711_p7, %p140_p8 }
  0x16   : > { %3420 = sst [smem:[#allocation12_spill]] %s3419_s23  ;;  %p164_p10 = scmp.lt.s32.totalorder (!%p141_p9), %s2173_s16, 3  ;;  %vm201_vm0 = vcmask (!%p141_p9), 523264   ;;  %v2101_v2 = vmov (!%p141_p9), 0   ;;  %vm3395_vm1 = vcmask (!%p141_p9), 113664   ;;  %vm3386_vm2 = vcmask (!%p141_p9), 105472  }
  0x17   : > { %144 = sbr.rel (%p141_p9) target bundleno = 869 (0x365), region = 32  ;;  %s3421_s1 = sld [smem:[#allocation14_spill]] (!%p141_p9)  ;;  %2036 = vset.pattern.permute.xlu0 (!%p141_p9), %v2101_v2  ;;  %vm3385_vm3 = vcmask (!%p141_p9), 121856   ;;  %vm3406_vm4 = vcmask (!%p141_p9), 1040384   ;;  %vm415_vm5 = vcmask (!%p141_p9), 1041408   ;;  %vm3377_vm6 = vcmask (!%p141_p9), 97280  }
  0x18   : > { %s3422_s2 = sld [smem:[#allocation15_spill]] (!%p141_p9)  ;;  %s3423_s0 = sld [smem:[#allocation13_spill]] (!%p141_p9)  ;;  %vm417_vm7 = vcmask (!%p141_p9), 1042432   ;;  %vm3378_vm8 = vcmask (!%p141_p9), 89088   ;;  %vm419_vm9 = vcmask (!%p141_p9), 1043456   ;;  %vm3383_vm10 = vcmask (!%p141_p9), 80896  }
  0x19   : > { %s3367_s17 = smov (!%p141_p9), 15   ;;  %s3371_s19 = smov (!%p141_p9), 127   ;;  %vm421_vm11 = vcmask (!%p141_p9), 1044480   ;;  %vm3384_vm12 = vcmask (!%p141_p9), 72704   ;;  %vm3389_vm13 = vcmask (!%p141_p9), 48128   ;;  %vm3387_vm14 = vcmask (!%p141_p9), 56320  }
  0x1a   : > { %s3343_s20 = smov (!%p141_p9), 14   ;;  %s3369_s24 = smov (!%p141_p9), 126   ;;  %vm423_vm15 = vcmask (!%p141_p9), 1045504  }
  0x1b   : > { %s3339_s25 = smov (!%p141_p9), 13   ;;  %s3365_s26 = smov (!%p141_p9), 125  }
  0x1c   : > { %s3335_s27 = smov (!%p141_p9), 12   ;;  %s3337_s30 = smov (!%p141_p9), 123  }
  0x1d   : > { %v2204_v0 = vld [vmem:[%s3421_s1] sm:$0xff] (!%p141_p9)  ;;  %v170_v32 = vld [vmem:[%s3421_s1 + $0x8] sm:$0xff] (!%p141_p9)  ;;  %v171_v33 = vld [vmem:[%s3421_s1 + $0x10] sm:$0xff] (!%p141_p9)  ;;  %s3327_s4 = smov (!%p141_p9), 10   ;;  %s3325_s6 = smov (!%p141_p9), 9  }
  0x1e   : > { %1831 = vmatprep.mubr.msk.f32.mxu0 %vm201_vm0, %v2204_v0  ;;  %1853 = vmatprep.mubr.msk.f32.mxu1 %vm201_vm0, %v2204_v0  ;;  %v173_v1 = vld [vmem:[%s3422_s2] sm:$0x3]  ;;  %s165_s28 = scalar_select %p164_p10, %s2173_s16, 3  ;;  %v172_v35 = vld [vmem:[%s3421_s1 + $0x18] sm:$0xff] }
  0x1f   : > { %574 = vperm.xlu0 %2036, %v173_v1   ;;  %s3329_s7 = smov 121   ;;  %s3379_s8 = smov 118  }
  0x20   : > { %s1765_s29 = sshll.u32 %s165_s28, 8  ;;  %s3341_s28 = smov 124  }
  0x21   : > { %s2217_s5 = scalar_lea.vmem %s3423_s0, %s1765_s29  ;;  %s3331_s29 = smov 11  }
  0x22   : > { %v193_v3 = vld [vmem:[%s2217_s5] sm:$0xff]  ;;  %v194_v4 = vld [vmem:[%s2217_s5 + $0x8] sm:$0xff]  ;;  %v195_v5 = vld [vmem:[%s2217_s5 + $0x10] sm:$0xff]  ;;  %s3381_s9 = smov 119   ;;  %s3363_s10 = smov 6  }
  0x23   : > { %v1903_v6 = vpack.c.bf16 %v194_v4, %v193_v3  ;;  %v196_v7 = vld [vmem:[%s2217_s5 + $0x18] sm:$0xff]  ;;  %v197_v9 = vld [vmem:[%s2217_s5 + $0x20] sm:$0xff]  ;;  %v198_v10 = vld [vmem:[%s2217_s5 + $0x28] sm:$0xff]  ;;  %s3375_s11 = smov 7   ;;  %s3442_s0 = smov 2  }
  0x24   : > { %v1907_v8 = vpack.c.bf16 %v196_v7, %v195_v5  ;;  %v1721_v11 = vld [vmem:[%s2217_s5 + $0x40] sm:$0xff]  ;;  %v1722_v12 = vld [vmem:[%s2217_s5 + $0x48] sm:$0xff]  ;;  %v1723_v13 = vld [vmem:[%s2217_s5 + $0x50] sm:$0xff]  ;;  %v1911_v17 = vpack.c.bf16 %v198_v10, %v197_v9  ;;  %s3443_s1 = smov 119   ;;  %s3448_s2 = smov 1  }
  0x25   : > { %1904 = vmatprep.subr.bf16.mxu0 %v1903_v6  ;;  %v1724_v14 = vld [vmem:[%s2217_s5 + $0x58] sm:$0xff]  ;;  %v1919_v15 = vpack.c.bf16 %v1722_v12, %v1721_v11  ;;  %v1725_v18 = vld [vmem:[%s2217_s5 + $0x60] sm:$0xff]  ;;  %v1726_v19 = vld [vmem:[%s2217_s5 + $0x68] sm:$0xff]  ;;  %s3449_s21 = smov 118   ;;  %s3450_s14 = smov 7  }
  0x26   : > { %1906 = vmatpush3.bf16.msra.mxu0 %v1903_v6  ;;  %v1923_v16 = vpack.c.bf16 %v1724_v14, %v1723_v13  ;;  %v199_v20 = vld [vmem:[%s2217_s5 + $0x30] sm:$0xff]  ;;  %v200_v21 = vld [vmem:[%s2217_s5 + $0x38] sm:$0xff]  ;;  %v1927_v22 = vpack.c.bf16 %v1726_v19, %v1725_v18  ;;  %v1734_v26 = vld [vmem:[%s2217_s5 + $0x80] sm:$0xff]  ;;  %s3451_s18 = smov 117   ;;  %s3465_s23 = smov 127  }
  0x27   : > { %1908 = vmatprep.subr.bf16.mxu0 %v1907_v8  ;;  %1920 = vmatprep.subr.bf16.mxu1 %v1919_v15  ;;  %v1915_v23 = vpack.c.bf16 %v200_v21, %v199_v20  ;;  %v1727_v24 = vld [vmem:[%s2217_s5 + $0x70] sm:$0xff]  ;;  %v1728_v25 = vld [vmem:[%s2217_s5 + $0x78] sm:$0xff]  ;;  %v1735_v27 = vld [vmem:[%s2217_s5 + $0x88] sm:$0xff]  ;;  %s3466_s12 = smov 126   ;;  %s3467_s15 = smov 15  }
  0x28   : > { %1922 = vmatpush3.bf16.msra.mxu1 %v1919_v15  ;;  %v1931_v28 = vpack.c.bf16 %v1728_v25, %v1727_v24  ;;  %v1935_v29 = vpack.c.bf16 %v1735_v27, %v1734_v26  ;;  %v1736_v30 = vld [vmem:[%s2217_s5 + $0x90] sm:$0xff]  ;;  %v1737_v31 = vld [vmem:[%s2217_s5 + $0x98] sm:$0xff]  ;;  %v1738_v36 = vld [vmem:[%s2217_s5 + $0xa0] sm:$0xff]  ;;  %s3468_s3 = smov 125   ;;  %s3404_s22 = sand.u32 1, %s2091_s13  }
  0x29   : > { %1924 = vmatprep.subr.bf16.mxu1 %v1923_v16  ;;  %v1939_v34 = vpack.c.bf16 %v1737_v31, %v1736_v30  ;;  %v1739_v37 = vld [vmem:[%s2217_s5 + $0xa8] sm:$0xff]  ;;  %v1740_v39 = vld [vmem:[%s2217_s5 + $0xb0] sm:$0xff]  ;;  %v1741_v40 = vld [vmem:[%s2217_s5 + $0xb8] sm:$0xff]  ;;  %v174_v31 = vlaneseq  ;;  %s1712_s16 = sshll.u32 %s3404_s22, 3 }
  0x2a   : > { %1910 = vmatpush3.bf16.msra.mxu0 %v1907_v8  ;;  %v1943_v38 = vpack.c.bf16 %v1739_v37, %v1738_v36  ;;  %v1947_v41 = vpack.c.bf16 %v1741_v40, %v1740_v39  ;;  %v1747_v42 = vld [vmem:[%s2217_s5 + $0xc0] sm:$0xff]  ;;  %v1748_v43 = vld [vmem:[%s2217_s5 + $0xc8] sm:$0xff]  ;;  %v1749_v45 = vld [vmem:[%s2217_s5 + $0xd0] sm:$0xff]  ;;  %s2970_s22 = scalar_lea.vmem [#allocation2], %s1712_s16  ;;  %s3558_s16 = sld [smem:[#allocation16_spill]] }
  0x2b   : > { %1912 = vmatprep.subr.bf16.mxu0 %v1911_v17  ;;  %v1951_v44 = vpack.c.bf16 %v1748_v43, %v1747_v42  ;;  %v1750_v46 = vld [vmem:[%s2217_s5 + $0xd8] sm:$0xff]  ;;  %v1751_v48 = vld [vmem:[%s2217_s5 + $0xe0] sm:$0xff]  ;;  %v1752_v49 = vld [vmem:[%s2217_s5 + $0xe8] sm:$0xff]  ;;  %v175_v37 = vand.u32 127, %v174_v31 }
  0x2c   : > { %1926 = vmatpush3.bf16.msra.mxu1 %v1923_v16  ;;  %v1955_v47 = vpack.c.bf16 %v1750_v46, %v1749_v45  ;;  %v1959_v50 = vpack.c.bf16 %v1752_v49, %v1751_v48  ;;  %v1753_v51 = vld [vmem:[%s2217_s5 + $0xf0] sm:$0xff]  ;;  %v1754_v52 = vld [vmem:[%s2217_s5 + $0xf8] sm:$0xff]  ;;  %s3333_s5 = smov 122  }
  0x2d   : > { %1928 = vmatprep.subr.bf16.mxu1 %v1927_v22  ;;  %v1963_v53 = vpack.c.bf16 %v1754_v52, %v1753_v51 }
  0x2e   : > { %1914 = vmatpush3.bf16.msra.mxu0 %v1911_v17 }
  0x2f   : > { %1916 = vmatprep.subr.bf16.mxu0 %v1915_v23 }
  0x30   : > { %1930 = vmatpush3.bf16.msra.mxu1 %v1927_v22 }
  0x31   : > { %1932 = vmatprep.subr.bf16.mxu1 %v1931_v28 }
  0x32   : > { %1918 = vmatpush3.bf16.msra.mxu0 %v1915_v23 }
  0x33   : > { %1936 = vmatprep.subr.bf16.mxu0 %v1935_v29 }
  0x34   : > { %1934 = vmatpush3.bf16.msra.mxu1 %v1931_v28 }
  0x35   : > { %1832 = vmatmul.mubr.msk.f32.vlgmr.msra.gmra.mrb[0].mxu0 %vm201_vm0, %v170_v32  ;;  %1952 = vmatprep.subr.bf16.mxu1 %v1951_v44 }
  0x36   : > { %1834 = vmatprep.mubr.msk.f32.mxu0 %vm201_vm0, %v171_v33  ;;  %1938 = vmatpush3.bf16.msra.mxu0 %v1935_v29 }
  0x37   : > { %1940 = vmatprep.subr.bf16.mxu0 %v1939_v34  ;;  %1854 = vmatmul.mubr.msk.f32.vlgmr.msra.gmra.mrb[0].mxu1 %vm201_vm0, %v170_v32 }
  0x38   : > { %1856 = vmatprep.mubr.msk.f32.mxu1 %vm201_vm0, %v171_v33  ;;  %1954 = vmatpush3.bf16.msra.mxu1 %v1951_v44 }
  0x39   : > { %1835 = vmatmul.mubr.msk.f32.gmra.mrb[2].mxu0 %vm201_vm0, %v172_v35  ;;  %1956 = vmatprep.subr.bf16.mxu1 %v1955_v47 }
  0x3a   : > { %1942 = vmatpush3.bf16.msra.mxu0 %v1939_v34  ;;  %1875 = vmatprep.mubr.msk.f32.mxu0 %vm201_vm0, %v2204_v0  ;;  %v177_v34 = vshrl.u32 %v174_v31, 7 }
  0x3b   : > { %1857 = vmatmul.mubr.msk.f32.gmra.mrb[2].mxu1 %vm201_vm0, %v172_v35  ;;  %1944 = vmatprep.subr.bf16.mxu0 %v1943_v38 }
  0x3c   : > { %1897 = vmatprep.mubr.msk.f32.mxu1 %vm201_vm0, %v2204_v0  ;;  %1958 = vmatpush3.bf16.msra.mxu1 %v1955_v47  ;;  %v179_v49 = vadd.s32 %v177_v34, %v175_v37 }
  0x3d   : > { %1960 = vmatprep.subr.bf16.mxu1 %v1959_v50 }
  0x3e   : > { %1946 = vmatpush3.bf16.msra.mxu0 %v1943_v38  ;;  %v2534_v38 = vadd.s32 8, %v177_v34 }
  0x3f   : > { %1948 = vmatprep.subr.bf16.mxu0 %v1947_v41 }
  0x40   : > { %1962 = vmatpush3.bf16.msra.mxu1 %v1959_v50 }
  0x41   : > { %1964 = vmatprep.subr.bf16.mxu1 %v1963_v53 }
  0x42   : > { %1950 = vmatpush3.bf16.msra.mxu0 %v1947_v41  ;;  %v180_v41 = vadd.s32 %v2534_v38, %v175_v37 }
  0x44   : > { %1966 = vmatpush3.bf16.msra.mxu1 %v1963_v53  ;;  %v1716_v46 = vadd.s32 4294967289, %v180_v41 }
  0x45   : > { %1876 = vmatmul.mubr.msk.f32.vlgmr.msra.gmra.mrb[4].mxu0 %vm201_vm0, %v170_v32 }
  0x46   : > { %1878 = vmatprep.mubr.msk.f32.mxu0 %vm201_vm0, %v171_v33 }
  0x47   : > { %1898 = vmatmul.mubr.msk.f32.vlgmr.msra.gmra.mrb[4].mxu1 %vm201_vm0, %v170_v32 }
  0x48   : > { %1900 = vmatprep.mubr.msk.f32.mxu1 %vm201_vm0, %v171_v33 }
  0x49   : > { %1879 = vmatmul.mubr.msk.f32.gmra.mrb[6].mxu0 %vm201_vm0, %v172_v35 }
  0x4b   : > { %1901 = vmatmul.mubr.msk.f32.gmra.mrb[6].mxu1 %vm201_vm0, %v172_v35  ;;  %vm3388_vm0 = vcmask 39936  }
  0x9e   : > { %v2408_v0 = vpop.permute.xlu0 %574 }
 0x108   : > { %v2276_v54 = vpop.f32.mrb[0].mxu0 }
 0x109   : > { %360 = vrot.lane.b32.xlu1 %v2276_v54, %s3367_s17  ;;  %357 = vrot.lane.b32.xlu0 %v2276_v54, %s3371_s19  ;;  %v2282_v55 = vpop.f32.mrb[1].mxu0 }
 0x10a   : > { %v2284_v56 = vpop.f32.mrb[0].mxu1 }
 0x10b   : > { %v2286_v57 = vpop.f32.mrb[1].mxu1 }
 0x10c   : > { %v2288_v58 = vpop.f32.mrb[2].mxu0 }
 0x10d   : > { %368 = vrot.lane.b32.xlu1 %v2276_v54, %s3343_s20  ;;  %365 = vrot.lane.b32.xlu0 %v2276_v54, %s3369_s24  ;;  %v2294_v59 = vpop.f32.mrb[3].mxu0 }
 0x10e   : > { %v2296_v60 = vpop.f32.mrb[2].mxu1 }
 0x10f   : > { %v2306_v61 = vpop.f32.mrb[3].mxu1 }
 0x111   : > { %376 = vrot.lane.b32.xlu1 %v2276_v54, %s3339_s25  ;;  %373 = vrot.lane.b32.xlu0 %v2276_v54, %s3365_s26 }
 0x115   : > { %384 = vrot.lane.b32.xlu1 %v2276_v54, %s3335_s27  ;;  %381 = vrot.lane.b32.xlu0 %v2276_v54, %s3341_s28 }
 0x118   : > { %v2384_v62 = vpop.f32.mrb[4].mxu0 }
 0x119   : > { %392 = vrot.lane.b32.xlu1 %v2276_v54, %s3331_s29  ;;  %389 = vrot.lane.b32.xlu0 %v2276_v54, %s3337_s30  ;;  %v2386_v63 = vpop.f32.mrb[5].mxu0 }
 0x11c   : > { %v2482_v19 = vpop.f32.mrb[6].mxu0 }
 0x11d   : > { %400 = vrot.lane.b32.xlu1 %v2276_v54, %s3327_s4  ;;  %397 = vrot.lane.b32.xlu0 %v2276_v54, %s3333_s5  ;;  %v2488_v20 = vpop.f32.mrb[7].mxu0 }
 0x121   : > { %408 = vrot.lane.b32.xlu1 %v2276_v54, %s3325_s6  ;;  %405 = vrot.lane.b32.xlu0 %v2276_v54, %s3329_s7 }
 0x125   : > { %730 = vrot.lane.b32.xlu1 %v2284_v56, %s3367_s17  ;;  %727 = vrot.lane.b32.xlu0 %v2284_v56, %s3371_s19 }
 0x129   : > { %737 = vrot.lane.b32.xlu1 %v2284_v56, %s3343_s20  ;;  %734 = vrot.lane.b32.xlu0 %v2284_v56, %s3369_s24  ;;  %s3349_s20 = smov 113  }
 0x12d   : > { %744 = vrot.lane.b32.xlu1 %v2284_v56, %s3339_s25  ;;  %741 = vrot.lane.b32.xlu0 %v2284_v56, %s3365_s26  ;;  %s3353_s25 = smov 114  }
 0x131   : > { %751 = vrot.lane.b32.xlu1 %v2284_v56, %s3335_s27  ;;  %748 = vrot.lane.b32.xlu0 %v2284_v56, %s3341_s28  ;;  %s3357_s27 = smov 115   ;;  %s3347_s28 = smov 1  }
 0x135   : > { %758 = vrot.lane.b32.xlu1 %v2284_v56, %s3331_s29  ;;  %755 = vrot.lane.b32.xlu0 %v2284_v56, %s3337_s30  ;;  %s3361_s29 = smov 116   ;;  %s3345_s30 = smov 2  }
 0x139   : > { %765 = vrot.lane.b32.xlu1 %v2284_v56, %s3327_s4  ;;  %762 = vrot.lane.b32.xlu0 %v2284_v56, %s3333_s5  ;;  %s3373_s4 = smov 117   ;;  %s3351_s5 = smov 3  }
 0x13d   : > { %772 = vrot.lane.b32.xlu1 %v2284_v56, %s3325_s6  ;;  %769 = vrot.lane.b32.xlu0 %v2284_v56, %s3329_s7  ;;  %s3359_s6 = smov 5   ;;  %s3355_s7 = smov 4  }
 0x141   : > { %308 = vrot.lane.b32.xlu1 %v2282_v55, %s3379_s8  ;;  %300 = vrot.lane.b32.xlu0 %v2282_v55, %s3381_s9 }
 0x145   : > { %311 = vrot.lane.b32.xlu1 %v2282_v55, %s3363_s10  ;;  %303 = vrot.lane.b32.xlu0 %v2282_v55, %s3375_s11 }
 0x149   : > { %319 = vrot.lane.b32.xlu1 %v2282_v55, %s3359_s6  ;;  %316 = vrot.lane.b32.xlu0 %v2282_v55, %s3373_s4 }
 0x14d   : > { %327 = vrot.lane.b32.xlu1 %v2282_v55, %s3355_s7  ;;  %324 = vrot.lane.b32.xlu0 %v2282_v55, %s3361_s29 }
 0x151   : > { %335 = vrot.lane.b32.xlu1 %v2282_v55, %s3351_s5  ;;  %332 = vrot.lane.b32.xlu0 %v2282_v55, %s3357_s27 }
 0x155   : > { %343 = vrot.lane.b32.xlu1 %v2282_v55, %s3345_s30  ;;  %340 = vrot.lane.b32.xlu0 %v2282_v55, %s3353_s25 }
 0x159   : > { %351 = vrot.lane.b32.xlu1 %v2282_v55, %s3347_s28  ;;  %348 = vrot.lane.b32.xlu0 %v2282_v55, %s3349_s20 }
 0x15d   : > { %677 = vrot.lane.b32.xlu1 %v2286_v57, %s3381_s9  ;;  %684 = vrot.lane.b32.xlu0 %v2286_v57, %s3379_s8 }
 0x161   : > { %680 = vrot.lane.b32.xlu1 %v2286_v57, %s3375_s11  ;;  %691 = vrot.lane.b32.xlu0 %v2286_v57, %s3373_s4 }
 0x165   : > { %687 = vrot.lane.b32.xlu1 %v2286_v57, %s3363_s10  ;;  %698 = vrot.lane.b32.xlu0 %v2286_v57, %s3361_s29  ;;  %s3432_s29 = smov 10   ;;  %s3433_s10 = smov 9  }
 0x169   : > { %694 = vrot.lane.b32.xlu1 %v2286_v57, %s3359_s6  ;;  %705 = vrot.lane.b32.xlu0 %v2286_v57, %s3357_s27  ;;  %s3430_s27 = smov 11   ;;  %s3431_s6 = smov 121  }
 0x16d   : > { %701 = vrot.lane.b32.xlu1 %v2286_v57, %s3355_s7  ;;  %712 = vrot.lane.b32.xlu0 %v2286_v57, %s3353_s25  ;;  %s3428_s25 = smov 12   ;;  %s3429_s7 = smov 122  }
 0x171   : > { %708 = vrot.lane.b32.xlu1 %v2286_v57, %s3351_s5  ;;  %719 = vrot.lane.b32.xlu0 %v2286_v57, %s3349_s20  ;;  %s3426_s20 = smov 13   ;;  %s3427_s5 = smov 123  }
 0x175   : > { %715 = vrot.lane.b32.xlu1 %v2286_v57, %s3345_s30  ;;  %497 = vrot.lane.b32.xlu0 %v2288_v58, %s3371_s19  ;;  %s3424_s30 = smov 14  }
 0x179   : > { %722 = vrot.lane.b32.xlu1 %v2286_v57, %s3347_s28  ;;  %504 = vrot.lane.b32.xlu0 %v2288_v58, %s3369_s24  ;;  %s3425_s28 = smov 124  }
 0x17b   : > { %v2414_v1 = vpop.permute.xlu1 %360  ;;  %v2416_v2 = vpop.permute.xlu0 %357 }
 0x17c   : > { %v364_v47 = vsel %vm3385_vm3, %v2416_v2, %v2414_v1  ;;  %vm190_vm3 = vcmp.lt.s32.totalorder %v1716_v46, 16 }
 0x17d   : > { %500 = vrot.lane.b32.xlu1 %v2288_v58, %s3367_s17  ;;  %511 = vrot.lane.b32.xlu0 %v2288_v58, %s3365_s26 }
 0x17f   : > { %v2422_v3 = vpop.permute.xlu1 %368  ;;  %v2424_v4 = vpop.permute.xlu0 %365 }
 0x180   : > { %v372_v42 = vsel %vm3395_vm1, %v2424_v4, %v2422_v3 }
 0x181   : > { %507 = vrot.lane.b32.xlu1 %v2288_v58, %s3424_s30  ;;  %518 = vrot.lane.b32.xlu0 %v2288_v58, %s3425_s28  ;;  %v427_v50 = vsel %vm3406_vm4, %v364_v47, %v372_v42 }
 0x183   : > { %v2430_v5 = vpop.permute.xlu1 %376  ;;  %v2432_v6 = vpop.permute.xlu0 %373 }
 0x184   : > { %v380_v45 = vsel %vm3386_vm2, %v2432_v6, %v2430_v5  ;;  %vm425_vm2 = vcmask 1046528  }
 0x185   : > { %514 = vrot.lane.b32.xlu1 %v2288_v58, %s3426_s20  ;;  %525 = vrot.lane.b32.xlu0 %v2288_v58, %s3427_s5  ;;  %v428_v52 = vsel %vm415_vm5, %v427_v50, %v380_v45 }
 0x187   : > { %v2438_v7 = vpop.permute.xlu1 %384  ;;  %v2440_v8 = vpop.permute.xlu0 %381 }
 0x188   : > { %v388_v48 = vsel %vm3377_vm6, %v2440_v8, %v2438_v7  ;;  %vm3390_vm6 = vcmask 31744   ;;  %v1715_v8 = vadd.s32 4294967289, %v179_v49 }
 0x189   : > { %521 = vrot.lane.b32.xlu1 %v2288_v58, %s3428_s25  ;;  %532 = vrot.lane.b32.xlu0 %v2288_v58, %s3429_s7  ;;  %v429_v3 = vsel %vm417_vm7, %v428_v52, %v388_v48 }
 0x18b   : > { %v2446_v9 = vpop.permute.xlu1 %392  ;;  %v2448_v10 = vpop.permute.xlu0 %389 }
 0x18c   : > { %v396_v51 = vsel %vm3378_vm8, %v2448_v10, %v2446_v9  ;;  %vm338_vm8 = vcmask 23552  }
 0x18d   : > { %528 = vrot.lane.b32.xlu1 %v2288_v58, %s3430_s27  ;;  %539 = vrot.lane.b32.xlu0 %v2288_v58, %s3431_s6  ;;  %v430_v5 = vsel %vm419_vm9, %v429_v3, %v396_v51 }
 0x18f   : > { %v2454_v11 = vpop.permute.xlu1 %400  ;;  %v2456_v12 = vpop.permute.xlu0 %397 }
 0x190   : > { %v404_v53 = vsel %vm3383_vm10, %v2456_v12, %v2454_v11  ;;  %vm184_vm10 = vcmp.lt.s32.totalorder %v2534_v38, 15 }
 0x191   : > { %535 = vrot.lane.b32.xlu1 %v2288_v58, %s3432_s29  ;;  %852 = vrot.lane.b32.xlu0 %v2296_v60, %s3371_s19  ;;  %s3437_s19 = smov 115   ;;  %v431_v9 = vsel %vm421_vm11, %v430_v5, %v404_v53 }
 0x193   : > { %v2462_v13 = vpop.permute.xlu1 %408  ;;  %v2464_v14 = vpop.permute.xlu0 %405 }
 0x194   : > { %v412_v4 = vsel %vm3384_vm12, %v2464_v14, %v2462_v13  ;;  %vm3391_vm12 = vcmask 15360  }
 0x195   : > { %542 = vrot.lane.b32.xlu1 %v2288_v58, %s3433_s10  ;;  %859 = vrot.lane.b32.xlu0 %v2296_v60, %s3369_s24  ;;  %s3436_s24 = smov 5   ;;  %v432_v11 = vsel %vm423_vm15, %v431_v9, %v412_v4 }
 0x197   : > { %v2470_v15 = vpop.permute.xlu1 %730  ;;  %v2472_v16 = vpop.permute.xlu0 %727 }
 0x199   : > { %855 = vrot.lane.b32.xlu1 %v2296_v60, %s3367_s17  ;;  %866 = vrot.lane.b32.xlu0 %v2296_v60, %s3365_s26  ;;  %s3434_s26 = smov 6   ;;  %s3435_s17 = smov 116  }
 0x19b   : > { %v2478_v17 = vpop.permute.xlu1 %737  ;;  %v2480_v18 = vpop.permute.xlu0 %734 }
 0x19d   : > { %862 = vrot.lane.b32.xlu1 %v2296_v60, %s3424_s30  ;;  %873 = vrot.lane.b32.xlu0 %v2296_v60, %s3425_s28 }
 0x19f   : > { %v2490_v21 = vpop.permute.xlu1 %744  ;;  %v2492_v22 = vpop.permute.xlu0 %741 }
 0x1a1   : > { %869 = vrot.lane.b32.xlu1 %v2296_v60, %s3426_s20  ;;  %880 = vrot.lane.b32.xlu0 %v2296_v60, %s3427_s5 }
 0x1a3   : > { %v2498_v23 = vpop.permute.xlu1 %751  ;;  %v2500_v24 = vpop.permute.xlu0 %748 }
 0x1a5   : > { %876 = vrot.lane.b32.xlu1 %v2296_v60, %s3428_s25  ;;  %887 = vrot.lane.b32.xlu0 %v2296_v60, %s3429_s7 }
 0x1a7   : > { %v2506_v25 = vpop.permute.xlu1 %758  ;;  %v2508_v26 = vpop.permute.xlu0 %755 }
 0x1a9   : > { %883 = vrot.lane.b32.xlu1 %v2296_v60, %s3430_s27  ;;  %894 = vrot.lane.b32.xlu0 %v2296_v60, %s3431_s6 }
 0x1ab   : > { %v2514_v27 = vpop.permute.xlu1 %765  ;;  %v2516_v28 = vpop.permute.xlu0 %762 }
 0x1ad   : > { %890 = vrot.lane.b32.xlu1 %v2296_v60, %s3432_s29  ;;  %447 = vrot.lane.b32.xlu0 %v2294_v59, %s3381_s9  ;;  %s3441_s9 = smov 113  }
 0x1af   : > { %v2522_v29 = vpop.permute.xlu1 %772  ;;  %v2524_v30 = vpop.permute.xlu0 %769 }
 0x1b1   : > { %897 = vrot.lane.b32.xlu1 %v2296_v60, %s3433_s10  ;;  %454 = vrot.lane.b32.xlu0 %v2294_v59, %s3379_s8  ;;  %s3440_s8 = smov 3  }
 0x1b3   : > { %v309_v32 = vpop.permute.xlu1 %308  ;;  %v301_v33 = vpop.permute.xlu0 %300 }
 0x1b5   : > { %450 = vrot.lane.b32.xlu1 %v2294_v59, %s3375_s11  ;;  %461 = vrot.lane.b32.xlu0 %v2294_v59, %s3373_s4  ;;  %s3438_s4 = smov 4   ;;  %s3439_s11 = smov 114  }
 0x1b7   : > { %v312_v35 = vpop.permute.xlu1 %311  ;;  %v304_v36 = vpop.permute.xlu0 %303 }
 0x1b8   : > { %v315_v6 = vsel %vm3389_vm13, %v309_v32, %v312_v35  ;;  %v307_v7 = vsel %vm3387_vm14, %v301_v33, %v304_v36  ;;  %vm354_vm14 = vcmask 7168   ;;  %vm189_vm13 = vcmp.lt.s32.totalorder %v1715_v8, 16 }
 0x1b9   : > { %457 = vrot.lane.b32.xlu1 %v2294_v59, %s3434_s26  ;;  %468 = vrot.lane.b32.xlu0 %v2294_v59, %s3435_s17  ;;  %v414_v31 = vsel %vm3406_vm4, %v307_v7, %v315_v6  ;;  %v433_v36 = vsel %vm425_vm2, %v432_v11, %v2276_v54  ;;  %v740_v6 = vsel %vm3395_vm1, %v2480_v18, %v2478_v17  ;;  %vm3455_vm1 = vcmask 89088  }
 0x1ba   : > { %v761_v18 = vsel %vm3455_vm1, %v2508_v26, %v2506_v25  ;;  %vm3459_vm1 = vcmask 39936  }
 0x1bb   : > { %v320_v39 = vpop.permute.xlu1 %319  ;;  %v317_v40 = vpop.permute.xlu0 %316 }
 0x1bc   : > { %v323_v10 = vsel %vm3388_vm0, %v317_v40, %v320_v39  ;;  %vm185_vm0 = vcmp.ge.s32.totalorder %v1715_v8, 0 }
 0x1bd   : > { %464 = vrot.lane.b32.xlu1 %v2294_v59, %s3436_s24  ;;  %475 = vrot.lane.b32.xlu0 %v2294_v59, %s3437_s19  ;;  %v416_v33 = vsel %vm415_vm5, %v414_v31, %v323_v10 }
 0x1bf   : > { %v328_v43 = vpop.permute.xlu1 %327  ;;  %v325_v44 = vpop.permute.xlu0 %324 }
 0x1c0   : > { %v331_v12 = vsel %vm3390_vm6, %v325_v44, %v328_v43  ;;  %vm2596_vm6 = vmand %vm184_vm10, %vm190_vm3  ;;  %vm3396_vm3 = vcmask 130048   ;;  %vm3452_vm10 = vcmask 105472  }
 0x1c1   : > { %471 = vrot.lane.b32.xlu1 %v2294_v59, %s3438_s4  ;;  %482 = vrot.lane.b32.xlu0 %v2294_v59, %s3439_s11  ;;  %v418_v37 = vsel %vm417_vm7, %v416_v33, %v331_v12  ;;  %v435_v44 = vsel %vm2596_vm6, %v433_v36, 0.0  ;;  %v747_v9 = vsel %vm3452_vm10, %v2492_v22, %v2490_v21  ;;  %vm3456_vm10 = vcmask 80896  }
 0x1c2   : > { %v438_v49 = vsel %vm3396_vm3, %v435_v44, 0.0 }
 0x1c3   : > { %v336_v1 = vpop.permute.xlu1 %335  ;;  %v333_v2 = vpop.permute.xlu0 %332 }
 0x1c4   : > { %v339_v32 = vsel %vm338_vm8, %v333_v2, %v336_v1 }
 0x1c5   : > { %478 = vrot.lane.b32.xlu1 %v2294_v59, %s3440_s8  ;;  %489 = vrot.lane.b32.xlu0 %v2294_v59, %s3441_s9  ;;  %v420_v39 = vsel %vm419_vm9, %v418_v37, %v339_v32 }
 0x1c7   : > { %v344_v13 = vpop.permute.xlu1 %343  ;;  %v341_v14 = vpop.permute.xlu0 %340 }
 0x1c8   : > { %v347_v34 = vsel %vm3391_vm12, %v341_v14, %v344_v13  ;;  %vm2605_vm12 = vmand %vm185_vm0, %vm189_vm13  ;;  %vm3453_vm13 = vcmask 121856   ;;  %vm3454_vm0 = vcmask 97280  }
 0x1c9   : > { %485 = vrot.lane.b32.xlu1 %v2294_v59, %s3442_s0  ;;  %802 = vrot.lane.b32.xlu0 %v2306_v61, %s3443_s1  ;;  %v422_v42 = vsel %vm421_vm11, %v420_v39, %v347_v34  ;;  %v733_v10 = vsel %vm3453_vm13, %v2472_v16, %v2470_v15  ;;  %v754_v11 = vsel %vm3454_vm0, %v2500_v24, %v2498_v23  ;;  %vm3457_vm13 = vcmask 72704  }
 0x1ca   : > { %v783_v17 = vsel %vm3406_vm4, %v733_v10, %v740_v6  ;;  %v768_v15 = vsel %vm3456_vm10, %v2516_v28, %v2514_v27  ;;  %v775_v24 = vsel %vm3457_vm13, %v2524_v30, %v2522_v29  ;;  %vm3458_vm0 = vcmask 48128  }
 0x1cb   : > { %v352_v40 = vpop.permute.xlu1 %351  ;;  %v349_v41 = vpop.permute.xlu0 %348  ;;  %v784_v21 = vsel %vm415_vm5, %v783_v17, %v747_v9  ;;  %vm3460_vm10 = vcmask 56320   ;;  %vm3462_vm13 = vcmask 15360  }
 0x1cc   : > { %v355_v38 = vsel %vm354_vm14, %v349_v41, %v352_v40  ;;  %v785_v23 = vsel %vm417_vm7, %v784_v21, %v754_v11 }
 0x1cd   : > { %v424_v54 = vsel %vm423_vm15, %v422_v42, %v355_v38  ;;  %492 = vrot.lane.b32.xlu1 %v2294_v59, %s3448_s2  ;;  %809 = vrot.lane.b32.xlu0 %v2306_v61, %s3449_s21  ;;  %v786_v12 = vsel %vm419_vm9, %v785_v23, %v761_v18 }
 0x1ce   : > { %v426_v45 = vsel %vm425_vm2, %v424_v54, %v2282_v55  ;;  %v2629_v55 = vpop.f32.mrb[4].mxu1  ;;  %v787_v25 = vsel %vm421_vm11, %v786_v12, %v768_v15 }
 0x1cf   : > { %v434_v46 = vsel %vm2605_vm12, %v426_v45, 0.0  ;;  %v678_v47 = vpop.permute.xlu1 %677  ;;  %v685_v48 = vpop.permute.xlu0 %684  ;;  %v788_v27 = vsel %vm423_vm15, %v787_v25, %v775_v24 }
 0x1d0   : > { %v437_v50 = vsel %vm3396_vm3, %v434_v46, 0.0  ;;  %v2635_v1 = vpop.f32.mrb[5].mxu1  ;;  %vm3461_vm3 = vcmask 31744   ;;  %v789_v36 = vsel %vm425_vm2, %v788_v27, %v2284_v56 }
 0x1d1   : > { %v2623_v51 = vadd.f32 %v438_v49, %v437_v50  ;;  %805 = vrot.lane.b32.xlu1 %v2306_v61, %s3450_s14  ;;  %816 = vrot.lane.b32.xlu0 %v2306_v61, %s3451_s18  ;;  %v791_v44 = vsel %vm2596_vm6, %v789_v36, 0.0 }
 0x1d3   : > { %v681_v52 = vpop.permute.xlu1 %680  ;;  %v692_v53 = vpop.permute.xlu0 %691 }
 0x1d4   : > { %v683_v28 = vsel %vm3460_vm10, %v678_v47, %v681_v52  ;;  %vm3470_vm10 = vcmask 105472  }
 0x1d5   : > { %812 = vrot.lane.b32.xlu1 %v2306_v61, %s3434_s26  ;;  %823 = vrot.lane.b32.xlu0 %v2306_v61, %s3435_s17 }
 0x1d7   : > { %v688_v2 = vpop.permute.xlu1 %687  ;;  %v699_v3 = vpop.permute.xlu0 %698 }
 0x1d8   : > { %v690_v13 = vsel %vm3458_vm0, %v685_v48, %v688_v2 }
 0x1d9   : > { %819 = vrot.lane.b32.xlu1 %v2306_v61, %s3436_s24  ;;  %830 = vrot.lane.b32.xlu0 %v2306_v61, %s3437_s19  ;;  %v776_v31 = vsel %vm3406_vm4, %v683_v28, %v690_v13 }
 0x1db   : > { %v695_v4 = vpop.permute.xlu1 %694  ;;  %v706_v5 = vpop.permute.xlu0 %705 }
 0x1dc   : > { %v697_v26 = vsel %vm3459_vm1, %v692_v53, %v695_v4  ;;  %v2729_v53 = vpop.f32.mrb[6].mxu1  ;;  %vm3469_vm1 = vcmask 113664  }
 0x1dd   : > { %826 = vrot.lane.b32.xlu1 %v2306_v61, %s3438_s4  ;;  %837 = vrot.lane.b32.xlu0 %v2306_v61, %s3439_s11  ;;  %v777_v33 = vsel %vm415_vm5, %v776_v31, %v697_v26  ;;  %v2735_v2 = vpop.f32.mrb[7].mxu1 }
 0x1df   : > { %v702_v7 = vpop.permute.xlu1 %701  ;;  %v713_v8 = vpop.permute.xlu0 %712 }
 0x1e0   : > { %v704_v29 = vsel %vm3461_vm3, %v699_v3, %v702_v7  ;;  %vm3463_vm3 = vcmask 130048  }
 0x1e1   : > { %833 = vrot.lane.b32.xlu1 %v2306_v61, %s3440_s8  ;;  %844 = vrot.lane.b32.xlu0 %v2306_v61, %s3441_s9  ;;  %v778_v37 = vsel %vm417_vm7, %v777_v33, %v704_v29  ;;  %v793_v48 = vsel %vm3463_vm3, %v791_v44, 0.0  ;;  %vm3464_vm0 = vmmov %vm3463_vm3  ;;  %vm3472_vm3 = vcmask 97280  }
 0x1e3   : > { %v709_v16 = vpop.permute.xlu1 %708  ;;  %v720_v22 = vpop.permute.xlu0 %719 }
 0x1e4   : > { %v711_v32 = vsel %vm338_vm8, %v706_v5, %v709_v16 }
 0x1e5   : > { %840 = vrot.lane.b32.xlu1 %v2306_v61, %s3442_s0  ;;  %1027 = vrot.lane.b32.xlu0 %v2386_v63, %s3443_s1  ;;  %v779_v39 = vsel %vm419_vm9, %v778_v37, %v711_v32 }
 0x1e7   : > { %v716_v30 = vpop.permute.xlu1 %715  ;;  %v2684_v14 = vpop.permute.xlu0 %497 }
 0x1e8   : > { %v718_v34 = vsel %vm3462_vm13, %v713_v8, %v716_v30  ;;  %vm3471_vm13 = vcmask 121856  }
 0x1e9   : > { %847 = vrot.lane.b32.xlu1 %v2306_v61, %s3448_s2  ;;  %1034 = vrot.lane.b32.xlu0 %v2386_v63, %s3449_s21  ;;  %v780_v42 = vsel %vm421_vm11, %v779_v39, %v718_v34 }
 0x1eb   : > { %v723_v40 = vpop.permute.xlu1 %722  ;;  %v2698_v41 = vpop.permute.xlu0 %504 }
 0x1ec   : > { %v725_v38 = vsel %vm354_vm14, %v720_v22, %v723_v40 }
 0x1ed   : > { %v781_v54 = vsel %vm423_vm15, %v780_v42, %v725_v38  ;;  %1030 = vrot.lane.b32.xlu1 %v2386_v63, %s3450_s14  ;;  %1041 = vrot.lane.b32.xlu0 %v2386_v63, %s3451_s18 }
 0x1ee   : > { %v782_v56 = vsel %vm425_vm2, %v781_v54, %v2286_v57 }
 0x1ef   : > { %v790_v45 = vsel %vm2605_vm12, %v782_v56, 0.0  ;;  %v2713_v46 = vpop.permute.xlu1 %500  ;;  %v2715_v47 = vpop.permute.xlu0 %511 }
 0x1f0   : > { %v792_v49 = vsel %vm3464_vm0, %v790_v45, 0.0  ;;  %v503_v38 = vsel %vm3471_vm13, %v2684_v14, %v2713_v46  ;;  %vm3473_vm0 = vcmask 89088   ;;  %vm3476_vm13 = vcmask 48128  }
 0x1f1   : > { %v2719_v50 = vadd.f32 %v793_v48, %v792_v49  ;;  %1037 = vrot.lane.b32.xlu1 %v2386_v63, %s3434_s26  ;;  %1048 = vrot.lane.b32.xlu0 %v2386_v63, %s3435_s17 }
 0x1f3   : > { %v2725_v57 = vpop.permute.xlu1 %507  ;;  %v2727_v52 = vpop.permute.xlu0 %518 }
 0x1f4   : > { %v510_v37 = vsel %vm3469_vm1, %v2698_v41, %v2725_v57  ;;  %vm3474_vm1 = vcmask 80896  }
 0x1f5   : > { %1044 = vrot.lane.b32.xlu1 %v2386_v63, %s3436_s24  ;;  %1055 = vrot.lane.b32.xlu0 %v2386_v63, %s3437_s19  ;;  %v553_v41 = vsel %vm3406_vm4, %v503_v38, %v510_v37 }
 0x1f7   : > { %v2737_v3 = vpop.permute.xlu1 %514  ;;  %v2739_v4 = vpop.permute.xlu0 %525 }
 0x1f8   : > { %v517_v42 = vsel %vm3470_vm10, %v2715_v47, %v2737_v3  ;;  %vm3475_vm10 = vcmask 72704  }
 0x1f9   : > { %1051 = vrot.lane.b32.xlu1 %v2386_v63, %s3438_s4  ;;  %1062 = vrot.lane.b32.xlu0 %v2386_v63, %s3439_s11  ;;  %v554_v56 = vsel %vm415_vm5, %v553_v41, %v517_v42 }
 0x1fb   : > { %v522_v5 = vpop.permute.xlu1 %521  ;;  %v2745_v6 = vpop.permute.xlu0 %532 }
 0x1fc   : > { %v524_v44 = vsel %vm3472_vm3, %v2727_v52, %v522_v5  ;;  %vm3477_vm3 = vcmask 39936  }
 0x1fd   : > { %1058 = vrot.lane.b32.xlu1 %v2386_v63, %s3440_s8  ;;  %1069 = vrot.lane.b32.xlu0 %v2386_v63, %s3441_s9  ;;  %v555_v47 = vsel %vm417_vm7, %v554_v56, %v524_v44 }
 0x1ff   : > { %v529_v7 = vpop.permute.xlu1 %528  ;;  %v2751_v8 = vpop.permute.xlu0 %539 }
 0x200   : > { %v531_v54 = vsel %vm3473_vm0, %v2739_v4, %v529_v7  ;;  %vm3478_vm0 = vcmask 56320  }
 0x201   : > { %1065 = vrot.lane.b32.xlu1 %v2386_v63, %s3442_s0  ;;  %1077 = vrot.lane.b32.xlu0 %v2384_v62, %s3465_s23  ;;  %v556_v49 = vsel %vm419_vm9, %v555_v47, %v531_v54 }
 0x203   : > { %v536_v9 = vpop.permute.xlu1 %535  ;;  %v2757_v10 = vpop.permute.xlu0 %852 }
 0x204   : > { %v538_v45 = vsel %vm3474_vm1, %v2745_v6, %v536_v9  ;;  %vm3479_vm1 = vcmask 31744   ;;  %v440_v9 = vrot.slane %v2623_v51, 4 }
 0x205   : > { %1072 = vrot.lane.b32.xlu1 %v2386_v63, %s3448_s2  ;;  %1084 = vrot.lane.b32.xlu0 %v2384_v62, %s3466_s12  ;;  %v557_v52 = vsel %vm421_vm11, %v556_v49, %v538_v45 }
 0x207   : > { %v543_v11 = vpop.permute.xlu1 %542  ;;  %v2763_v17 = vpop.permute.xlu0 %859 }
 0x208   : > { %v545_v48 = vsel %vm3475_vm10, %v2751_v8, %v543_v11  ;;  %vm3480_vm10 = vcmask 15360  }
 0x209   : > { %1080 = vrot.lane.b32.xlu1 %v2384_v62, %s3467_s15  ;;  %1091 = vrot.lane.b32.xlu0 %v2384_v62, %s3468_s3  ;;  %v558_v4 = vsel %vm423_vm15, %v557_v52, %v545_v48 }
 0x20b   : > { %v2769_v18 = vpop.permute.xlu1 %855  ;;  %v2771_v21 = vpop.permute.xlu0 %866 }
 0x20d   : > { %1087 = vrot.lane.b32.xlu1 %v2384_v62, %s3424_s30  ;;  %1098 = vrot.lane.b32.xlu0 %v2384_v62, %s3425_s28 }
 0x20f   : > { %v2777_v15 = vpop.permute.xlu1 %862  ;;  %v2779_v16 = vpop.permute.xlu0 %873 }
 0x211   : > { %1094 = vrot.lane.b32.xlu1 %v2384_v62, %s3426_s20  ;;  %1105 = vrot.lane.b32.xlu0 %v2384_v62, %s3427_s5 }
 0x213   : > { %v2785_v22 = vpop.permute.xlu1 %869  ;;  %v2787_v23 = vpop.permute.xlu0 %880 }
 0x215   : > { %1101 = vrot.lane.b32.xlu1 %v2384_v62, %s3428_s25  ;;  %1112 = vrot.lane.b32.xlu0 %v2384_v62, %s3429_s7 }
 0x217   : > { %v2793_v24 = vpop.permute.xlu1 %876  ;;  %v2795_v12 = vpop.permute.xlu0 %887 }
 0x219   : > { %1108 = vrot.lane.b32.xlu1 %v2384_v62, %s3430_s27  ;;  %1119 = vrot.lane.b32.xlu0 %v2384_v62, %s3431_s6 }
 0x21b   : > { %v2801_v13 = vpop.permute.xlu1 %883  ;;  %v2803_v25 = vpop.permute.xlu0 %894 }
 0x21d   : > { %1115 = vrot.lane.b32.xlu1 %v2384_v62, %s3432_s29  ;;  %1152 = vrot.lane.b32.xlu0 %v2488_v20, %s3443_s1 }
 0x21f   : > { %v2809_v26 = vpop.permute.xlu1 %890  ;;  %v448_v27 = vpop.permute.xlu0 %447 }
 0x221   : > { %1122 = vrot.lane.b32.xlu1 %v2384_v62, %s3433_s10  ;;  %1159 = vrot.lane.b32.xlu0 %v2488_v20, %s3449_s21 }
 0x223   : > { %v2815_v28 = vpop.permute.xlu1 %897  ;;  %v455_v29 = vpop.permute.xlu0 %454 }
 0x225   : > { %1155 = vrot.lane.b32.xlu1 %v2488_v20, %s3450_s14  ;;  %1166 = vrot.lane.b32.xlu0 %v2488_v20, %s3451_s18 }
 0x227   : > { %v451_v30 = vpop.permute.xlu1 %450  ;;  %v462_v31 = vpop.permute.xlu0 %461 }
 0x228   : > { %v453_v5 = vsel %vm3478_vm0, %v448_v27, %v451_v30  ;;  %v559_v27 = vsel %vm425_vm2, %v558_v4, %v2288_v58  ;;  %vm3483_vm0 = vcmask 113664  }
 0x229   : > { %1162 = vrot.lane.b32.xlu1 %v2488_v20, %s3434_s26  ;;  %1173 = vrot.lane.b32.xlu0 %v2488_v20, %s3435_s17  ;;  %v561_v42 = vsel %vm2596_vm6, %v559_v27, 0.0 }
 0x22b   : > { %v458_v32 = vpop.permute.xlu1 %457  ;;  %v469_v33 = vpop.permute.xlu0 %468 }
 0x22c   : > { %v460_v57 = vsel %vm3476_vm13, %v455_v29, %v458_v32  ;;  %vm3481_vm13 = vcmask 130048  }
 0x22d   : > { %1169 = vrot.lane.b32.xlu1 %v2488_v20, %s3436_s24  ;;  %1180 = vrot.lane.b32.xlu0 %v2488_v20, %s3437_s19  ;;  %v546_v11 = vsel %vm3406_vm4, %v453_v5, %v460_v57  ;;  %v563_v56 = vsel %vm3481_vm13, %v561_v42, 0.0 }
 0x22f   : > { %v465_v34 = vpop.permute.xlu1 %464  ;;  %v476_v36 = vpop.permute.xlu0 %475 }
 0x230   : > { %v467_v3 = vsel %vm3477_vm3, %v462_v31, %v465_v34  ;;  %vm3482_vm3 = vmmov %vm3481_vm13  ;;  %vm3486_vm13 = vcmask 97280  }
 0x231   : > { %1176 = vrot.lane.b32.xlu1 %v2488_v20, %s3438_s4  ;;  %1187 = vrot.lane.b32.xlu0 %v2488_v20, %s3439_s11  ;;  %v547_v32 = vsel %vm415_vm5, %v546_v11, %v467_v3  ;;  %v879_v27 = vsel %vm3486_vm13, %v2779_v16, %v2793_v24  ;;  %vm3491_vm13 = vcmask 39936  }
 0x233   : > { %v472_v39 = vpop.permute.xlu1 %471  ;;  %v483_v40 = vpop.permute.xlu0 %482 }
 0x234   : > { %v474_v6 = vsel %vm3479_vm1, %v469_v33, %v472_v39  ;;  %vm3484_vm1 = vcmask 105472  }
 0x235   : > { %1183 = vrot.lane.b32.xlu1 %v2488_v20, %s3440_s8  ;;  %1194 = vrot.lane.b32.xlu0 %v2488_v20, %s3441_s9  ;;  %v548_v30 = vsel %vm417_vm7, %v547_v32, %v474_v6  ;;  %v865_v6 = vsel %vm3483_vm0, %v2763_v17, %v2777_v15  ;;  %v872_v32 = vsel %vm3484_vm1, %v2771_v21, %v2785_v22  ;;  %vm3488_vm0 = vcmask 80896  }
 0x236   : > { %vm3489_vm1 = vcmask 72704  }
 0x237   : > { %v479_v14 = vpop.permute.xlu1 %478  ;;  %v490_v46 = vpop.permute.xlu0 %489 }
 0x238   : > { %v481_v29 = vsel %vm338_vm8, %v476_v36, %v479_v14  ;;  %v441_v36 = vadd.f32 %v440_v9, %v2623_v51 }
 0x239   : > { %1190 = vrot.lane.b32.xlu1 %v2488_v20, %s3442_s0  ;;  %1202 = vrot.lane.b32.xlu0 %v2482_v19, %s3465_s23  ;;  %v549_v31 = vsel %vm419_vm9, %v548_v30, %v481_v29 }
 0x23a   : > { %v442_v54 = vrot.slane %v441_v36, 2 }
 0x23b   : > { %v486_v7 = vpop.permute.xlu1 %485  ;;  %v2868_v8 = vpop.permute.xlu0 %802 }
 0x23c   : > { %v488_v37 = vsel %vm3480_vm10, %v483_v40, %v486_v7  ;;  %v443_v48 = vadd.f32 %v442_v54, %v441_v36  ;;  %vm3485_vm10 = vcmask 121856  }
 0x23d   : > { %1197 = vrot.lane.b32.xlu1 %v2488_v20, %s3448_s2  ;;  %1209 = vrot.lane.b32.xlu0 %v2482_v19, %s3466_s12  ;;  %v550_v39 = vsel %vm421_vm11, %v549_v31, %v488_v37  ;;  %v858_v37 = vsel %vm3485_vm10, %v2757_v10, %v2769_v18  ;;  %v893_v18 = vsel %vm3488_vm0, %v2795_v12, %v2809_v26  ;;  %vm3490_vm10 = vcmask 48128  }
 0x23e   : > { %v444_v4 = vrot.slane %v443_v48, 1  ;;  %v908_v17 = vsel %vm3406_vm4, %v858_v37, %v865_v6  ;;  %v900_v31 = vsel %vm3489_vm1, %v2803_v25, %v2815_v28  ;;  %vm3493_vm0 = vcmask 31744  }
 0x23f   : > { %v493_v33 = vpop.permute.xlu1 %492  ;;  %v810_v34 = vpop.permute.xlu0 %809  ;;  %v909_v10 = vsel %vm415_vm5, %v908_v17, %v872_v32  ;;  %vm3405_vm1 = vcmask 123904  }
 0x240   : > { %v495_v40 = vsel %vm354_vm14, %v490_v46, %v493_v33  ;;  %v445_v29 = vadd.f32 %v444_v4, %v443_v48  ;;  %v910_v24 = vsel %vm417_vm7, %v909_v10, %v879_v27 }
 0x241   : > { %v551_v38 = vsel %vm423_vm15, %v550_v39, %v495_v40  ;;  %1205 = vrot.lane.b32.xlu1 %v2482_v19, %s3467_s15  ;;  %1216 = vrot.lane.b32.xlu0 %v2482_v19, %s3468_s3 }
 0x242   : > { %v552_v58 = vsel %vm425_vm2, %v551_v38, %v2294_v59 }
 0x243   : > { %v560_v51 = vsel %vm2605_vm12, %v552_v58, 0.0  ;;  %v806_v44 = vpop.permute.xlu1 %805  ;;  %v817_v41 = vpop.permute.xlu0 %816 }
 0x244   : > { %v562_v45 = vsel %vm3482_vm3, %v560_v51, 0.0  ;;  %vm3487_vm3 = vcmask 89088   ;;  %v795_v51 = vrot.slane %v2719_v50, 4 }
 0x245   : > { %v564_v14 = vadd.f32 %v563_v56, %v562_v45  ;;  %1212 = vrot.lane.b32.xlu1 %v2482_v19, %s3424_s30  ;;  %1223 = vrot.lane.b32.xlu0 %v2482_v19, %s3425_s28  ;;  %v886_v21 = vsel %vm3487_vm3, %v2787_v23, %v2801_v13  ;;  %vm3492_vm3 = vcmask 56320  }
 0x246   : > { %v911_v23 = vsel %vm419_vm9, %v910_v24, %v886_v21  ;;  %v808_v28 = vsel %vm3492_vm3, %v2868_v8, %v806_v44 }
 0x247   : > { %v565_v46 = vrot.slane %v564_v14, 4  ;;  %v813_v47 = vpop.permute.xlu1 %812  ;;  %v824_v59 = vpop.permute.xlu0 %823  ;;  %v912_v12 = vsel %vm421_vm11, %v911_v23, %v893_v18 }
 0x248   : > { %v815_v13 = vsel %vm3490_vm10, %v810_v34, %v813_v47  ;;  %v913_v25 = vsel %vm423_vm15, %v912_v12, %v900_v31  ;;  %vm3494_vm10 = vcmask 15360  }
 0x249   : > { %v566_v49 = vadd.f32 %v565_v46, %v564_v14  ;;  %1219 = vrot.lane.b32.xlu1 %v2482_v19, %s3426_s20  ;;  %1230 = vrot.lane.b32.xlu0 %v2482_v19, %s3427_s5  ;;  %v901_v38 = vsel %vm3406_vm4, %v808_v28, %v815_v13  ;;  %v914_v8 = vsel %vm425_vm2, %v913_v25, %v2296_v60 }
 0x24a   : > { %v916_v60 = vsel %vm2596_vm6, %v914_v8, 0.0 }
 0x24b   : > { %v567_v57 = vrot.slane %v566_v49, 2  ;;  %v820_v52 = vpop.permute.xlu1 %819  ;;  %v831_v3 = vpop.permute.xlu0 %830 }
 0x24c   : > { %v822_v36 = vsel %vm3491_vm13, %v817_v41, %v820_v52  ;;  %vm3495_vm13 = vcmask 130048  }
 0x24d   : > { %v568_v5 = vadd.f32 %v567_v57, %v566_v49  ;;  %1226 = vrot.lane.b32.xlu1 %v2482_v19, %s3428_s25  ;;  %1237 = vrot.lane.b32.xlu0 %v2482_v19, %s3429_s7  ;;  %v902_v41 = vsel %vm415_vm5, %v901_v38, %v822_v36  ;;  %vm3496_vm3 = vmmov %vm3495_vm13 }
 0x24f   : > { %v569_v7 = vrot.slane %v568_v5, 1  ;;  %v827_v9 = vpop.permute.xlu1 %826  ;;  %v838_v11 = vpop.permute.xlu0 %837 }
 0x250   : > { %v829_v39 = vsel %vm3493_vm0, %v824_v59, %v827_v9  ;;  %v796_v59 = vadd.f32 %v795_v51, %v2719_v50  ;;  %vm3497_vm0 = vcmask 121856  }
 0x251   : > { %v570_v30 = vadd.f32 %v569_v7, %v568_v5  ;;  %1233 = vrot.lane.b32.xlu1 %v2482_v19, %s3430_s27  ;;  %1244 = vrot.lane.b32.xlu0 %v2482_v19, %s3431_s6  ;;  %v903_v44 = vsel %vm417_vm7, %v902_v41, %v829_v39 }
 0x252   : > { %v797_v5 = vrot.slane %v796_v59, 2 }
 0x253   : > { %v571_v15 = vsel %vm3406_vm4, %v445_v29, %v570_v30  ;;  %v834_v16 = vpop.permute.xlu1 %833  ;;  %v845_v22 = vpop.permute.xlu0 %844 }
 0x254   : > { %v577_v33 = vadd.f32 %v2408_v0, %v571_v15  ;;  %v836_v58 = vsel %vm338_vm8, %v831_v3, %v834_v16  ;;  %v918_v3 = vsel %vm3495_vm13, %v916_v60, 0.0  ;;  %vm3499_vm13 = vcmask 105472  }
 0x255   : > { %1240 = vrot.lane.b32.xlu1 %v2482_v19, %s3432_s29  ;;  %1377 = vrot.lane.b32.xlu0 %v2635_v1, %s3443_s1  ;;  %v904_v56 = vsel %vm419_vm9, %v903_v44, %v836_v58 }
 0x256   : > { %v578_v26 = vmax.f32 %v577_v33, 0.0 }
 0x257   : > { %v841_v40 = vpop.permute.xlu1 %840  ;;  %v2956_v34 = vpop.permute.xlu0 %1027 }
 0x258   : > { %v579_v42 = vmin.f32 %v578_v26, 1.0  ;;  %v843_v54 = vsel %vm3494_vm10, %v838_v11, %v841_v40  ;;  %v798_v11 = vadd.f32 %v797_v5, %v796_v59  ;;  %vm3498_vm10 = vcmask 113664  }
 0x259   : > { %1247 = vrot.lane.b32.xlu1 %v2482_v19, %s3433_s10  ;;  %1384 = vrot.lane.b32.xlu0 %v2635_v1, %s3449_s21  ;;  %v905_v46 = vsel %vm421_vm11, %v904_v56, %v843_v54 }
 0x25a   : > { %581 = vst.msk [vmem:[%s2970_s22] sm:$0x3] %vm3405_vm1, %v579_v42  ;;  %v799_v30 = vrot.slane %v798_v11, 1 }
 0x25b   : > { %v848_v45 = vpop.permute.xlu1 %847  ;;  %v2975_v14 = vpop.permute.xlu0 %1034 }
 0x25c   : > { %v850_v47 = vsel %vm354_vm14, %v845_v22, %v848_v45  ;;  %v800_v15 = vadd.f32 %v799_v30, %v798_v11 }
 0x25d   : > { %v906_v48 = vsel %vm423_vm15, %v905_v46, %v850_v47  ;;  %1380 = vrot.lane.b32.xlu1 %v2635_v1, %s3450_s14  ;;  %1391 = vrot.lane.b32.xlu0 %v2635_v1, %s3451_s18 }
 0x25e   : > { %v907_v49 = vsel %vm425_vm2, %v906_v48, %v2306_v61 }
 0x25f   : > { %v915_v57 = vsel %vm2605_vm12, %v907_v49, 0.0  ;;  %v2991_v52 = vpop.permute.xlu1 %1030  ;;  %v2993_v50 = vpop.permute.xlu0 %1041 }
 0x260   : > { %v917_v4 = vsel %vm3496_vm3, %v915_v57, 0.0  ;;  %vm3500_vm3 = vcmask 48128  }
 0x261   : > { %v919_v6 = vadd.f32 %v918_v3, %v917_v4  ;;  %1387 = vrot.lane.b32.xlu1 %v2635_v1, %s3434_s26  ;;  %1398 = vrot.lane.b32.xlu0 %v2635_v1, %s3435_s17 }
 0x263   : > { %v920_v61 = vrot.slane %v919_v6, 4  ;;  %v1038_v7 = vpop.permute.xlu1 %1037  ;;  %v1049_v9 = vpop.permute.xlu0 %1048 }
 0x264   : > { %v1040_v56 = vsel %vm3500_vm3, %v2975_v14, %v1038_v7  ;;  %vm3505_vm3 = vcmask 15360  }
 0x265   : > { %v921_v29 = vadd.f32 %v920_v61, %v919_v6  ;;  %1394 = vrot.lane.b32.xlu1 %v2635_v1, %s3436_s24  ;;  %1405 = vrot.lane.b32.xlu0 %v2635_v1, %s3437_s19 }
 0x267   : > { %v922_v32 = vrot.slane %v921_v29, 2  ;;  %v1045_v37 = vpop.permute.xlu1 %1044  ;;  %v1056_v27 = vpop.permute.xlu0 %1055 }
 0x269   : > { %v923_v17 = vadd.f32 %v922_v32, %v921_v29  ;;  %1401 = vrot.lane.b32.xlu1 %v2635_v1, %s3438_s4  ;;  %1412 = vrot.lane.b32.xlu0 %v2635_v1, %s3439_s11 }
 0x26b   : > { %v924_v21 = vrot.slane %v923_v17, 1  ;;  %v1052_v10 = vpop.permute.xlu1 %1051  ;;  %v1063_v18 = vpop.permute.xlu0 %1062 }
 0x26d   : > { %v925_v16 = vadd.f32 %v924_v21, %v923_v17  ;;  %1408 = vrot.lane.b32.xlu1 %v2635_v1, %s3440_s8  ;;  %1430 = vrot.lane.b32.xlu0 %v2629_v55, %s3467_s15 }
 0x26f   : > { %v926_v22 = vsel %vm3406_vm4, %v800_v15, %v925_v16  ;;  %v1059_v24 = vpop.permute.xlu1 %1058  ;;  %v1070_v31 = vpop.permute.xlu0 %1069 }
 0x270   : > { %v927_v33 = vadd.f32 %v926_v22, %v2408_v0  ;;  %v1061_v57 = vsel %vm338_vm8, %v1056_v27, %v1059_v24 }
 0x271   : > { %1427 = vrot.lane.b32.xlu1 %v2629_v55, %s3465_s23  ;;  %1437 = vrot.lane.b32.xlu0 %v2629_v55, %s3424_s30 }
 0x272   : > { %v928_v23 = vmax.f32 %v927_v33, 0.0 }
 0x273   : > { %v1066_v13 = vpop.permute.xlu1 %1065  ;;  %v1078_v12 = vpop.permute.xlu0 %1077 }
 0x274   : > { %v929_v26 = vmin.f32 %v928_v23, 1.0  ;;  %v1068_v3 = vsel %vm3505_vm3, %v1063_v18, %v1066_v13 }
 0x275   : > { %1434 = vrot.lane.b32.xlu1 %v2629_v55, %s3466_s12  ;;  %1505 = vrot.lane.b32.xlu0 %v2735_v2, %s3450_s14 }
 0x276   : > { %1733 = vst.msk [vmem:[%s2970_s22 + $0x2] sm:$0x3] %vm3405_vm1, %v929_v26  ;;  %vm3504_vm1 = vcmask 31744  }
 0x277   : > { %v1073_v36 = vpop.permute.xlu1 %1072  ;;  %v1085_v25 = vpop.permute.xlu0 %1084  ;;  %v1054_v48 = vsel %vm3504_vm1, %v1049_v9, %v1052_v10  ;;  %vm3506_vm1 = vcmask 89088  }
 0x278   : > { %v1075_v5 = vsel %vm354_vm14, %v1070_v31, %v1073_v36 }
 0x279   : > { %1502 = vrot.lane.b32.xlu1 %v2735_v2, %s3443_s1  ;;  %1512 = vrot.lane.b32.xlu0 %v2735_v2, %s3434_s26  ;;  %s3554_s1 = sld [smem:[#allocation8_spill]] }
 0x27b   : > { %v1081_v28 = vpop.permute.xlu1 %1080  ;;  %v1092_v39 = vpop.permute.xlu0 %1091 }
 0x27c   : > { %v1083_v40 = vsel %vm3497_vm0, %v1078_v12, %v1081_v28  ;;  %vm3501_vm0 = vcmask 39936  }
 0x27d   : > { %1509 = vrot.lane.b32.xlu1 %v2735_v2, %s3449_s21  ;;  %1555 = vrot.lane.b32.xlu0 %v2729_v53, %s3467_s15  ;;  %v1047_v47 = vsel %vm3501_vm0, %v2993_v50, %v1045_v37  ;;  %vm3507_vm0 = vcmask 80896   ;;  %s3560_s21 = sand.u32 1, %s2091_s13  }
 0x27f   : > { %v1088_v42 = vpop.permute.xlu1 %1087  ;;  %v1099_v38 = vpop.permute.xlu0 %1098 }
 0x280   : > { %v1090_v58 = vsel %vm3498_vm10, %v1085_v25, %v1088_v42  ;;  %vm3502_vm10 = vcmask 97280  }
 0x281   : > { %v1133_v51 = vsel %vm3406_vm4, %v1083_v40, %v1090_v58  ;;  %1552 = vrot.lane.b32.xlu1 %v2729_v53, %s3465_s23  ;;  %1562 = vrot.lane.b32.xlu0 %v2729_v53, %s3424_s30  ;;  %s3279_s23 = scalar_lea.sflag [#allocation3], %s3560_s21 }
 0x283   : > { %v1095_v41 = vpop.permute.xlu1 %1094  ;;  %v1106_v54 = vpop.permute.xlu0 %1105 }
 0x284   : > { %v1097_v8 = vsel %vm3499_vm13, %v1092_v39, %v1095_v41  ;;  %vm3503_vm13 = vcmask 56320  }
 0x285   : > { %v1134_v44 = vsel %vm415_vm5, %v1133_v51, %v1097_v8  ;;  %1559 = vrot.lane.b32.xlu1 %v2729_v53, %s3466_s12  ;;  %1444 = vrot.lane.b32.xlu0 %v2629_v55, %s3426_s20  ;;  %v1033_v60 = vsel %vm3503_vm13, %v2956_v34, %v2991_v52  ;;  %vm3509_vm13 = vcmask 130048   ;;  %s1646_s12 = sshll.u32 %s2970_s22, 4  ;;  %s3273_s12 = int_to_ptr.vmem [resolvable:$true] %s1646_s12 }
 0x286   : > { %v1126_v14 = vsel %vm3406_vm4, %v1033_v60, %v1040_v56  ;;  %vm3510_vm3 = vmmov %vm3509_vm13 }
 0x287   : > { %v1102_v45 = vpop.permute.xlu1 %1101  ;;  %v1113_v46 = vpop.permute.xlu0 %1112  ;;  %v1127_v50 = vsel %vm415_vm5, %v1126_v14, %v1047_v47 }
 0x288   : > { %v1104_v59 = vsel %vm3502_vm10, %v1099_v38, %v1102_v45  ;;  %v1128_v52 = vsel %vm417_vm7, %v1127_v50, %v1054_v48  ;;  %vm3508_vm10 = vcmask 72704  }
 0x289   : > { %v1135_v49 = vsel %vm417_vm7, %v1134_v44, %v1104_v59  ;;  %1441 = vrot.lane.b32.xlu1 %v2629_v55, %s3468_s3  ;;  %1519 = vrot.lane.b32.xlu0 %v2735_v2, %s3436_s24  ;;  %v1129_v6 = vsel %vm419_vm9, %v1128_v52, %v1061_v57 }
 0x28a   : > { %v1130_v61 = vsel %vm421_vm11, %v1129_v6, %v1068_v3 }
 0x28b   : > { %v1109_v4 = vpop.permute.xlu1 %1108  ;;  %v1120_v34 = vpop.permute.xlu0 %1119  ;;  %v1131_v7 = vsel %vm423_vm15, %v1130_v61, %v1075_v5 }
 0x28c   : > { %v1111_v29 = vsel %vm3506_vm1, %v1106_v54, %v1109_v4  ;;  %v1132_v37 = vsel %vm425_vm2, %v1131_v7, %v2386_v63  ;;  %vm3511_vm1 = vcmask 48128  }
 0x28d   : > { %1516 = vrot.lane.b32.xlu1 %v2735_v2, %s3451_s18  ;;  %1569 = vrot.lane.b32.xlu0 %v2729_v53, %s3426_s20  ;;  %v1136_v27 = vsel %vm419_vm9, %v1135_v49, %v1111_v29  ;;  %v1140_v18 = vsel %vm2605_vm12, %v1132_v37, 0.0 }
 0x28e   : > { %v1142_v31 = vsel %vm3509_vm13, %v1140_v18, 0.0  ;;  %vm3514_vm13 = vcmask 31744  }
 0x28f   : > { %v1116_v9 = vpop.permute.xlu1 %1115  ;;  %v3073_v11 = vpop.permute.xlu0 %1152 }
 0x290   : > { %v1118_v32 = vsel %vm3507_vm0, %v1113_v46, %v1116_v9  ;;  %vm3512_vm0 = vcmask 39936  }
 0x291   : > { %1566 = vrot.lane.b32.xlu1 %v2729_v53, %s3468_s3  ;;  %1451 = vrot.lane.b32.xlu0 %v2629_v55, %s3428_s25  ;;  %v1137_v21 = vsel %vm421_vm11, %v1136_v27, %v1118_v32  ;;  %s1766_s3 = sshll.u32 %s3554_s1, 7 }
 0x292   : > { %s3271_s18 = scalar_lea.hbm %s3558_s16, %s1766_s3 }
 0x293   : > { %v1123_v30 = vpop.permute.xlu1 %1122  ;;  %v1160_v17 = vpop.permute.xlu0 %1159 }
 0x294   : > { %v1125_v10 = vsel %vm3508_vm10, %v1120_v34, %v1123_v30  ;;  %vm3513_vm10 = vcmask 56320  }
 0x295   : > { %v1138_v15 = vsel %vm423_vm15, %v1137_v21, %v1125_v10  ;;  %1448 = vrot.lane.b32.xlu1 %v2629_v55, %s3425_s28  ;;  %1526 = vrot.lane.b32.xlu0 %v2735_v2, %s3438_s4 }
 0x296   : > { %v1139_v63 = vsel %vm425_vm2, %v1138_v15, %v2384_v62 }
 0x297   : > { %v1141_v16 = vsel %vm2596_vm6, %v1139_v63, 0.0  ;;  %v1156_v22 = vpop.permute.xlu1 %1155  ;;  %v1167_v24 = vpop.permute.xlu0 %1166 }
 0x298   : > { %v1143_v33 = vsel %vm3510_vm3, %v1141_v16, 0.0  ;;  %v1158_v60 = vsel %vm3513_vm10, %v3073_v11, %v1156_v22  ;;  %vm3515_vm3 = vcmask 15360   ;;  %vm3518_vm10 = vcmask 121856  }
 0x299   : > { %v3099_v23 = vadd.f32 %v1143_v33, %v1142_v31  ;;  %1523 = vrot.lane.b32.xlu1 %v2735_v2, %s3435_s17  ;;  %1576 = vrot.lane.b32.xlu0 %v2729_v53, %s3428_s25  ;;  %s2037_s17 = scalar_lea.vmem %s3273_s12, 128 }
 0x29a   : > { %p2038_p11 = scmp.ne.s32.totalorder %s3273_s12, %s2037_s17 }
 0x29b   : > { %v1163_v13 = vpop.permute.xlu1 %1162  ;;  %v1174_v12 = vpop.permute.xlu0 %1173 }
 0x29c   : > { %v1165_v45 = vsel %vm3511_vm1, %v1160_v17, %v1163_v13  ;;  %vm3516_vm1 = vcmask 113664   ;;  %v1145_v17 = vrot.slane %v3099_v23, 4  ;;  %p2039_p12 = pnand %p2038_p11, %p2190_p5 }
 0x29d   : > { %1573 = vrot.lane.b32.xlu1 %v2729_v53, %s3425_s28  ;;  %1458 = vrot.lane.b32.xlu0 %v2629_v55, %s3430_s27  ;;  %v1251_v49 = vsel %vm3406_vm4, %v1158_v60, %v1165_v45 }
 0x29e   : > { %v1146_v33 = vadd.f32 %v1145_v17, %v3099_v23  ;;  %p2040_p13 = pneg %p2039_p12 }
 0x29f   : > { %v1170_v62 = vpop.permute.xlu1 %1169  ;;  %v1181_v26 = vpop.permute.xlu0 %1180 }
 0x2a0   : > { %v1172_v59 = vsel %vm3512_vm0, %v1167_v24, %v1170_v62  ;;  %vm3517_vm0 = vcmask 105472   ;;  %v1147_v23 = vrot.slane %v1146_v33, 2 }
 0x2a1   : > { %1455 = vrot.lane.b32.xlu1 %v2629_v55, %s3427_s5  ;;  %1533 = vrot.lane.b32.xlu0 %v2735_v2, %s3440_s8  ;;  %v1252_v57 = vsel %vm415_vm5, %v1251_v49, %v1172_v59 }
 0x2a3   : > { %v1177_v36 = vpop.permute.xlu1 %1176  ;;  %v1188_v25 = vpop.permute.xlu0 %1187 }
 0x2a4   : > { %v1179_v48 = vsel %vm3514_vm13, %v1174_v12, %v1177_v36  ;;  %vm3519_vm13 = vcmask 97280  }
 0x2a5   : > { %1530 = vrot.lane.b32.xlu1 %v2735_v2, %s3437_s19  ;;  %1583 = vrot.lane.b32.xlu0 %v2729_v53, %s3430_s27  ;;  %v1253_v34 = vsel %vm417_vm7, %v1252_v57, %v1179_v48  ;;  %s2130_s19 = smov [#allocation2]  }
 0x2a6   : > { %s2041_s20 = sshll.u32 %s2130_s19, 4  ;;  %s2042_s20 = int_to_ptr.vmem [resolvable:$false] %s2041_s20 }
 0x2a7   : > { %v1184_v28 = vpop.permute.xlu1 %1183  ;;  %v1195_v39 = vpop.permute.xlu0 %1194  ;;  %s2043_s24 = scalar_lea.vmem %s2042_s20, 256  ;;  %p2044_p0 = scmp.lt.s32.totalorder %s3273_s12, %s2042_s20 }
 0x2a8   : > { %v1186_v14 = vsel %vm338_vm8, %v1181_v26, %v1184_v28  ;;  %p2045_p1 = scmp.lt.s32.totalorder %s2043_s24, %s2037_s17 }
 0x2a9   : > { %1580 = vrot.lane.b32.xlu1 %v2729_v53, %s3427_s5  ;;  %1462 = vrot.lane.b32.xlu0 %v2629_v55, %s3429_s7  ;;  %v1254_v5 = vsel %vm419_vm9, %v1253_v34, %v1186_v14 }
 0x2aa   : > { %p2046_p2 = por %p2045_p1, %p2044_p0 }
 0x2ab   : > { %v1191_v40 = vpop.permute.xlu1 %1190  ;;  %v1203_v42 = vpop.permute.xlu0 %1202 }
 0x2ac   : > { %v1193_v50 = vsel %vm3515_vm3, %v1188_v25, %v1191_v40  ;;  %vm3520_vm3 = vcmask 89088   ;;  %p2047_p3 = pnand %p2046_p2, %p2040_p13 }
 0x2ad   : > { %1415 = vrot.lane.b32.xlu1 %v2635_v1, %s3442_s0  ;;  %1537 = vrot.lane.b32.xlu0 %v2735_v2, %s3439_s11  ;;  %v1255_v61 = vsel %vm421_vm11, %v1254_v5, %v1193_v50 }
 0x2af   : > { %v1198_v38 = vpop.permute.xlu1 %1197  ;;  %v1210_v58 = vpop.permute.xlu0 %1209 }
 0x2b0   : > { %v1200_v52 = vsel %vm354_vm14, %v1195_v39, %v1198_v38 }
 0x2b1   : > { %1465 = vrot.lane.b32.xlu1 %v2629_v55, %s3432_s29  ;;  %1587 = vrot.lane.b32.xlu0 %v2729_v53, %s3429_s7  ;;  %v1256_v9 = vsel %vm423_vm15, %v1255_v61, %v1200_v52 }
 0x2b2   : > { %v1257_v18 = vsel %vm425_vm2, %v1256_v9, %v2488_v20 }
 0x2b3   : > { %v1206_v51 = vpop.permute.xlu1 %1205  ;;  %v1217_v41 = vpop.permute.xlu0 %1216  ;;  %v1265_v13 = vsel %vm2605_vm12, %v1257_v18, 0.0 }
 0x2b4   : > { %v1208_v11 = vsel %vm3518_vm10, %v1203_v42, %v1206_v51  ;;  %vm3523_vm10 = vcmask 130048  }
 0x2b5   : > { %1540 = vrot.lane.b32.xlu1 %v2735_v2, %s3442_s0  ;;  %1419 = vrot.lane.b32.xlu0 %v2635_v1, %s3441_s9  ;;  %v1267_v25 = vsel %vm3523_vm10, %v1265_v13, 0.0 }
 0x2b7   : > { %v1213_v54 = vpop.permute.xlu1 %1212  ;;  %v1224_v8 = vpop.permute.xlu0 %1223 }
 0x2b8   : > { %v1215_v6 = vsel %vm3516_vm1, %v1210_v58, %v1213_v54  ;;  %vm3521_vm1 = vcmask 80896  }
 0x2b9   : > { %1590 = vrot.lane.b32.xlu1 %v2729_v53, %s3432_s29  ;;  %1469 = vrot.lane.b32.xlu0 %v2629_v55, %s3431_s6  ;;  %v1258_v27 = vsel %vm3406_vm4, %v1208_v11, %v1215_v6 }
 0x2bb   : > { %v1220_v44 = vpop.permute.xlu1 %1219  ;;  %v1231_v56 = vpop.permute.xlu0 %1230 }
 0x2bc   : > { %v1222_v7 = vsel %vm3517_vm0, %v1217_v41, %v1220_v44  ;;  %vm3522_vm0 = vcmask 72704   ;;  %v1148_v41 = vadd.f32 %v1147_v23, %v1146_v33 }
 0x2bd   : > { %1422 = vrot.lane.b32.xlu1 %v2635_v1, %s3448_s2  ;;  %1544 = vrot.lane.b32.xlu0 %v2735_v2, %s3441_s9  ;;  %v1259_v21 = vsel %vm415_vm5, %v1258_v27, %v1222_v7 }
 0x2bf   : > { %v1227_v46 = vpop.permute.xlu1 %1226  ;;  %v1238_v47 = vpop.permute.xlu0 %1237 }
 0x2c0   : > { %v1229_v29 = vsel %vm3519_vm13, %v1224_v8, %v1227_v46  ;;  %vm3524_vm13 = vmmov %vm3523_vm10  ;;  %v1149_v46 = vrot.slane %v1148_v41, 1  ;;  %vm3528_vm10 = vcmask 31744  }
 0x2c1   : > { %1472 = vrot.lane.b32.xlu1 %v2629_v55, %s3433_s10  ;;  %1594 = vrot.lane.b32.xlu0 %v2729_v53, %s3431_s6  ;;  %v1260_v15 = vsel %vm417_vm7, %v1259_v21, %v1229_v29 }
 0x2c2   : > { %v1150_v57 = vadd.f32 %v1149_v46, %v1148_v41 }
 0x2c3   : > { %v1234_v3 = vpop.permute.xlu1 %1233  ;;  %v1245_v4 = vpop.permute.xlu0 %1244 }
 0x2c4   : > { %v1236_v30 = vsel %vm3520_vm3, %v1231_v56, %v1234_v3  ;;  %vm3525_vm3 = vcmask 56320  }
 0x2c5   : > { %1547 = vrot.lane.b32.xlu1 %v2735_v2, %s3448_s2  ;;  %v1261_v63 = vsel %vm419_vm9, %v1260_v15, %v1236_v30 }
 0x2c7   : > { %v1241_v32 = vpop.permute.xlu1 %1240  ;;  %v1378_v37 = vpop.permute.xlu0 %1377 }
 0x2c8   : > { %v1243_v10 = vsel %vm3521_vm1, %v1238_v47, %v1241_v32  ;;  %vm3526_vm1 = vcmask 48128  }
 0x2c9   : > { %1597 = vrot.lane.b32.xlu1 %v2729_v53, %s3433_s10  ;;  %v1262_v24 = vsel %vm421_vm11, %v1261_v63, %v1243_v10 }
 0x2cb   : > { %v1248_v16 = vpop.permute.xlu1 %1247  ;;  %v1385_v22 = vpop.permute.xlu0 %1384 }
 0x2cc   : > { %v1250_v31 = vsel %vm3522_vm0, %v1245_v4, %v1248_v16  ;;  %vm3527_vm0 = vcmask 39936  }
 0x2cd   : > { %v1263_v12 = vsel %vm423_vm15, %v1262_v24, %v1250_v31 }
 0x2ce   : > { %v1264_v20 = vsel %vm425_vm2, %v1263_v12, %v2482_v19 }
 0x2cf   : > { %v1266_v62 = vsel %vm2596_vm6, %v1264_v20, 0.0  ;;  %v1381_v26 = vpop.permute.xlu1 %1380  ;;  %v1392_v36 = vpop.permute.xlu0 %1391 }
 0x2d0   : > { %v1268_v28 = vsel %vm3524_vm13, %v1266_v62, 0.0  ;;  %v1383_v39 = vsel %vm3525_vm3, %v1378_v37, %v1381_v26  ;;  %vm3529_vm13 = vcmask 121856   ;;  %vm3530_vm3 = vcmask 123904  }
 0x2d1   : > { %v1269_v40 = vadd.f32 %v1268_v28, %v1267_v25 }
 0x2d3   : > { %v1270_v42 = vrot.slane %v1269_v40, 4  ;;  %v1388_v38 = vpop.permute.xlu1 %1387  ;;  %v1399_v58 = vpop.permute.xlu0 %1398 }
 0x2d4   : > { %v1390_v51 = vsel %vm3526_vm1, %v1385_v22, %v1388_v38  ;;  %vm3531_vm1 = vcmask 113664  }
 0x2d5   : > { %v1271_v19 = vadd.f32 %v1270_v42, %v1269_v40  ;;  %v1476_v54 = vsel %vm3406_vm4, %v1383_v39, %v1390_v51 }
 0x2d7   : > { %v1272_v8 = vrot.slane %v1271_v19, 2  ;;  %v1395_v44 = vpop.permute.xlu1 %1394  ;;  %v1406_v56 = vpop.permute.xlu0 %1405 }
 0x2d8   : > { %v1397_v45 = vsel %vm3527_vm0, %v1392_v36, %v1395_v44  ;;  %vm3532_vm0 = vcmask 56320  }
 0x2d9   : > { %v1273_v47 = vadd.f32 %v1272_v8, %v1271_v19  ;;  %v1477_v59 = vsel %vm415_vm5, %v1476_v54, %v1397_v45 }
 0x2db   : > { %v1274_v60 = vrot.slane %v1273_v47, 1  ;;  %v1402_v48 = vpop.permute.xlu1 %1401  ;;  %v1413_v49 = vpop.permute.xlu0 %1412 }
 0x2dc   : > { %v1404_v14 = vsel %vm3528_vm10, %v1399_v58, %v1402_v48  ;;  %vm3533_vm10 = vcmask 48128  }
 0x2dd   : > { %v1275_v50 = vadd.f32 %v1274_v60, %v1273_v47  ;;  %v1478_v3 = vsel %vm417_vm7, %v1477_v59, %v1404_v14 }
 0x2df   : > { %v1276_v4 = vsel %vm3406_vm4, %v1150_v57, %v1275_v50  ;;  %v1409_v34 = vpop.permute.xlu1 %1408  ;;  %v1431_v52 = vpop.permute.xlu0 %1430 }
 0x2e0   : > { %v1277_v5 = vadd.f32 %v1276_v4, %v2408_v0  ;;  %v1411_v6 = vsel %vm338_vm8, %v1406_v56, %v1409_v34 }
 0x2e1   : > { %v1479_v61 = vsel %vm419_vm9, %v1478_v3, %v1411_v6 }
 0x2e2   : > { %v1278_v7 = vmax.f32 %v1277_v5, 0.0 }
 0x2e3   : > { %v1428_v9 = vpop.permute.xlu1 %1427  ;;  %v1438_v11 = vpop.permute.xlu0 %1437 }
 0x2e4   : > { %v1279_v29 = vmin.f32 %v1278_v7, 1.0  ;;  %v1433_v32 = vsel %vm3529_vm13, %v1428_v9, %v1431_v52  ;;  %vm3534_vm13 = vcmask 15360  }
 0x2e6   : > { %1746 = vst.msk [vmem:[%s2970_s22 + $0x4] sm:$0x3] %vm3530_vm3, %v1279_v29  ;;  %vm3535_vm3 = vcmask 105472  }
 0x2e7   : > { %v1435_v37 = vpop.permute.xlu1 %1434  ;;  %v1506_v27 = vpop.permute.xlu0 %1505 }
 0x2e8   : > { %v1440_v30 = vsel %vm3531_vm1, %v1435_v37, %v1438_v11  ;;  %vm3536_vm1 = vcmask 97280  }
 0x2e9   : > { %v1483_v17 = vsel %vm3406_vm4, %v1433_v32, %v1440_v30 }
 0x2eb   : > { %v1503_v21 = vpop.permute.xlu1 %1502  ;;  %v1513_v10 = vpop.permute.xlu0 %1512 }
 0x2ec   : > { %v1508_v18 = vsel %vm3532_vm0, %v1503_v21, %v1506_v27  ;;  %vm3537_vm0 = vcmask 89088  }
 0x2ef   : > { %v1510_v15 = vpop.permute.xlu1 %1509  ;;  %v1556_v63 = vpop.permute.xlu0 %1555 }
 0x2f0   : > { %v1515_v16 = vsel %vm3533_vm10, %v1510_v15, %v1513_v10  ;;  %vm3538_vm10 = vcmask 80896  }
 0x2f1   : > { %v1601_v22 = vsel %vm3406_vm4, %v1508_v18, %v1515_v16  ;;  %vm3539_vm4 = vcmask 39936  }
 0x2f3   : > { %v1553_v24 = vpop.permute.xlu1 %1552  ;;  %v1563_v31 = vpop.permute.xlu0 %1562 }
 0x2f7   : > { %v1560_v33 = vpop.permute.xlu1 %1559  ;;  %v1445_v13 = vpop.permute.xlu0 %1444 }
 0x2fb   : > { %v1442_v12 = vpop.permute.xlu1 %1441  ;;  %v1520_v20 = vpop.permute.xlu0 %1519 }
 0x2fc   : > { %v1447_v14 = vsel %vm3535_vm3, %v1442_v12, %v1445_v13  ;;  %vm3541_vm3 = vcmask 31744  }
 0x2fd   : > { %v1484_v5 = vsel %vm415_vm5, %v1483_v17, %v1447_v14 }
 0x2ff   : > { %v1517_v62 = vpop.permute.xlu1 %1516  ;;  %v1570_v26 = vpop.permute.xlu0 %1569 }
 0x303   : > { %v1567_v36 = vpop.permute.xlu1 %1566  ;;  %v1452_v25 = vpop.permute.xlu0 %1451 }
 0x307   : > { %v1449_v28 = vpop.permute.xlu1 %1448  ;;  %v1527_v39 = vpop.permute.xlu0 %1526 }
 0x308   : > { %v1454_v57 = vsel %vm3536_vm1, %v1449_v28, %v1452_v25  ;;  %vm3542_vm1 = vcmask 121856  }
 0x309   : > { %v1485_v9 = vsel %vm417_vm7, %v1484_v5, %v1454_v57  ;;  %v1558_v27 = vsel %vm3542_vm1, %v1553_v24, %v1556_v63  ;;  %vm3549_vm1 = vcmask 130048  }
 0x30b   : > { %v1524_v23 = vpop.permute.xlu1 %1523  ;;  %v1577_v40 = vpop.permute.xlu0 %1576 }
 0x30c   : > { %v1529_v32 = vsel %vm3541_vm3, %v1524_v23, %v1527_v39  ;;  %vm3548_vm3 = vcmask 89088  }
 0x30f   : > { %v1574_v42 = vpop.permute.xlu1 %1573  ;;  %v1459_v38 = vpop.permute.xlu0 %1458 }
 0x313   : > { %v1456_v58 = vpop.permute.xlu1 %1455  ;;  %v1534_v51 = vpop.permute.xlu0 %1533 }
 0x314   : > { %v1461_v4 = vsel %vm3537_vm0, %v1456_v58, %v1459_v38  ;;  %vm3543_vm0 = vcmask 72704  }
 0x317   : > { %v1531_v41 = vpop.permute.xlu1 %1530  ;;  %v1584_v19 = vpop.permute.xlu0 %1583 }
 0x318   : > { %v1536_v30 = vsel %vm338_vm8, %v1531_v41, %v1534_v51  ;;  %vm3547_vm8 = vcmask 97280  }
 0x319   : > { %v1579_v13 = vsel %vm3547_vm8, %v1574_v42, %v1577_v40 }
 0x31b   : > { %v1581_v54 = vpop.permute.xlu1 %1580  ;;  %v1463_v8 = vpop.permute.xlu0 %1462 }
 0x31c   : > { %v1586_v12 = vsel %vm3548_vm3, %v1581_v54, %v1584_v19 }
 0x31f   : > { %v1416_v44 = vpop.permute.xlu1 %1415  ;;  %v1538_v56 = vpop.permute.xlu0 %1537 }
 0x320   : > { %v1418_v48 = vsel %vm3534_vm13, %v1413_v49, %v1416_v44  ;;  %v1522_v49 = vsel %vm3539_vm4, %v1517_v62, %v1520_v20  ;;  %vm3540_vm13 = vcmask 113664   ;;  %vm3544_vm4 = vcmask 15360  }
 0x321   : > { %v1480_v34 = vsel %vm421_vm11, %v1479_v61, %v1418_v48  ;;  %v1565_v29 = vsel %vm3540_vm13, %v1560_v33, %v1563_v31  ;;  %v1486_v61 = vsel %vm419_vm9, %v1485_v9, %v1461_v4  ;;  %v1602_v10 = vsel %vm415_vm5, %v1601_v22, %v1522_v49 }
 0x322   : > { %vm3546_vm13 = vcmask 105472   ;;  %v1603_v24 = vsel %vm417_vm7, %v1602_v10, %v1529_v32 }
 0x323   : > { %v1466_v45 = vpop.permute.xlu1 %1465  ;;  %v1588_v46 = vpop.permute.xlu0 %1587  ;;  %v1572_v63 = vsel %vm3546_vm13, %v1567_v36, %v1570_v26  ;;  %v1604_v22 = vsel %vm419_vm9, %v1603_v24, %v1536_v30 }
 0x324   : > { %v1468_v6 = vsel %vm3538_vm10, %v1463_v8, %v1466_v45  ;;  %vm3545_vm10 = vcmask 1040384  }
 0x325   : > { %v1487_v17 = vsel %vm421_vm11, %v1486_v61, %v1468_v6  ;;  %v1608_v31 = vsel %vm3545_vm10, %v1558_v27, %v1565_v29 }
 0x327   : > { %v1541_v47 = vpop.permute.xlu1 %1540  ;;  %v1420_v59 = vpop.permute.xlu0 %1419 }
 0x328   : > { %v1543_v18 = vsel %vm3544_vm4, %v1538_v56, %v1541_v47  ;;  %vm3551_vm4 = vcmask 80896  }
 0x329   : > { %v1605_v25 = vsel %vm421_vm11, %v1604_v22, %v1543_v18 }
 0x32b   : > { %v1591_v60 = vpop.permute.xlu1 %1590  ;;  %v1470_v50 = vpop.permute.xlu0 %1469 }
 0x32c   : > { %v1593_v39 = vsel %vm3551_vm4, %v1588_v46, %v1591_v60 }
 0x32f   : > { %v1423_v3 = vpop.permute.xlu1 %1422  ;;  %v1545_v15 = vpop.permute.xlu0 %1544 }
 0x330   : > { %v1425_v52 = vsel %vm354_vm14, %v1420_v59, %v1423_v3 }
 0x331   : > { %v1481_v7 = vsel %vm423_vm15, %v1480_v34, %v1425_v52 }
 0x332   : > { %v1482_v11 = vsel %vm425_vm2, %v1481_v7, %v2635_v1 }
 0x333   : > { %v1473_v37 = vpop.permute.xlu1 %1472  ;;  %v1490_v1 = vsel %vm2605_vm12, %v1482_v11, 0.0  ;;  %v1595_v41 = vpop.permute.xlu0 %1594 }
 0x334   : > { %v1475_v21 = vsel %vm3543_vm0, %v1470_v50, %v1473_v37  ;;  %v1492_v28 = vsel %vm3549_vm1, %v1490_v1, 0.0  ;;  %vm3550_vm0 = vmmov %vm3549_vm1 }
 0x335   : > { %v1488_v16 = vsel %vm423_vm15, %v1487_v17, %v1475_v21 }
 0x336   : > { %v1489_v33 = vsel %vm425_vm2, %v1488_v16, %v2629_v55  ;;  %v1609_v55 = vsel %vm415_vm5, %v1608_v31, %v1572_v63  ;;  %vm3553_vm5 = vmmov %vm3550_vm0 }
 0x337   : > { %v1491_v20 = vsel %vm2596_vm6, %v1489_v33, 0.0  ;;  %v1548_v62 = vpop.permute.xlu1 %1547  ;;  %v1610_v42 = vsel %vm417_vm7, %v1609_v55, %v1579_v13  ;;  %vm3555_vm7 = vmmov %vm3550_vm0 }
 0x338   : > { %v1493_v26 = vsel %vm3550_vm0, %v1491_v20, 0.0  ;;  %v1550_v36 = vsel %vm354_vm14, %v1545_v15, %v1548_v62  ;;  %v1611_v58 = vsel %vm419_vm9, %v1610_v42, %v1586_v12  ;;  %vm3552_vm14 = vcmask 72704  }
 0x339   : > { %v1494_v23 = vadd.f32 %v1493_v26, %v1492_v28  ;;  %v1606_v40 = vsel %vm423_vm15, %v1605_v25, %v1550_v36  ;;  %v1612_v54 = vsel %vm421_vm11, %v1611_v58, %v1593_v39 }
 0x33a   : > { %v1607_v38 = vsel %vm425_vm2, %v1606_v40, %v2735_v2 }
 0x33b   : > { %v1495_v51 = vrot.slane %v1494_v23, 4  ;;  %v1598_v19 = vpop.permute.xlu1 %1597  ;;  %v1615_v56 = vsel %vm2605_vm12, %v1607_v38, 0.0 }
 0x33c   : > { %v1600_v8 = vsel %vm3552_vm14, %v1595_v41, %v1598_v19  ;;  %v1617_v47 = vsel %vm3553_vm5, %v1615_v56, 0.0 }
 0x33d   : > { %v1496_v44 = vadd.f32 %v1495_v51, %v1494_v23  ;;  %v1613_v45 = vsel %vm423_vm15, %v1612_v54, %v1600_v8 }
 0x33e   : > { %v1614_v46 = vsel %vm425_vm2, %v1613_v45, %v2729_v53  ;;  %vm3557_vm2 = vmmov %vm3545_vm10 }
 0x33f   : > { %v1616_v2 = vsel %vm2596_vm6, %v1614_v46, 0.0  ;;  %v1497_v60 = vrot.slane %v1496_v44, 2  ;;  %vm3559_vm6 = vcmask 123904  }
 0x340   : > { %v1618_v59 = vsel %vm3555_vm7, %v1616_v2, 0.0 }
 0x341   : > { %v1619_v48 = vadd.f32 %v1618_v59, %v1617_v47  ;;  %v1498_v57 = vadd.f32 %v1497_v60, %v1496_v44 }
 0x343   : > { %v1620_v14 = vrot.slane %v1619_v48, 4  ;;  %v1499_v3 = vrot.slane %v1498_v57, 1 }
 0x345   : > { %v1621_v43 = vadd.f32 %v1620_v14, %v1619_v48  ;;  %v1500_v35 = vadd.f32 %v1499_v3, %v1498_v57 }
 0x347   : > { %v1622_v50 = vrot.slane %v1621_v43, 2 }
 0x349   : > { %v1623_v4 = vadd.f32 %v1622_v50, %v1621_v43 }
 0x34b   : > { %v1624_v53 = vrot.slane %v1623_v4, 1 }
 0x34d   : > { %v1625_v34 = vadd.f32 %v1624_v53, %v1623_v4 }
 0x34f   : > { %v1626_v52 = vsel %vm3557_vm2, %v1500_v35, %v1625_v34 }
 0x350   : > { %v1627_v5 = vadd.f32 %v1626_v52, %v2408_v0 }
 0x352   : > { %v1628_v6 = vmax.f32 %v1627_v5, 0.0 }
 0x354   : > { %v1629_v7 = vmin.f32 %v1628_v6, 1.0 }
 0x356   : > { %1759 = vst.msk [vmem:[%s2970_s22 + $0x6] sm:$0x3] %vm3559_vm6, %v1629_v7 }
 0x357   : > { %2050 = shalt.err (!%p2047_p3)
}
 0x358   : > { %s2051_s22 = scalar_lea.hbm %s3271_s18, 128  ;;  %s2055_s27 = scalar_lea.hbm %s3558_s16, 512 }
 0x359   : > { %p2052_p4 = scmp.ne.s32.totalorder %s3271_s18, %s2051_s22  ;;  %p2056_p9 = scmp.lt.u32.totalorder %s3271_s18, %s3558_s16 }
 0x35a   : > { %p2057_p10 = scmp.lt.u32.totalorder %s2055_s27, %s2051_s22  ;;  %p2059_p12 = scmp.lt.u32.totalorder %s2051_s22, %s3271_s18 }
 0x35b   : > { %p2053_p7 = pnand %p2052_p4, %p2190_p5 }
 0x35c   : > { %p2058_p11 = por %p2057_p10, %p2056_p9 }
 0x35d   : > { %p2054_p8 = pneg %p2053_p7 }
 0x35e   : > { %p2060_p13 = por %p2059_p12, %p2058_p11 }
 0x360   : > { %p2061_p0 = pnand %p2060_p13, %p2054_p8 }
 0x362   : > { %2064 = shalt.err (!%p2061_p0)
}
 0x363   : > { %s2131_s30 = smov 32  }
 0x364   : > { %1967 = dma.vmem_to_hbm [thread:$0]  (%p2190_p5), %s3273_s12, 128, %s3271_s18, %s3279_s23, %s2131_s30, %s2131_s30, %s3442_s0  }
 0x365 PF: > { %s3561_s4 = sld [smem:[#allocation7_spill]]  ;;  %s3562_s5 = sld [smem:[#allocation5_spill]] }
 0x36b   : > { %p1973_p1 = scmp.ge.s32.totalorder %s3561_s4, 2  ;;  %s1661_s7 = sand.u32 1, %s3562_s5  }
 0x36c   : > { %s1662_s8 = scalar_lea.sflag [#allocation3], %s1661_s7 }
 0x36d   : > { %p1970_p2 = pnand %p1973_p1, %p2194_p6 }
 0x36f   : > { %2082 = dma.done.wait (!%p1970_p2), %s1662_s8, 128  }
 0x370   : > { %2084 = vsyncadd (!%p1970_p2), %s1662_s8, 4294967168  ;;  %s3564_s15 = sld [smem:[#allocation9_spill]]  ;;  %s3565_s9 = sld [smem:[#allocation6_spill]] }
 0x371   : > { %s3566_s14 = sld [smem:[#allocation10_spill]]  ;;  %s3567_s12 = smov %s2091_s13 }
 0x376   : > { %p13_p3 = scmp.ge.s32.totalorder %s3564_s15, 6   ;;  %s3568_s13 = smov %s3565_s9 }
 0x378   :  { %15 = sbr.rel (!%p13_p3) target bundleno = 8 (0x8), region = 73 }
 0x37f   :  { %1667 = vsyncpa [#allocation3], 1 }
 0x380   :  { %1669 = vsyncpa [#allocation3 + $0x1], 1 }

</bundles_post_ra>
